<compile_context>
chip_gen: v6e
topology: v6e:2x2x1
jax: 0.10.0
libtpu: 0.0.40
codegen_flags: <defaults>
</compile_context>

<pallas_src>
import jax
import jax.numpy as jnp
import numpy as np
from jax.experimental import pallas as pl
from jax.experimental.pallas import tpu as pltpu

# ---- ConvTranspose2d hyper-parameters from the PyTorch module ----
C_IN, C_OUT = 1, 61
KH, KW = 5, 5
STRIDE = (2, 2)
PADDING = (61, 61)
OUTPUT_PADDING = (66, 66)

K_TAPS = C_IN * KH * KW                    # 25 real taps
K_PAD = ((K_TAPS + 31) // 32) * 32         # 32: sublane-aligned contraction dim
C_PAD = ((C_OUT + 63) // 64) * 64          # 64: sublane-aligned output channels
NUM_S_BLOCKS = 4                           # spatial blocks (v7x megacore + DMA overlap)


def _out_size(n, s, p, k, op):
    return (n - 1) * s - 2 * p + k + op


def _make_effective_input(x):
    """Zero-dilate x by the stride, then crop/pad so a VALID KHxKW correlation with the
    spatially flipped weight reproduces the transposed convolution exactly."""
    N, C, H, W = x.shape
    sh, sw = STRIDE
    ph, pw = PADDING
    Ho = _out_size(H, sh, ph, KH, OUTPUT_PADDING[0])
    Wo = _out_size(W, sw, pw, KW, OUTPUT_PADDING[1])
    Hd, Wd = (H - 1) * sh + 1, (W - 1) * sw + 1
    xd = jnp.zeros((N, C, Hd, Wd), x.dtype).at[:, :, ::sh, ::sw].set(x)

    Le_h, Le_w = Ho + KH - 1, Wo + KW - 1
    start_h, start_w = ph - (KH - 1), pw - (KW - 1)
    pad_l_h, pad_l_w = max(0, -start_h), max(0, -start_w)
    pad_r_h = max(0, start_h + Le_h - Hd)
    pad_r_w = max(0, start_w + Le_w - Wd)
    xp = jnp.pad(xd, ((0, 0), (0, 0), (pad_l_h, pad_r_h), (pad_l_w, pad_r_w)))
    sh0, sw0 = start_h + pad_l_h, start_w + pad_l_w
    xe = xp[:, :, sh0:sh0 + Le_h, sw0:sw0 + Le_w]
    return xe, Ho, Wo


def _im2col_t(xe, Ho, Wo):
    """(N, C_IN, He, We) -> (K_TAPS, N, Ho*Wo), tap-major.
    Tap t = c*KH*KW + kh*KW + kw; spatial s = h*Wo + w."""
    N = xe.shape[0]
    rows = []
    for c in range(C_IN):
        for kh in range(KH):
            for kw in range(KW):
                rows.append(xe[:, c, kh:kh + Ho, kw:kw + Wo].reshape(N, Ho * Wo))
    return jnp.stack(rows, axis=0)


def _kernel(w_ref, p_ref, o_ref):
    # w_ref: (C_PAD, K_PAD) weights, p_ref: (K_PAD, TS) patches, o_ref: (C_PAD, TS).
    acc = jnp.dot(w_ref[...], p_ref[...],
                  preferred_element_type=jnp.float32,
                  precision=jax.lax.Precision.HIGHEST)
    # Sigmoid: exp on the EUP, exact divide (VALU has plenty of slack here).
    o_ref[...] = 1.0 / (1.0 + jnp.exp(-acc))


@jax.jit
def conv_transpose_sigmoid(x, weight):
    """x: (N, C_IN, H, W) f32; weight: (C_IN, C_OUT, KH, KW) f32 (PyTorch layout)."""
    N = x.shape[0]
    xe, Ho, Wo = _make_effective_input(x)
    S = Ho * Wo
    TS = pl.cdiv(S, NUM_S_BLOCKS * 128) * 128        # lane-aligned spatial tile
    S_pad = TS * NUM_S_BLOCKS

    # Layout plumbing (wrapper side): tap-major im2col + zero padding, no relayout.
    Pt = _im2col_t(xe, Ho, Wo)                                       # (25, N, S)
    Pt = jnp.pad(Pt, ((0, K_PAD - K_TAPS), (0, 0), (0, S_pad - S)))  # (32, N, S_pad)
    Pt = Pt.reshape(K_PAD, N * S_pad)                                # batch-major lanes

    # Flipped taps as a (C_PAD, K_PAD) matmul operand: Wm[oc, t] = flip(weight)[c, oc, kh, kw].
    w_flip = jnp.flip(weight, (2, 3))                                # (C_IN, C_OUT, KH, KW)
    Wm = w_flip.transpose(1, 0, 2, 3).reshape(C_OUT, K_TAPS)         # (C_OUT, 25)
    Wm = jnp.pad(Wm, ((0, C_PAD - C_OUT), (0, K_PAD - K_TAPS)))      # (64, 32)

    grid = (N * NUM_S_BLOCKS,)
    out_mat = pl.pallas_call(
        _kernel,
        out_shape=jax.ShapeDtypeStruct((C_PAD, N * S_pad), jnp.float32),
        grid=grid,
        in_specs=[
            pl.BlockSpec((C_PAD, K_PAD), lambda i: (0, 0)),  # weight matrix (resident)
            pl.BlockSpec((K_PAD, TS), lambda i: (0, i)),     # patch columns for this block
        ],
        out_specs=pl.BlockSpec((C_PAD, TS), lambda i: (0, i)),
        compiler_params=pltpu.CompilerParams(
            dimension_semantics=("parallel",),
            vmem_limit_bytes=16 * 1024 * 1024),
    )(Wm, Pt)

    # Crop padding; output is already channel-major so no HWC->CHW relayout is needed.
    out = out_mat[:C_OUT, :].reshape(C_OUT, N, S_pad)[:, :, :S]
    out = out.reshape(C_OUT, N, Ho, Wo).transpose(1, 0, 2, 3)        # leading-axes swap only
    return out


def reference(x, weight):
    """Pure-JAX reference: transposed conv via dilated conv with (possibly negative) padding."""
    w_oihw = jnp.flip(weight, (2, 3)).transpose(1, 0, 2, 3)          # (C_OUT, C_IN, KH, KW)
    ph, pw = PADDING
    oph, opw = OUTPUT_PADDING
    pad_h = (KH - 1 - ph, KH - 1 - ph + oph)
    pad_w = (KW - 1 - pw, KW - 1 - pw + opw)
    y = jax.lax.conv_general_dilated(
        x, w_oihw, window_strides=(1, 1),
        padding=(pad_h, pad_w),
        lhs_dilation=STRIDE,
        dimension_numbers=("NCHW", "OIHW", "NCHW"),
        precision=jax.lax.Precision.HIGHEST)
    return jax.nn.sigmoid(y)


if __name__ == "__main__":
    key = jax.random.PRNGKey(0)
    kx, kw = jax.random.split(key)
    # Same input shape as the PyTorch script: x1 = torch.randn(1, 1, 98, 42)
    x = jax.random.normal(kx, (1, C_IN, 98, 42), jnp.float32)
    # Deterministic synthetic weight (PyTorch ConvTranspose2d weight layout (C_in, C_out, KH, KW)).
    weight = jax.random.normal(kw, (C_IN, C_OUT, KH, KW), jnp.float32) * 0.1

    out = jax.block_until_ready(conv_transpose_sigmoid(x, weight))
    assert out.shape == (1, C_OUT, 143, 31), out.shape

    ref = jax.block_until_ready(reference(x, weight))
    np.testing.assert_allclose(np.asarray(out), np.asarray(ref), atol=2e-5, rtol=2e-5)
    print("KERNEL_OK")
</pallas_src>

<mosaic_0001>
module attributes {stable_mosaic.version = 11 : i64} {
  func.func @_kernel(%arg0: i32, %arg1: memref<64x32xf32, #tpu.memory_space<vmem>>, %arg2: memref<32x1152xf32, #tpu.memory_space<vmem>>, %arg3: memref<64x1152xf32, #tpu.memory_space<vmem>>) attributes {dimension_semantics = [#tpu.dimension_semantics<parallel>], iteration_bounds = array<i64: 4>, scalar_prefetch = 0 : i64, scratch_operands = 0 : i64, tpu.core_type = #tpu.core_type<tc>, window_params = [{pipeline_mode = #tpu.pipeline_mode<synchronous>, transform_indices = @transform_0, window_bounds = array<i64: 64, 32>}, {transform_indices = @transform_1, window_bounds = array<i64: 32, 1152>}, {transform_indices = @transform_2, window_bounds = array<i64: 64, 1152>}]} {
    %c0 = arith.constant 0 : index
    %c0_0 = arith.constant 0 : index
    %0 = vector.load %arg1[%c0, %c0_0] : memref<64x32xf32, #tpu.memory_space<vmem>>, vector<64x32xf32>
    %c0_1 = arith.constant 0 : index
    %c0_2 = arith.constant 0 : index
    %1 = vector.load %arg2[%c0_1, %c0_2] : memref<32x1152xf32, #tpu.memory_space<vmem>>, vector<32x1152xf32>
    %cst = arith.constant dense<0.000000e+00> : vector<64x1152xf32>
    %2 = tpu.matmul %0, %1, %cst {dimension_numbers = #tpu.dot_dimension_numbers<[1], [0], [0], [1], [0, 0, 1, 1], [], []>, precision = #tpu.contract_precision<fp32>} : vector<64x32xf32>, vector<32x1152xf32>, vector<64x1152xf32> -> vector<64x1152xf32>
    %cst_3 = arith.constant 0.000000e+00 : f32
    %3 = vector.broadcast %cst_3 : f32 to vector<64x1152xf32>
    %4 = arith.subf %3, %2 : vector<64x1152xf32>
    %5 = math.exp %4 : vector<64x1152xf32>
    %cst_4 = arith.constant 1.000000e+00 : f32
    %6 = vector.broadcast %cst_4 : f32 to vector<64x1152xf32>
    %7 = arith.addf %6, %5 : vector<64x1152xf32>
    %cst_5 = arith.constant 1.000000e+00 : f32
    %8 = vector.broadcast %cst_5 : f32 to vector<64x1152xf32>
    %9 = arith.divf %8, %7 : vector<64x1152xf32>
    %c0_6 = arith.constant 0 : index
    %c0_7 = arith.constant 0 : index
    %10 = vector.load %arg3[%c0_6, %c0_7] : memref<64x1152xf32, #tpu.memory_space<vmem>>, vector<64x1152xf32>
    tpu.vector_store %arg3[%c0_6, %c0_7], %9 {strides = array<i32>} : memref<64x1152xf32, #tpu.memory_space<vmem>>, vector<64x1152xf32>,
    return
  }
  func.func @transform_0(%arg0: i32) -> (i32, i32) {
    %c0_i32 = arith.constant 0 : i32
    %c0_i32_0 = arith.constant 0 : i32
    %c0_i32_1 = arith.constant 0 : i32
    return %c0_i32, %c0_i32_0 : i32, i32
  }
  func.func @transform_1(%arg0: i32) -> (i32, i32) {
    %c0_i32 = arith.constant 0 : i32
    %c0_i32_0 = arith.constant 0 : i32
    return %c0_i32, %arg0 : i32, i32
  }
  func.func @transform_2(%arg0: i32) -> (i32, i32) {
    %c0_i32 = arith.constant 0 : i32
    %c0_i32_0 = arith.constant 0 : i32
    return %c0_i32, %arg0 : i32, i32
  }
}

</mosaic_0001>

<bundles_post_ra>
// kernel: squeeze.48
= control target key start
LH: loop header
LB: loop body
LE: loop exit
PB: predicated region body
PF: predicated region fallthrough
CT: control target
= control target key end

     0   :  { %vm2636_vm0 = vcmask 7168   ;;  %vm2638_vm1 = vcmask 23552   ;;  %s1786_s14 = smov 127   ;;  %vm2637_vm2 = vcmask 15360   ;;  %s1787_s19 = smov 125   ;;  %vm2640_vm3 = vcmask 39936   ;;  %s2634_s0 = inlined_call_operand.vmem [shape: f32[1,1,143,31], index: 0, kind: input, shape index: {}]   ;;  %s2635_s1 = inlined_call_operand.vmem [shape: f32[1,1,4433], index: 1, kind: output, shape index: {}]  }
   0x1   :  { %v1451_v0 = vld [vmem:[%s2634_s0 + $0x21] sm:$0x1]   ;;  %v1455_v3 = vld [vmem:[%s2634_s0 + $0x63] sm:$0x1]   ;;  %v1453_v6 = vld [vmem:[%s2634_s0 + $0x42] sm:$0x1]  }
   0x2   :  { %v1452_v1 = vld [vmem:[%s2634_s0 + $0x21] sm:$0x1]   ;;  %v1456_v4 = vld [vmem:[%s2634_s0 + $0x63] sm:$0x1]   ;;  %v1454_v7 = vld [vmem:[%s2634_s0 + $0x42] sm:$0x1]  }
   0x3   :  { %v14_v2 = vsel %vm2636_vm0, %v1452_v1, %v1451_v0  ;;  %v42_v5 = vsel %vm2638_vm1, %v1456_v4, %v1455_v3  ;;  %v28_v8 = vsel %vm2637_vm2, %v1454_v7, %v1453_v6  ;;  %v1461_v9 = vld [vmem:[%s2634_s0 + $0x25] sm:$0x1]   ;;  %vm5_vm4 = vcmask 1041409   ;;  %v1457_v11 = vld [vmem:[%s2634_s0 + $0x84] sm:$0x1]   ;;  %s1788_s3 = smov 126  }
   0x4   :  { %15 = vrot.lane.b32.xlu0 %v14_v2, %s1786_s14  ;;  %43 = vrot.lane.b32.xlu1 %v42_v5, %s1787_s19  ;;  %v1462_v10 = vld [vmem:[%s2634_s0 + $0x25] sm:$0x1]   ;;  %v1458_v12 = vld [vmem:[%s2634_s0 + $0x3] sm:$0x2]   ;;  %vm2639_vm5 = vcmask 31744   ;;  %vm2641_vm6 = vcmask 48128  }
   0x5   :  { %v56_v13 = vsel %vm5_vm4, %v1458_v12, %v1457_v11  ;;  %v1459_v14 = vld [vmem:[%s2634_s0 + $0x4] sm:$0x1]   ;;  %v77_v17 = vsel %vm2640_vm3, %v1462_v10, %v1461_v9  ;;  %v1463_v19 = vld [vmem:[%s2634_s0 + $0x46] sm:$0x1]   ;;  %s1789_s8 = smov 124   ;;  %vm2642_vm7 = vcmask 56320  }
   0x6   :  { %v1460_v15 = vld [vmem:[%s2634_s0 + $0x83] sm:$0x2]   ;;  %v1464_v20 = vld [vmem:[%s2634_s0 + $0x46] sm:$0x1]   ;;  %v1465_v21 = vld [vmem:[%s2634_s0 + $0x67] sm:$0x1]  }
   0x7   :  { %v62_v16 = vsel %vm5_vm4, %v1460_v15, %v1459_v14  ;;  %v1466_v22 = vld [vmem:[%s2634_s0 + $0x67] sm:$0x1]   ;;  %v91_v23 = vsel %vm2641_vm6, %v1464_v20, %v1463_v19  ;;  %v1467_v24 = vld [vmem:[%s2634_s0 + $0x88] sm:$0x1]   ;;  %s1790_s19 = smov 123   ;;  %vm2643_vm8 = vcmask 64512  }
   0x8   :  { %29 = vrot.lane.b32.xlu0 %v28_v8, %s1788_s3  ;;  %v64_v18 = vsel %vm2639_vm5, %v62_v16, %v56_v13  ;;  %v1468_v25 = vld [vmem:[%s2634_s0 + $0x7] sm:$0x2]   ;;  %v105_v29 = vsel %vm2642_vm7, %v1466_v22, %v1465_v21  ;;  %s1791_s22 = smov 122   ;;  %v1471_v31 = vld [vmem:[%s2634_s0 + $0x29] sm:$0x1]   ;;  %vm2644_vm9 = vcmask 72704  }
   0x9   :  { %65 = vrot.lane.b32.xlu1 %v64_v18, %s1789_s8  ;;  %v1469_v26 = vld [vmem:[%s2634_s0 + $0x88] sm:$0x1]   ;;  %v119_v27 = vsel %vm5_vm4, %v1468_v25, %v1467_v24  ;;  %v1472_v32 = vld [vmem:[%s2634_s0 + $0x29] sm:$0x1]   ;;  %v1473_v34 = vld [vmem:[%s2634_s0 + $0x4a] sm:$0x1]  }
   0xa   :  { %v1470_v28 = vld [vmem:[%s2634_s0 + $0x7] sm:$0x2]   ;;  %s1792_s29 = smov 121   ;;  %v1474_v35 = vld [vmem:[%s2634_s0 + $0x4a] sm:$0x1]   ;;  %vm2645_vm10 = vcmask 80896   ;;  %v141_v37 = vsel %vm2644_vm9, %v1472_v32, %v1471_v31 }
   0xb   :  { %v125_v30 = vsel %vm5_vm4, %v1470_v28, %v1469_v26  ;;  %v1477_v36 = vld [vmem:[%s2634_s0 + $0x8c] sm:$0x1]   ;;  %s1793_s11 = smov 120   ;;  %v1475_v41 = vld [vmem:[%s2634_s0 + $0x6b] sm:$0x1]   ;;  %vm2646_vm11 = vcmask 89088   ;;  %v155_v43 = vsel %vm2645_vm10, %v1474_v35, %v1473_v34 }
   0xc   :  { %78 = vrot.lane.b32.xlu0 %v77_v17, %s1790_s19  ;;  %v127_v33 = vsel %vm2643_vm8, %v125_v30, %v119_v27  ;;  %v1478_v38 = vld [vmem:[%s2634_s0 + $0xb] sm:$0x2]   ;;  %v1476_v42 = vld [vmem:[%s2634_s0 + $0x6b] sm:$0x1]   ;;  %s1794_s16 = smov 119   ;;  %vm2647_vm12 = vcmask 97280  }
   0xd   :  { %92 = vrot.lane.b32.xlu1 %v91_v23, %s1791_s22  ;;  %v1479_v39 = vld [vmem:[%s2634_s0 + $0x8c] sm:$0x1]   ;;  %v183_v44 = vsel %vm5_vm4, %v1478_v38, %v1477_v36  ;;  %v169_v46 = vsel %vm2646_vm11, %v1476_v42, %v1475_v41  ;;  %s1795_s17 = smov 118   ;;  %v1481_v47 = vld [vmem:[%s2634_s0 + $0x2d] sm:$0x1]   ;;  %vm2648_vm13 = vcmask 105472  }
   0xe   :  { %v1480_v40 = vld [vmem:[%s2634_s0 + $0xb] sm:$0x2]   ;;  %v1482_v48 = vld [vmem:[%s2634_s0 + $0x2d] sm:$0x1]   ;;  %s1796_s22 = smov 117   ;;  %vm2649_vm14 = vcmask 113664  }
   0xf   :  { %v189_v45 = vsel %vm5_vm4, %v1480_v40, %v1479_v39  ;;  %v1483_v50 = vld [vmem:[%s2634_s0 + $0x4e] sm:$0x1]   ;;  %v205_v52 = vsel %vm2648_vm13, %v1482_v48, %v1481_v47  ;;  %s1797_s27 = smov 116   ;;  %v1485_v53 = vld [vmem:[%s2634_s0 + $0x6f] sm:$0x1]   ;;  %vm2650_vm15 = vcmask 121856  }
  0x10   :  { %106 = vrot.lane.b32.xlu0 %v105_v29, %s1792_s29  ;;  %v191_v49 = vsel %vm2647_vm12, %v189_v45, %v183_v44  ;;  %v1484_v51 = vld [vmem:[%s2634_s0 + $0x4e] sm:$0x1]   ;;  %v1486_v54 = vld [vmem:[%s2634_s0 + $0x6f] sm:$0x1]   ;;  %s1798_s3 = smov 115   ;;  %vm2651_vm0 = vcmask 130048  }
  0x11   :  { %128 = vrot.lane.b32.xlu1 %v127_v33, %s1793_s11  ;;  %v219_v55 = vsel %vm2649_vm14, %v1484_v51, %v1483_v50  ;;  %v1487_v56 = vld [vmem:[%s2634_s0 + $0x10] sm:$0x1]   ;;  %v233_v58 = vsel %vm2650_vm15, %v1486_v54, %v1485_v53  ;;  %s1799_s8 = smov 114   ;;  %vm2652_vm2 = vcmask 138240   ;;  %v1489_v59 = vld [vmem:[%s2634_s0 + $0x31] sm:$0x1]  }
  0x12   :  { %v1488_v57 = vld [vmem:[%s2634_s0 + $0x10] sm:$0x1]   ;;  %v1490_v60 = vld [vmem:[%s2634_s0 + $0x31] sm:$0x1]   ;;  %s1800_s13 = smov 113   ;;  %vm208_vm1 = vcmask 146432  }
  0x13   :  { %v247_v61 = vsel %vm2651_vm0, %v1488_v57, %v1487_v56  ;;  %v1491_v62 = vld [vmem:[%s2634_s0 + $0x52] sm:$0x1]   ;;  %v261_v0 = vsel %vm2652_vm2, %v1490_v60, %v1489_v59  ;;  %s1801_s18 = smov 112   ;;  %vm194_vm5 = vcmask 154624   ;;  %v1493_v1 = vld [vmem:[%s2634_s0 + $0x73] sm:$0x1]  }
  0x14   :  { %142 = vrot.lane.b32.xlu0 %v141_v37, %s1794_s16  ;;  %v1492_v63 = vld [vmem:[%s2634_s0 + $0x52] sm:$0x1]   ;;  %v1494_v2 = vld [vmem:[%s2634_s0 + $0x73] sm:$0x1]   ;;  %s1802_s23 = smov 111   ;;  %vm172_vm3 = vcmask 162816  }
  0x15   :  { %156 = vrot.lane.b32.xlu1 %v155_v43, %s1795_s17  ;;  %v275_v3 = vsel %vm208_vm1, %v1492_v63, %v1491_v62  ;;  %v1495_v4 = vld [vmem:[%s2634_s0 + $0x14] sm:$0x1]   ;;  %v289_v6 = vsel %vm194_vm5, %v1494_v2, %v1493_v1  ;;  %s1803_s28 = smov 110   ;;  %vm158_vm6 = vcmask 171008   ;;  %v1497_v7 = vld [vmem:[%s2634_s0 + $0x35] sm:$0x1]  }
  0x16   :  { %v1496_v5 = vld [vmem:[%s2634_s0 + $0x14] sm:$0x1]   ;;  %v1498_v8 = vld [vmem:[%s2634_s0 + $0x35] sm:$0x1]   ;;  %s1804_s4 = smov 109   ;;  %vm144_vm7 = vcmask 179200  }
  0x17   :  { %v303_v9 = vsel %vm172_vm3, %v1496_v5, %v1495_v4  ;;  %v1499_v10 = vld [vmem:[%s2634_s0 + $0x56] sm:$0x1]   ;;  %v317_v12 = vsel %vm158_vm6, %v1498_v8, %v1497_v7  ;;  %s1805_s9 = smov 108   ;;  %vm130_vm8 = vcmask 187392   ;;  %v1501_v13 = vld [vmem:[%s2634_s0 + $0x77] sm:$0x1]  }
  0x18   :  { %170 = vrot.lane.b32.xlu0 %v169_v46, %s1796_s22  ;;  %v1500_v11 = vld [vmem:[%s2634_s0 + $0x56] sm:$0x1]   ;;  %v1502_v14 = vld [vmem:[%s2634_s0 + $0x77] sm:$0x1]   ;;  %s1806_s14 = smov 107   ;;  %vm108_vm9 = vcmask 195584  }
  0x19   :  { %192 = vrot.lane.b32.xlu1 %v191_v49, %s1797_s27  ;;  %v331_v15 = vsel %vm144_vm7, %v1500_v11, %v1499_v10  ;;  %v1503_v16 = vld [vmem:[%s2634_s0 + $0x18] sm:$0x1]   ;;  %v345_v18 = vsel %vm130_vm8, %v1502_v14, %v1501_v13  ;;  %s1807_s19 = smov 106   ;;  %vm94_vm10 = vcmask 203776   ;;  %v1505_v19 = vld [vmem:[%s2634_s0 + $0x39] sm:$0x1]  }
  0x1a   :  { %v1504_v17 = vld [vmem:[%s2634_s0 + $0x18] sm:$0x1]   ;;  %v1506_v20 = vld [vmem:[%s2634_s0 + $0x39] sm:$0x1]   ;;  %s1808_s24 = smov 105   ;;  %vm80_vm11 = vcmask 211968  }
  0x1b   :  { %v359_v21 = vsel %vm108_vm9, %v1504_v17, %v1503_v16  ;;  %v1507_v22 = vld [vmem:[%s2634_s0 + $0x5a] sm:$0x1]   ;;  %v373_v24 = vsel %vm94_vm10, %v1506_v20, %v1505_v19  ;;  %s1809_s29 = smov 104   ;;  %vm67_vm12 = vcmask 220160   ;;  %v1509_v25 = vld [vmem:[%s2634_s0 + $0x7b] sm:$0x1]  }
  0x1c   :  { %206 = vrot.lane.b32.xlu0 %v205_v52, %s1798_s3  ;;  %v1508_v23 = vld [vmem:[%s2634_s0 + $0x5a] sm:$0x1]   ;;  %v1510_v26 = vld [vmem:[%s2634_s0 + $0x7b] sm:$0x1]   ;;  %vm45_vm13 = vcmask 228352   ;;  %vm7_vm14 = vcmask 252928  }
  0x1d   :  { %220 = vrot.lane.b32.xlu1 %v219_v55, %s1799_s8  ;;  %v387_v27 = vsel %vm80_vm11, %v1508_v23, %v1507_v22  ;;  %v2_v28 = vld [vmem:[%s2634_s0] sm:$0x1]   ;;  %s1810_s7 = smov 103   ;;  %v1511_v29 = vld [vmem:[%s2634_s0 + $0x1c] sm:$0x1]   ;;  %v401_v32 = vsel %vm67_vm12, %v1510_v26, %v1509_v25  ;;  %vm31_vm15 = vcmask 236544  }
  0x1e   :  { %v1512_v30 = vld [vmem:[%s2634_s0 + $0x1c] sm:$0x1]   ;;  %v1450_v31 = vld [vmem:[%s2634_s0 + $0x7f] sm:$0x2]   ;;  %v1513_v34 = vld [vmem:[%s2634_s0 + $0x3d] sm:$0x1]  }
  0x1f   :  { %v6_v33 = vsel %vm5_vm4, %v1450_v31, %v2_v28  ;;  %v1514_v35 = vld [vmem:[%s2634_s0 + $0x3d] sm:$0x1]   ;;  %v415_v36 = vsel %vm45_vm13, %v1512_v30, %v1511_v29  ;;  %v1515_v37 = vld [vmem:[%s2634_s0 + $0x5e] sm:$0x1]   ;;  %s1814_s25 = smov 99   ;;  %s1816_s2 = smov 97  }
  0x20   :  { %234 = vrot.lane.b32.xlu0 %v233_v58, %s1800_s13  ;;  %8 = vst.msk [vmem:[#allocation0] ss:$248 sm:$0x3] %vm7_vm14, %v6_v33   ;;  %vm17_vm14 = vcmask 244736   ;;  %v1516_v38 = vld [vmem:[%s2634_s0 + $0x5e] sm:$0x1]   ;;  %v429_v39 = vsel %vm31_vm15, %v1514_v35, %v1513_v34 }
  0x21   :  { %248 = vrot.lane.b32.xlu1 %v247_v61, %s1801_s18  ;;  %v443_v40 = vsel %vm17_vm14, %v1516_v38, %v1515_v37  ;;  %v1517_v41 = vld [vmem:[%s2634_s0 + $0x7f] sm:$0x1]   ;;  %v1518_v42 = vld [vmem:[%s2634_s0 + $0x20] sm:$0x1]   ;;  %v1519_v43 = vld [vmem:[%s2634_s0 + $0x41] sm:$0x1]  }
  0x22   :  { %s1817_s5 = smov 96   ;;  %v1521_v44 = vld [vmem:[%s2634_s0 + $0x3] sm:$0x1]   ;;  %v1520_v46 = vld [vmem:[%s2634_s0 + $0x62] sm:$0x1]   ;;  %s1818_s12 = smov 95  }
  0x23   :  { %v1522_v45 = vld [vmem:[%s2634_s0 + $0x82] sm:$0x2]   ;;  %s1819_s13 = smov 94   ;;  %v1523_v48 = vld [vmem:[%s2634_s0 + $0x24] sm:$0x1]   ;;  %s1820_s16 = smov 93  }
  0x24   :  { %262 = vrot.lane.b32.xlu0 %v261_v0, %s1802_s23  ;;  %v485_v47 = vsel %vm5_vm4, %v1522_v45, %v1521_v44  ;;  %v1524_v49 = vld [vmem:[%s2634_s0 + $0x45] sm:$0x1]   ;;  %v1526_v50 = vld [vmem:[%s2634_s0 + $0x87] sm:$0x1]   ;;  %v1525_v52 = vld [vmem:[%s2634_s0 + $0x66] sm:$0x1]  }
  0x25   :  { %276 = vrot.lane.b32.xlu1 %v275_v3, %s1803_s28  ;;  %s1815_s28 = smov 98   ;;  %v1527_v51 = vld [vmem:[%s2634_s0 + $0x6] sm:$0x2]   ;;  %s1822_s26 = smov 91   ;;  %v1528_v54 = vld [vmem:[%s2634_s0 + $0x28] sm:$0x1]  }
  0x26   :  { %v516_v53 = vsel %vm5_vm4, %v1527_v51, %v1526_v50  ;;  %s1823_s27 = smov 90   ;;  %s1824_s30 = smov 89   ;;  %v1529_v55 = vld [vmem:[%s2634_s0 + $0x49] sm:$0x1]   ;;  %v1531_v56 = vld [vmem:[%s2634_s0 + $0x8b] sm:$0x1]  }
  0x27   :  { %v1532_v57 = vld [vmem:[%s2634_s0 + $0xa] sm:$0x2]   ;;  %v1530_v58 = vld [vmem:[%s2634_s0 + $0x6a] sm:$0x1]   ;;  %s1826_s11 = smov 87   ;;  %s1828_s15 = smov 85  }
  0x28   :  { %290 = vrot.lane.b32.xlu0 %v289_v6, %s1804_s4  ;;  %s1825_s4 = smov 88   ;;  %v548_v59 = vsel %vm5_vm4, %v1532_v57, %v1531_v56  ;;  %v1533_v60 = vld [vmem:[%s2634_s0 + $0x2c] sm:$0x1]   ;;  %v1534_v61 = vld [vmem:[%s2634_s0 + $0x4d] sm:$0x1]   ;;  %s1829_s18 = smov 84  }
  0x29   :  { %304 = vrot.lane.b32.xlu1 %v303_v9, %s1805_s9  ;;  %v1535_v62 = vld [vmem:[%s2634_s0 + $0x6e] sm:$0x1]   ;;  %s1830_s21 = smov 83   ;;  %v1536_v63 = vld [vmem:[%s2634_s0 + $0xf] sm:$0x1]   ;;  %s1836_s10 = smov 77  }
  0x2a   :  { %v1537_v0 = vld [vmem:[%s2634_s0 + $0x30] sm:$0x1]   ;;  %v1538_v1 = vld [vmem:[%s2634_s0 + $0x51] sm:$0x1]   ;;  %v1539_v2 = vld [vmem:[%s2634_s0 + $0x72] sm:$0x1]  }
  0x2b   :  { %v1540_v3 = vld [vmem:[%s2634_s0 + $0x13] sm:$0x1]   ;;  %v1541_v4 = vld [vmem:[%s2634_s0 + $0x34] sm:$0x1]   ;;  %v1542_v5 = vld [vmem:[%s2634_s0 + $0x55] sm:$0x1]  }
  0x2c   :  { %318 = vrot.lane.b32.xlu0 %v317_v12, %s1806_s14  ;;  %s1811_s14 = smov 102   ;;  %v1543_v6 = vld [vmem:[%s2634_s0 + $0x76] sm:$0x1]   ;;  %v1544_v7 = vld [vmem:[%s2634_s0 + $0x17] sm:$0x1]   ;;  %s1840_s22 = smov 73  }
  0x2d   :  { %332 = vrot.lane.b32.xlu1 %v331_v15, %s1807_s19  ;;  %s1812_s19 = smov 101   ;;  %v1545_v8 = vld [vmem:[%s2634_s0 + $0x38] sm:$0x1]   ;;  %v1546_v9 = vld [vmem:[%s2634_s0 + $0x59] sm:$0x1]   ;;  %vm20_vm0 = vcmask 1048568  }
  0x2e   :  { %v1547_v10 = vld [vmem:[%s2634_s0 + $0x7a] sm:$0x1]   ;;  %v1548_v11 = vld [vmem:[%s2634_s0 + $0x1b] sm:$0x1]   ;;  %vm48_vm2 = vcmask 1048552   ;;  %s1845_s8 = smov 68  }
  0x2f   :  { %v1549_v14 = vld [vmem:[%s2634_s0 + $0x3c] sm:$0x1]   ;;  %v1550_v15 = vld [vmem:[%s2634_s0 + $0x5d] sm:$0x1]   ;;  %v1551_v17 = vld [vmem:[%s2634_s0 + $0x7e] sm:$0x1]  }
  0x30   :  { %346 = vrot.lane.b32.xlu0 %v345_v18, %s1808_s24  ;;  %s1813_s24 = smov 100   ;;  %v1552_v19 = vld [vmem:[%s2634_s0 + $0x1f] sm:$0x1]   ;;  %s1848_s17 = smov 65   ;;  %v1555_v23 = vld [vmem:[%s2634_s0 + $0x2] sm:$0x1]  }
  0x31   :  { %360 = vrot.lane.b32.xlu1 %v359_v21, %s1809_s29  ;;  %v1553_v21 = vld [vmem:[%s2634_s0 + $0x40] sm:$0x1]   ;;  %v1554_v25 = vld [vmem:[%s2634_s0 + $0x61] sm:$0x1]   ;;  %v1557_v29 = vld [vmem:[%s2634_s0 + $0x23] sm:$0x1]  }
  0x32   :  { %v1558_v31 = vld [vmem:[%s2634_s0 + $0x44] sm:$0x1]   ;;  %v1560_v33 = vld [vmem:[%s2634_s0 + $0x86] sm:$0x1]   ;;  %v1559_v35 = vld [vmem:[%s2634_s0 + $0x65] sm:$0x1]  }
  0x33   :  { %v1561_v34 = vld [vmem:[%s2634_s0 + $0x5] sm:$0x2]   ;;  %s1853_s9 = smov 60   ;;  %v1566_v44 = vld [vmem:[%s2634_s0 + $0x9] sm:$0x2]   ;;  %s1857_s23 = smov 56  }
  0x34   :  { %374 = vrot.lane.b32.xlu0 %v373_v24, %s1810_s7  ;;  %s1835_s7 = smov 78   ;;  %v1556_v24 = vld [vmem:[%s2634_s0 + $0x81] sm:$0x2]   ;;  %v744_v37 = vsel %vm5_vm4, %v1561_v34, %v1560_v33  ;;  %v1564_v45 = vld [vmem:[%s2634_s0 + $0x69] sm:$0x1]   ;;  %s1895_s29 = smov 18  }
  0x35   :  { %388 = vrot.lane.b32.xlu1 %v387_v27, %s1811_s14  ;;  %s1847_s14 = smov 66   ;;  %v713_v27 = vsel %vm5_vm4, %v1556_v24, %v1555_v23  ;;  %v1568_v51 = vld [vmem:[%s2634_s0 + $0x4c] sm:$0x1]   ;;  %v1586_v23 = vld [vmem:[%s2634_s0 + $0x7d] sm:$0x1]   ;;  %s1896_s3 = smov 17  }
  0x36   :  { %s1897_s6 = smov 16  }
  0x38   :  { %402 = vrot.lane.b32.xlu0 %v401_v32, %s1812_s19  ;;  %s1821_s19 = smov 92  }
  0x39   :  { %416 = vrot.lane.b32.xlu1 %v415_v36, %s1813_s24  ;;  %s1831_s24 = smov 82  }
  0x3c   :  { %430 = vrot.lane.b32.xlu0 %v429_v39, %s1814_s25  ;;  %s1841_s25 = smov 72   ;;  %v1562_v39 = vld [vmem:[%s2634_s0 + $0x27] sm:$0x1]  }
  0x3d   :  { %444 = vrot.lane.b32.xlu1 %v443_v40, %s1815_s28  ;;  %s1842_s28 = smov 71  }
  0x40   :  { %454 = vrot.lane.b32.xlu0 %v1517_v41, %s1816_s2  ;;  %s1843_s2 = smov 70   ;;  %v1563_v41 = vld [vmem:[%s2634_s0 + $0x48] sm:$0x1]  }
  0x41   :  { %461 = vrot.lane.b32.xlu1 %v1518_v42, %s1817_s5  ;;  %s1844_s5 = smov 69  }
  0x44   :  { %468 = vrot.lane.b32.xlu0 %v1519_v43, %s1818_s12  ;;  %s1827_s12 = smov 86   ;;  %v1565_v43 = vld [vmem:[%s2634_s0 + $0x8a] sm:$0x1]  }
  0x45   :  { %475 = vrot.lane.b32.xlu1 %v1520_v46, %s1819_s13  ;;  %s1837_s13 = smov 76  }
  0x48   :  { %486 = vrot.lane.b32.xlu0 %v485_v47, %s1820_s16  ;;  %s1838_s16 = smov 75   ;;  %v776_v47 = vsel %vm5_vm4, %v1566_v44, %v1565_v43 }
  0x49   :  { %492 = vrot.lane.b32.xlu1 %v1523_v48, %s1821_s19  ;;  %s1839_s19 = smov 74  }
  0x4c   :  { %499 = vrot.lane.b32.xlu0 %v1524_v49, %s1822_s26  ;;  %v1567_v49 = vld [vmem:[%s2634_s0 + $0x2b] sm:$0x1]   ;;  %s1894_s26 = smov 19  }
  0x4d   :  { %506 = vrot.lane.b32.xlu1 %v1525_v52, %s1823_s27  ;;  %s1832_s27 = smov 81  }
  0x50   :  { %517 = vrot.lane.b32.xlu0 %v516_v53, %s1824_s30  ;;  %s1833_s30 = smov 80   ;;  %v1570_v53 = vld [vmem:[%s2634_s0 + $0x8e] sm:$0x1]  }
  0x51   :  { %524 = vrot.lane.b32.xlu1 %v1528_v54, %s1825_s4  ;;  %s1834_s4 = smov 79   ;;  %v1571_v54 = vld [vmem:[%s2634_s0 + $0xd] sm:$0x2]  }
  0x52   :  { %v808_v57 = vsel %vm5_vm4, %v1571_v54, %v1570_v53 }
  0x54   :  { %531 = vrot.lane.b32.xlu0 %v1529_v55, %s1826_s11  ;;  %s1846_s11 = smov 67   ;;  %v1569_v55 = vld [vmem:[%s2634_s0 + $0x6d] sm:$0x1]  }
  0x55   :  { %538 = vrot.lane.b32.xlu1 %v1530_v58, %s1827_s12  ;;  %s1863_s12 = smov 50  }
  0x58   :  { %549 = vrot.lane.b32.xlu0 %v548_v59, %s1828_s15  ;;  %v1572_v59 = vld [vmem:[%s2634_s0 + $0x2f] sm:$0x1]   ;;  %s1864_s15 = smov 49  }
  0x59   :  { %556 = vrot.lane.b32.xlu1 %v1533_v60, %s1829_s18  ;;  %s1865_s18 = smov 48  }
  0x5c   :  { %563 = vrot.lane.b32.xlu0 %v1534_v61, %s1830_s21  ;;  %v1573_v61 = vld [vmem:[%s2634_s0 + $0x50] sm:$0x1]   ;;  %s1866_s21 = smov 47  }
  0x5d   :  { %570 = vrot.lane.b32.xlu1 %v1535_v62, %s1831_s24  ;;  %s1849_s24 = smov 64  }
  0x60   :  { %577 = vrot.lane.b32.xlu0 %v1536_v63, %s1832_s27  ;;  %s1859_s27 = smov 54   ;;  %v1574_v63 = vld [vmem:[%s2634_s0 + $0x71] sm:$0x1]  }
  0x61   :  { %584 = vrot.lane.b32.xlu1 %v1537_v0, %s1833_s30  ;;  %s1860_s30 = smov 53  }
  0x64   :  { %591 = vrot.lane.b32.xlu0 %v1538_v1, %s1834_s4  ;;  %v1575_v1 = vld [vmem:[%s2634_s0 + $0x12] sm:$0x1]   ;;  %s1870_s4 = smov 43  }
  0x65   :  { %598 = vrot.lane.b32.xlu1 %v1539_v2, %s1835_s7  ;;  %s1871_s7 = smov 42  }
  0x68   :  { %605 = vrot.lane.b32.xlu0 %v1540_v3, %s1836_s10  ;;  %s1854_s10 = smov 59   ;;  %v1576_v3 = vld [vmem:[%s2634_s0 + $0x33] sm:$0x1]  }
  0x69   :  { %612 = vrot.lane.b32.xlu1 %v1541_v4, %s1837_s13  ;;  %s1855_s13 = smov 58  }
  0x6c   :  { %619 = vrot.lane.b32.xlu0 %v1542_v5, %s1838_s16  ;;  %s1856_s16 = smov 57   ;;  %v1577_v5 = vld [vmem:[%s2634_s0 + $0x54] sm:$0x1]  }
  0x6d   :  { %626 = vrot.lane.b32.xlu1 %v1543_v6, %s1839_s19  ;;  %s1875_s19 = smov 38  }
  0x70   :  { %633 = vrot.lane.b32.xlu0 %v1544_v7, %s1840_s22  ;;  %v1578_v7 = vld [vmem:[%s2634_s0 + $0x75] sm:$0x1]   ;;  %s1876_s22 = smov 37  }
  0x71   :  { %640 = vrot.lane.b32.xlu1 %v1545_v8, %s1841_s25  ;;  %s1850_s25 = smov 63  }
  0x74   :  { %647 = vrot.lane.b32.xlu0 %v1546_v9, %s1842_s28  ;;  %s1851_s28 = smov 62   ;;  %v1579_v9 = vld [vmem:[%s2634_s0 + $0x16] sm:$0x1]  }
  0x75   :  { %654 = vrot.lane.b32.xlu1 %v1547_v10, %s1843_s2  ;;  %s1852_s2 = smov 61  }
  0x76   :  { %v16_v12 = vpop.permute.xlu0 %15   ;;  %v44_v13 = vpop.permute.xlu1 %43  }
  0x77   :  { %19 = vst.msk [vmem:[#allocation0 + $0x40] sm:$0x1] %vm17_vm14, %v16_v12   ;;  %vm253_vm14 = vcmask 1048448  }
  0x78   :  { %22 = vst.msk [vmem:[#allocation0 + $0x38] sm:$0x1] %vm20_vm0, %v16_v12   ;;  %661 = vrot.lane.b32.xlu0 %v1548_v11, %s1844_s5  ;;  %vm34_vm0 = vcmask 1048560   ;;  %v1580_v11 = vld [vmem:[%s2634_s0 + $0x37] sm:$0x1]  }
  0x79   :  { %47 = vst.msk [vmem:[#allocation0 + $0xc0] sm:$0x1] %vm45_vm13, %v44_v13   ;;  %668 = vrot.lane.b32.xlu1 %v1549_v14, %s1845_s8  ;;  %vm83_vm13 = vcmask 1048536   ;;  %s1861_s8 = smov 52  }
  0x7a   :  { %50 = vst.msk [vmem:[#allocation0 + $0xb8] sm:$0x1] %vm48_vm2, %v44_v13   ;;  %v30_v16 = vpop.permute.xlu0 %29   ;;  %vm70_vm2 = vcmask 1048544   ;;  %v1581_v13 = vld [vmem:[%s2634_s0 + $0x58] sm:$0x1]  }
  0x7b   :  { %33 = vst.msk [vmem:[#allocation0 + $0x80] sm:$0x1] %vm31_vm15, %v30_v16   ;;  %v66_v18 = vpop.permute.xlu1 %65   ;;  %vm2653_vm15 = vcmask 138240  }
  0x7c   :  { %36 = vst.msk [vmem:[#allocation0 + $0x78] sm:$0x1] %vm34_vm0, %v30_v16   ;;  %675 = vrot.lane.b32.xlu0 %v1550_v15, %s1846_s11  ;;  %vm2654_vm0 = vcmask 130048   ;;  %v1582_v15 = vld [vmem:[%s2634_s0 + $0x79] sm:$0x1]  }
  0x7d   :  { %69 = vst.msk [vmem:[#allocation0 + $0x100] ss:$-248 sm:$0x3] %vm67_vm12, %v66_v18   ;;  %682 = vrot.lane.b32.xlu1 %v1551_v17, %s1847_s14  ;;  %vm97_vm12 = vcmask 1048528   ;;  %v1583_v17 = vld [vmem:[%s2634_s0 + $0x1a] sm:$0x1]  }
  0x7e   :  { %71 = vst.msk [vmem:[#allocation0] ss:$248 sm:$0x3] %vm70_vm2, %v66_v18   ;;  %v79_v20 = vpop.permute.xlu0 %78   ;;  %vm267_vm2 = vcmask 1048440  }
  0x7f   :  { %82 = vst.msk [vmem:[#allocation0 + $0x48] sm:$0x1] %vm80_vm11, %v79_v20   ;;  %vm111_vm11 = vcmask 1048520   ;;  %v93_v22 = vpop.permute.xlu1 %92  }
  0x80   :  { %85 = vst.msk [vmem:[#allocation0 + $0x40] sm:$0x1] %vm83_vm13, %v79_v20   ;;  %689 = vrot.lane.b32.xlu0 %v1552_v19, %s1848_s17  ;;  %vm2655_vm13 = vcmask 121856   ;;  %v1584_v19 = vld [vmem:[%s2634_s0 + $0x3b] sm:$0x1]  }
  0x81   :  { %96 = vst.msk [vmem:[#allocation0 + $0x88] sm:$0x1] %vm94_vm10, %v93_v22   ;;  %696 = vrot.lane.b32.xlu1 %v1553_v21, %s1849_s24  ;;  %vm133_vm10 = vcmask 1048512   ;;  %s1858_s24 = smov 55   ;;  %v1585_v21 = vld [vmem:[%s2634_s0 + $0x5c] sm:$0x1]  }
  0x82   :  { %99 = vst.msk [vmem:[#allocation0 + $0x80] sm:$0x1] %vm97_vm12, %v93_v22   ;;  %v107_v26 = vpop.permute.xlu0 %106   ;;  %vm281_vm12 = vcmask 1048432  }
  0x83   :  { %110 = vst.msk [vmem:[#allocation0 + $0xc8] sm:$0x1] %vm108_vm9, %v107_v26   ;;  %vm147_vm9 = vcmask 1048504   ;;  %v129_v28 = vpop.permute.xlu1 %128  }
  0x84   :  { %113 = vst.msk [vmem:[#allocation0 + $0xc0] sm:$0x1] %vm111_vm11, %v107_v26   ;;  %703 = vrot.lane.b32.xlu0 %v1554_v25, %s1850_s25  ;;  %vm2656_vm11 = vcmask 113664   ;;  %s1877_s25 = smov 36   ;;  %v1587_v25 = vld [vmem:[%s2634_s0 + $0x1e] sm:$0x1]  }
  0x85   :  { %132 = vst.msk [vmem:[#allocation0 + $0x108] ss:$-248 sm:$0x3] %vm130_vm8, %v129_v28   ;;  %714 = vrot.lane.b32.xlu1 %v713_v27, %s1851_s28  ;;  %vm161_vm8 = vcmask 1048496   ;;  %s1878_s28 = smov 35  }
  0x86   :  { %135 = vst.msk [vmem:[#allocation0 + $0x100] ss:$-248 sm:$0x3] %vm133_vm10, %v129_v28   ;;  %v143_v30 = vpop.permute.xlu0 %142   ;;  %vm295_vm10 = vcmask 1048424   ;;  %v1588_v27 = vld [vmem:[%s2634_s0 + $0x3f] sm:$0x1]  }
  0x87   :  { %146 = vst.msk [vmem:[#allocation0 + $0x50] sm:$0x1] %vm144_vm7, %v143_v30   ;;  %vm175_vm7 = vcmask 1048488   ;;  %v157_v32 = vpop.permute.xlu1 %156  }
  0x88   :  { %149 = vst.msk [vmem:[#allocation0 + $0x48] sm:$0x1] %vm147_vm9, %v143_v30   ;;  %720 = vrot.lane.b32.xlu0 %v1557_v29, %s1852_s2  ;;  %vm2657_vm9 = vcmask 105472   ;;  %s1879_s2 = smov 34   ;;  %v1590_v29 = vld [vmem:[%s2634_s0 + $0x1] sm:$0x1]  }
  0x89   :  { %160 = vst.msk [vmem:[#allocation0 + $0x90] sm:$0x1] %vm158_vm6, %v157_v32   ;;  %727 = vrot.lane.b32.xlu1 %v1558_v31, %s1853_s9  ;;  %vm197_vm6 = vcmask 1048480   ;;  %s1862_s9 = smov 51   ;;  %v1591_v30 = vld [vmem:[%s2634_s0 + $0x80] sm:$0x2]  }
  0x8a   :  { %163 = vst.msk [vmem:[#allocation0 + $0x88] sm:$0x1] %vm161_vm8, %v157_v32   ;;  %v171_v36 = vpop.permute.xlu0 %170   ;;  %vm309_vm8 = vcmask 1048416   ;;  %v1589_v31 = vld [vmem:[%s2634_s0 + $0x60] sm:$0x1]   ;;  %v945_v33 = vsel %vm5_vm4, %v1591_v30, %v1590_v29 }
  0x8b   :  { %174 = vst.msk [vmem:[#allocation0 + $0xd0] sm:$0x1] %vm172_vm3, %v171_v36   ;;  %vm211_vm3 = vcmask 1048472   ;;  %v193_v38 = vpop.permute.xlu1 %192   ;;  %v1621_v29 = vld [vmem:[%s2634_s0 + $0x7c] sm:$0x1]  }
  0x8c   :  { %177 = vst.msk [vmem:[#allocation0 + $0xc8] sm:$0x1] %vm175_vm7, %v171_v36   ;;  %734 = vrot.lane.b32.xlu0 %v1559_v35, %s1854_s10  ;;  %vm2658_vm7 = vcmask 97280   ;;  %s1872_s10 = smov 41   ;;  %v1592_v35 = vld [vmem:[%s2634_s0 + $0x22] sm:$0x1]  }
  0x8d   :  { %196 = vst.msk [vmem:[#allocation0 + $0x110] ss:$-248 sm:$0x3] %vm194_vm5, %v193_v38   ;;  %745 = vrot.lane.b32.xlu1 %v744_v37, %s1855_s13  ;;  %vm225_vm5 = vcmask 1048464   ;;  %s1873_s13 = smov 40  }
  0x8e   :  { %199 = vst.msk [vmem:[#allocation0 + $0x108] ss:$-248 sm:$0x3] %vm197_vm6, %v193_v38   ;;  %v207_v40 = vpop.permute.xlu0 %206   ;;  %vm323_vm6 = vcmask 1048408   ;;  %v1593_v37 = vld [vmem:[%s2634_s0 + $0x43] sm:$0x1]  }
  0x8f   :  { %210 = vst.msk [vmem:[#allocation0 + $0x58] sm:$0x1] %vm208_vm1, %v207_v40   ;;  %vm239_vm1 = vcmask 1048456   ;;  %v221_v42 = vpop.permute.xlu1 %220  }
  0x90   :  { %213 = vst.msk [vmem:[#allocation0 + $0x50] sm:$0x1] %vm211_vm3, %v207_v40   ;;  %752 = vrot.lane.b32.xlu0 %v1562_v39, %s1856_s16  ;;  %vm2659_vm3 = vcmask 89088   ;;  %s1874_s16 = smov 39   ;;  %v1595_v39 = vld [vmem:[%s2634_s0 + $0x85] sm:$0x1]  }
  0x91   :  { %224 = vst.msk [vmem:[#allocation0 + $0x98] sm:$0x1] %vm2653_vm15, %v221_v42   ;;  %759 = vrot.lane.b32.xlu1 %v1563_v41, %s1857_s23  ;;  %vm351_vm15 = vcmask 1048392   ;;  %v1596_v40 = vld [vmem:[%s2634_s0 + $0x4] sm:$0x2]   ;;  %s1884_s23 = smov 29  }
  0x92   :  { %227 = vst.msk [vmem:[#allocation0 + $0x90] sm:$0x1] %vm225_vm5, %v221_v42   ;;  %v235_v46 = vpop.permute.xlu0 %234   ;;  %vm337_vm5 = vcmask 1048400   ;;  %v1594_v41 = vld [vmem:[%s2634_s0 + $0x64] sm:$0x1]   ;;  %v976_v43 = vsel %vm5_vm4, %v1596_v40, %v1595_v39 }
  0x93   :  { %238 = vst.msk [vmem:[#allocation0 + $0xd8] sm:$0x1] %vm2654_vm0, %v235_v46   ;;  %v249_v48 = vpop.permute.xlu1 %248   ;;  %vm365_vm0 = vcmask 1048384  }
  0x94   :  { %241 = vst.msk [vmem:[#allocation0 + $0xd0] sm:$0x1] %vm239_vm1, %v235_v46   ;;  %766 = vrot.lane.b32.xlu0 %v1564_v45, %s1858_s24  ;;  %vm2660_vm1 = vcmask 80896   ;;  %s1867_s24 = smov 46   ;;  %v1597_v45 = vld [vmem:[%s2634_s0 + $0x26] sm:$0x1]  }
  0x95   :  { %252 = vst.msk [vmem:[#allocation0 + $0x20] sm:$0x1] %vm2655_vm13, %v249_v48   ;;  %777 = vrot.lane.b32.xlu1 %v776_v47, %s1859_s27  ;;  %vm379_vm13 = vcmask 1048376   ;;  %s1868_s27 = smov 45   ;;  %v1598_v47 = vld [vmem:[%s2634_s0 + $0x47] sm:$0x1]  }
  0x96   :  { %255 = vst.msk [vmem:[#allocation0 + $0x18] sm:$0x1] %vm253_vm14, %v249_v48   ;;  %v263_v50 = vpop.permute.xlu0 %262   ;;  %vm2661_vm14 = vcmask 72704  }
  0x97   :  { %266 = vst.msk [vmem:[#allocation0 + $0x60] sm:$0x1] %vm2656_vm11, %v263_v50   ;;  %v277_v52 = vpop.permute.xlu1 %276   ;;  %vm393_vm11 = vcmask 1048368  }
  0x98   :  { %269 = vst.msk [vmem:[#allocation0 + $0x58] sm:$0x1] %vm267_vm2, %v263_v50   ;;  %784 = vrot.lane.b32.xlu0 %v1567_v49, %s1860_s30  ;;  %vm2662_vm2 = vcmask 64512   ;;  %s1869_s30 = smov 44   ;;  %v1600_v49 = vld [vmem:[%s2634_s0 + $0x89] sm:$0x1]  }
  0x99   :  { %280 = vst.msk [vmem:[#allocation0 + $0xa0] sm:$0x1] %vm2657_vm9, %v277_v52   ;;  %791 = vrot.lane.b32.xlu1 %v1568_v51, %s1861_s8  ;;  %vm407_vm9 = vcmask 1048360   ;;  %v1601_v50 = vld [vmem:[%s2634_s0 + $0x8] sm:$0x2]   ;;  %s1888_s8 = smov 25  }
  0x9a   :  { %283 = vst.msk [vmem:[#allocation0 + $0x98] sm:$0x1] %vm281_vm12, %v277_v52   ;;  %v291_v56 = vpop.permute.xlu0 %290   ;;  %vm2663_vm12 = vcmask 56320   ;;  %v1599_v51 = vld [vmem:[%s2634_s0 + $0x68] sm:$0x1]   ;;  %v1008_v53 = vsel %vm5_vm4, %v1601_v50, %v1600_v49 }
  0x9b   :  { %294 = vst.msk [vmem:[#allocation0 + $0xe0] sm:$0x1] %vm2658_vm7, %v291_v56   ;;  %v305_v58 = vpop.permute.xlu1 %304   ;;  %vm421_vm7 = vcmask 1048352  }
  0x9c   :  { %297 = vst.msk [vmem:[#allocation0 + $0xd8] sm:$0x1] %vm295_vm10, %v291_v56   ;;  %798 = vrot.lane.b32.xlu0 %v1569_v55, %s1862_s9  ;;  %vm2664_vm10 = vcmask 48128   ;;  %s1880_s9 = smov 33   ;;  %v1602_v55 = vld [vmem:[%s2634_s0 + $0x2a] sm:$0x1]  }
  0x9d   :  { %308 = vst.msk [vmem:[#allocation0 + $0x28] sm:$0x1] %vm2659_vm3, %v305_v58   ;;  %809 = vrot.lane.b32.xlu1 %v808_v57, %s1863_s12  ;;  %vm435_vm3 = vcmask 1048344   ;;  %s1890_s12 = smov 23   ;;  %v1603_v57 = vld [vmem:[%s2634_s0 + $0x4b] sm:$0x1]  }
  0x9e   :  { %311 = vst.msk [vmem:[#allocation0 + $0x20] sm:$0x1] %vm309_vm8, %v305_v58   ;;  %v319_v60 = vpop.permute.xlu0 %318   ;;  %vm2665_vm8 = vcmask 39936  }
  0x9f   :  { %322 = vst.msk [vmem:[#allocation0 + $0x68] sm:$0x1] %vm2660_vm1, %v319_v60   ;;  %v333_v62 = vpop.permute.xlu1 %332   ;;  %vm449_vm1 = vcmask 1048336  }
  0xa0   :  { %325 = vst.msk [vmem:[#allocation0 + $0x60] sm:$0x1] %vm323_vm6, %v319_v60   ;;  %816 = vrot.lane.b32.xlu0 %v1572_v59, %s1864_s15  ;;  %vm2666_vm6 = vcmask 31744   ;;  %s1891_s15 = smov 22   ;;  %v1605_v59 = vld [vmem:[%s2634_s0 + $0x8d] sm:$0x1]  }
  0xa1   :  { %336 = vst.msk [vmem:[#allocation0 + $0xa8] sm:$0x1] %vm2661_vm14, %v333_v62   ;;  %823 = vrot.lane.b32.xlu1 %v1573_v61, %s1865_s18  ;;  %vm456_vm14 = vcmask 1048328   ;;  %v1606_v60 = vld [vmem:[%s2634_s0 + $0xc] sm:$0x2]   ;;  %s1901_s18 = smov 12  }
  0xa2   :  { %339 = vst.msk [vmem:[#allocation0 + $0xa0] sm:$0x1] %vm337_vm5, %v333_v62   ;;  %v347_v0 = vpop.permute.xlu0 %346   ;;  %vm2667_vm5 = vcmask 23552   ;;  %v1604_v61 = vld [vmem:[%s2634_s0 + $0x6c] sm:$0x1]  }
  0xa3   :  { %350 = vst.msk [vmem:[#allocation0 + $0xe8] sm:$0x1] %vm2662_vm2, %v347_v0   ;;  %v361_v2 = vpop.permute.xlu1 %360   ;;  %vm463_vm2 = vcmask 1040128  }
  0xa4   :  { %353 = vst.msk [vmem:[#allocation0 + $0xe0] sm:$0x1] %vm351_vm15, %v347_v0   ;;  %830 = vrot.lane.b32.xlu0 %v1574_v63, %s1866_s21  ;;  %vm2668_vm15 = vcmask 15360   ;;  %v1040_v63 = vsel %vm5_vm4, %v1606_v60, %v1605_v59  ;;  %vm614_vm4 = vcmask 876128   ;;  %s1902_s21 = smov 11  }
  0xa5   :  { %364 = vst.msk [vmem:[#allocation0 + $0x30] sm:$0x1] %vm2663_vm12, %v361_v2   ;;  %837 = vrot.lane.b32.xlu1 %v1575_v1, %s1867_s24  ;;  %vm477_vm12 = vcmask 1023728   ;;  %s1885_s24 = smov 28   ;;  %v1607_v1 = vld [vmem:[%s2634_s0 + $0x2e] sm:$0x1]  }
  0xa6   :  { %367 = vst.msk [vmem:[#allocation0 + $0x28] sm:$0x1] %vm365_vm0, %v361_v2   ;;  %v375_v4 = vpop.permute.xlu0 %374   ;;  %vm2669_vm0 = vcmask 7168  }
  0xa7   :  { %378 = vst.msk [vmem:[#allocation0 + $0x70] sm:$0x1] %vm2664_vm10, %v375_v4   ;;  %v389_v6 = vpop.permute.xlu1 %388   ;;  %vm494_vm10 = vcmask 1007328  }
  0xa8   :  { %381 = vst.msk [vmem:[#allocation0 + $0x68] sm:$0x1] %vm379_vm13, %v375_v4   ;;  %844 = vrot.lane.b32.xlu0 %v1576_v3, %s1868_s27  ;;  %vm470_vm13 = vcmask 1031928   ;;  %s1886_s27 = smov 27   ;;  %v1608_v3 = vld [vmem:[%s2634_s0 + $0x4f] sm:$0x1]  }
  0xa9   :  { %392 = vst.msk [vmem:[#allocation0 + $0xb0] sm:$0x1] %vm2665_vm8, %v389_v6   ;;  %851 = vrot.lane.b32.xlu1 %v1577_v5, %s1869_s30  ;;  %vm508_vm8 = vcmask 990928   ;;  %s1887_s30 = smov 26   ;;  %v1609_v5 = vld [vmem:[%s2634_s0 + $0x70] sm:$0x1]  }
  0xaa   :  { %395 = vst.msk [vmem:[#allocation0 + $0xa8] sm:$0x1] %vm393_vm11, %v389_v6   ;;  %v403_v8 = vpop.permute.xlu0 %402   ;;  %vm488_vm11 = vcmask 1015528  }
  0xab   :  { %406 = vst.msk [vmem:[#allocation0 + $0xf0] sm:$0x1] %vm2666_vm6, %v403_v8   ;;  %v417_v10 = vpop.permute.xlu1 %416   ;;  %vm526_vm6 = vcmask 974528  }
  0xac   :  { %409 = vst.msk [vmem:[#allocation0 + $0xe8] sm:$0x1] %vm407_vm9, %v403_v8   ;;  %858 = vrot.lane.b32.xlu0 %v1578_v7, %s1870_s4  ;;  %vm501_vm9 = vcmask 999128   ;;  %v1610_v7 = vld [vmem:[%s2634_s0 + $0x11] sm:$0x1]   ;;  %s1906_s4 = smov 7  }
  0xad   :  { %420 = vst.msk [vmem:[#allocation0 + $0x38] sm:$0x1] %vm2667_vm5, %v417_v10   ;;  %865 = vrot.lane.b32.xlu1 %v1579_v9, %s1871_s7  ;;  %vm540_vm5 = vcmask 958128   ;;  %v1611_v9 = vld [vmem:[%s2634_s0 + $0x32] sm:$0x1]   ;;  %s1907_s7 = smov 6  }
  0xae   :  { %423 = vst.msk [vmem:[#allocation0 + $0x30] sm:$0x1] %vm421_vm7, %v417_v10   ;;  %v431_v12 = vpop.permute.xlu0 %430   ;;  %vm519_vm7 = vcmask 982728  }
  0xaf   :  { %434 = vst.msk [vmem:[#allocation0 + $0x78] sm:$0x1] %vm2668_vm15, %v431_v12   ;;  %v445_v14 = vpop.permute.xlu1 %444   ;;  %vm558_vm15 = vcmask 941728  }
  0xb0   :  { %437 = vst.msk [vmem:[#allocation0 + $0x70] sm:$0x1] %vm435_vm3, %v431_v12   ;;  %872 = vrot.lane.b32.xlu0 %v1580_v11, %s1872_s10  ;;  %s1881_s10 = smov 32   ;;  %vm533_vm3 = vcmask 966328   ;;  %v1612_v11 = vld [vmem:[%s2634_s0 + $0x53] sm:$0x1]  }
  0xb1   :  { %448 = vst.msk [vmem:[#allocation0 + $0xb8] sm:$0x1] %vm2669_vm0, %v445_v14   ;;  %879 = vrot.lane.b32.xlu1 %v1581_v13, %s1873_s13  ;;  %s1882_s13 = smov 31   ;;  %vm572_vm0 = vcmask 925328   ;;  %v1613_v13 = vld [vmem:[%s2634_s0 + $0x74] sm:$0x1]  }
  0xb2   :  { %451 = vst.msk [vmem:[#allocation0 + $0xb0] sm:$0x1] %vm449_vm1, %v445_v14   ;;  %v455_v16 = vpop.permute.xlu0 %454   ;;  %vm551_vm1 = vcmask 949928  }
  0xb3   :  { %458 = vst.msk [vmem:[#allocation0 + $0xf0] sm:$0x1] %vm456_vm14, %v455_v16   ;;  %v462_v18 = vpop.permute.xlu1 %461   ;;  %vm565_vm14 = vcmask 933528  }
  0xb4   :  { %886 = vrot.lane.b32.xlu0 %v1582_v15, %s1874_s16  ;;  %465 = vst.msk [vmem:[#allocation0 + $0x38] sm:$0x1] %vm463_vm2, %v462_v18   ;;  %s1883_s16 = smov 30   ;;  %vm579_vm2 = vcmask 917128   ;;  %v1614_v15 = vld [vmem:[%s2634_s0 + $0x15] sm:$0x1]  }
  0xb5   :  { %893 = vrot.lane.b32.xlu1 %v1583_v17, %s1875_s19  ;;  %v1615_v17 = vld [vmem:[%s2634_s0 + $0x36] sm:$0x1]   ;;  %s1912_s19 = smov 1  }
  0xb6   :  { %v469_v20 = vpop.permute.xlu0 %468  }
  0xb7   :  { %472 = vst.msk [vmem:[#allocation0 + $0x78] sm:$0x1] %vm470_vm13, %v469_v20   ;;  %v476_v22 = vpop.permute.xlu1 %475   ;;  %vm586_vm13 = vcmask 908928  }
  0xb8   :  { %900 = vrot.lane.b32.xlu0 %v1584_v19, %s1876_s22  ;;  %479 = vst.msk [vmem:[#allocation0 + $0xb8] sm:$0x1] %vm477_vm12, %v476_v22   ;;  %vm593_vm12 = vcmask 900728   ;;  %s1892_s22 = smov 21   ;;  %v1616_v19 = vld [vmem:[%s2634_s0 + $0x57] sm:$0x1]  }
  0xb9   :  { %907 = vrot.lane.b32.xlu1 %v1585_v21, %s1877_s25  ;;  %v1617_v21 = vld [vmem:[%s2634_s0 + $0x78] sm:$0x1]  }
  0xba   :  { %v487_v24 = vpop.permute.xlu0 %486  }
  0xbb   :  { %489 = vst.msk [vmem:[#allocation0] ss:$248 sm:$0x3] %vm488_vm11, %v487_v24   ;;  %v493_v26 = vpop.permute.xlu1 %492   ;;  %vm600_vm11 = vcmask 892528  }
  0xbc   :  { %914 = vrot.lane.b32.xlu0 %v1586_v23, %s1878_s28  ;;  %496 = vst.msk [vmem:[#allocation0 + $0x40] sm:$0x1] %vm494_vm10, %v493_v26   ;;  %vm607_vm10 = vcmask 884328   ;;  %v1618_v23 = vld [vmem:[%s2634_s0 + $0x19] sm:$0x1]  }
  0xbd   :  { %921 = vrot.lane.b32.xlu1 %v1587_v25, %s1879_s2  ;;  %v1619_v25 = vld [vmem:[%s2634_s0 + $0x3a] sm:$0x1]  }
  0xbe   :  { %v500_v28 = vpop.permute.xlu0 %499  }
  0xbf   :  { %503 = vst.msk [vmem:[#allocation0 + $0x80] sm:$0x1] %vm501_vm9, %v500_v28   ;;  %v507_v32 = vpop.permute.xlu1 %506   ;;  %vm621_vm9 = vcmask 867928  }
  0xc0   :  { %928 = vrot.lane.b32.xlu0 %v1588_v27, %s1880_s9  ;;  %510 = vst.msk [vmem:[#allocation0 + $0xc0] sm:$0x1] %vm508_vm8, %v507_v32   ;;  %s1889_s9 = smov 24   ;;  %vm628_vm8 = vcmask 859728   ;;  %v1620_v27 = vld [vmem:[%s2634_s0 + $0x5b] sm:$0x1]  }
  0xc1   :  { %935 = vrot.lane.b32.xlu1 %v1589_v31, %s1881_s10  ;;  %s1908_s10 = smov 5   ;;  %v1622_v31 = vld [vmem:[%s2634_s0 + $0x1d] sm:$0x1]  }
  0xc2   :  { %v518_v34 = vpop.permute.xlu0 %517  }
  0xc3   :  { %521 = vst.msk [vmem:[#allocation0 + $0x100] ss:$-248 sm:$0x3] %vm519_vm7, %v518_v34   ;;  %v525_v36 = vpop.permute.xlu1 %524   ;;  %vm635_vm7 = vcmask 851528  }
  0xc4   :  { %946 = vrot.lane.b32.xlu0 %v945_v33, %s1882_s13  ;;  %528 = vst.msk [vmem:[#allocation0 + $0x48] sm:$0x1] %vm526_vm6, %v525_v36   ;;  %vm642_vm6 = vcmask 843328   ;;  %s1909_s13 = smov 4   ;;  %v1623_v33 = vld [vmem:[%s2634_s0 + $0x3e] sm:$0x1]  }
  0xc5   :  { %952 = vrot.lane.b32.xlu1 %v1592_v35, %s1883_s16  ;;  %s1910_s16 = smov 3   ;;  %v1624_v35 = vld [vmem:[%s2634_s0 + $0x5f] sm:$0x1]   ;;  %s1911_s0 = smov 2  }
  0xc6   :  { %v532_v38 = vpop.permute.xlu0 %531  }
  0xc7   :  { %535 = vst.msk [vmem:[#allocation0 + $0x88] sm:$0x1] %vm533_vm3, %v532_v38   ;;  %v539_v42 = vpop.permute.xlu1 %538   ;;  %vm649_vm3 = vcmask 835128  }
  0xc8   :  { %959 = vrot.lane.b32.xlu0 %v1593_v37, %s1884_s23  ;;  %542 = vst.msk [vmem:[#allocation0 + $0xc8] sm:$0x1] %vm540_vm5, %v539_v42   ;;  %s1893_s23 = smov 20   ;;  %vm656_vm5 = vcmask 826928  }
  0xc9   :  { %966 = vrot.lane.b32.xlu1 %v1594_v41, %s1885_s24  ;;  %s1903_s24 = smov 10  }
  0xca   :  { %v550_v44 = vpop.permute.xlu0 %549  }
  0xcb   :  { %553 = vst.msk [vmem:[#allocation0 + $0x108] ss:$-248 sm:$0x3] %vm551_vm1, %v550_v44   ;;  %v557_v46 = vpop.permute.xlu1 %556   ;;  %vm663_vm1 = vcmask 818728  }
  0xcc   :  { %977 = vrot.lane.b32.xlu0 %v976_v43, %s1886_s27  ;;  %560 = vst.msk [vmem:[#allocation0 + $0x50] sm:$0x1] %vm558_vm15, %v557_v46   ;;  %vm670_vm15 = vcmask 810528   ;;  %s1904_s27 = smov 9  }
  0xcd   :  { %984 = vrot.lane.b32.xlu1 %v1597_v45, %s1887_s30  ;;  %s1905_s30 = smov 8  }
  0xce   :  { %v564_v48 = vpop.permute.xlu0 %563  }
  0xcf   :  { %567 = vst.msk [vmem:[#allocation0 + $0x90] sm:$0x1] %vm565_vm14, %v564_v48   ;;  %v571_v52 = vpop.permute.xlu1 %570   ;;  %vm677_vm14 = vcmask 802328  }
  0xd0   :  { %991 = vrot.lane.b32.xlu0 %v1598_v47, %s1888_s8  ;;  %574 = vst.msk [vmem:[#allocation0 + $0xd0] sm:$0x1] %vm572_vm0, %v571_v52   ;;  %vm684_vm0 = vcmask 794128  }
  0xd1   :  { %998 = vrot.lane.b32.xlu1 %v1599_v51, %s1889_s9  ;;  %s1898_s9 = smov 15  }
  0xd2   :  { %v578_v54 = vpop.permute.xlu0 %577  }
  0xd3   :  { %581 = vst.msk [vmem:[#allocation0 + $0x18] sm:$0x1] %vm579_vm2, %v578_v54   ;;  %v585_v56 = vpop.permute.xlu1 %584   ;;  %vm691_vm2 = vcmask 785928  }
  0xd4   :  { %1009 = vrot.lane.b32.xlu0 %v1008_v53, %s1890_s12  ;;  %588 = vst.msk [vmem:[#allocation0 + $0x58] sm:$0x1] %vm586_vm13, %v585_v56   ;;  %s1899_s12 = smov 14   ;;  %vm698_vm13 = vcmask 777728  }
  0xd5   :  { %1016 = vrot.lane.b32.xlu1 %v1602_v55, %s1891_s15  ;;  %s1900_s15 = smov 13  }
  0xd6   :  { %v592_v58 = vpop.permute.xlu0 %591  }
  0xd7   :  { %595 = vst.msk [vmem:[#allocation0 + $0x98] sm:$0x1] %vm593_vm12, %v592_v58   ;;  %v599_v62 = vpop.permute.xlu1 %598   ;;  %vm705_vm12 = vcmask 769528  }
  0xd8   :  { %1023 = vrot.lane.b32.xlu0 %v1603_v57, %s1892_s22  ;;  %602 = vst.msk [vmem:[#allocation0 + $0xd8] sm:$0x1] %vm600_vm11, %v599_v62   ;;  %vm716_vm11 = vcmask 761328  }
  0xd9   :  { %1030 = vrot.lane.b32.xlu1 %v1604_v61, %s1893_s23 }
  0xda   :  { %v606_v0 = vpop.permute.xlu0 %605  }
  0xdb   :  { %609 = vst.msk [vmem:[#allocation0 + $0x20] sm:$0x1] %vm607_vm10, %v606_v0   ;;  %v613_v2 = vpop.permute.xlu1 %612   ;;  %vm722_vm10 = vcmask 753128  }
  0xdc   :  { %1041 = vrot.lane.b32.xlu0 %v1040_v63, %s1894_s26  ;;  %616 = vst.msk [vmem:[#allocation0 + $0x60] sm:$0x1] %vm614_vm4, %v613_v2   ;;  %vm729_vm4 = vcmask 744928  }
  0xdd   :  { %1048 = vrot.lane.b32.xlu1 %v1607_v1, %s1895_s29 }
  0xde   :  { %v620_v4 = vpop.permute.xlu0 %619  }
  0xdf   :  { %623 = vst.msk [vmem:[#allocation0 + $0xa0] sm:$0x1] %vm621_vm9, %v620_v4   ;;  %v627_v6 = vpop.permute.xlu1 %626   ;;  %vm736_vm9 = vcmask 736728  }
  0xe0   :  { %1055 = vrot.lane.b32.xlu0 %v1608_v3, %s1896_s3  ;;  %630 = vst.msk [vmem:[#allocation0 + $0xe0] sm:$0x1] %vm628_vm8, %v627_v6   ;;  %vm747_vm8 = vcmask 728528  }
  0xe1   :  { %1062 = vrot.lane.b32.xlu1 %v1609_v5, %s1897_s6 }
  0xe2   :  { %v634_v8 = vpop.permute.xlu0 %633  }
  0xe3   :  { %637 = vst.msk [vmem:[#allocation0 + $0x28] sm:$0x1] %vm635_vm7, %v634_v8   ;;  %v641_v10 = vpop.permute.xlu1 %640   ;;  %vm754_vm7 = vcmask 720328  }
  0xe4   :  { %1069 = vrot.lane.b32.xlu0 %v1610_v7, %s1898_s9  ;;  %644 = vst.msk [vmem:[#allocation0 + $0x68] sm:$0x1] %vm642_vm6, %v641_v10   ;;  %vm761_vm6 = vcmask 712128  }
  0xe5   :  { %1076 = vrot.lane.b32.xlu1 %v1611_v9, %s1899_s12 }
  0xe6   :  { %v648_v12 = vpop.permute.xlu0 %647  }
  0xe7   :  { %651 = vst.msk [vmem:[#allocation0 + $0xa8] sm:$0x1] %vm649_vm3, %v648_v12   ;;  %v655_v14 = vpop.permute.xlu1 %654   ;;  %vm768_vm3 = vcmask 703928  }
  0xe8   :  { %1083 = vrot.lane.b32.xlu0 %v1612_v11, %s1900_s15  ;;  %658 = vst.msk [vmem:[#allocation0 + $0xe8] sm:$0x1] %vm656_vm5, %v655_v14   ;;  %vm779_vm5 = vcmask 695728  }
  0xe9   :  { %1090 = vrot.lane.b32.xlu1 %v1613_v13, %s1901_s18 }
  0xea   :  { %v662_v16 = vpop.permute.xlu0 %661  }
  0xeb   :  { %665 = vst.msk [vmem:[#allocation0 + $0x30] sm:$0x1] %vm663_vm1, %v662_v16   ;;  %v669_v18 = vpop.permute.xlu1 %668   ;;  %vm786_vm1 = vcmask 687528  }
  0xec   :  { %1097 = vrot.lane.b32.xlu0 %v1614_v15, %s1902_s21  ;;  %672 = vst.msk [vmem:[#allocation0 + $0x70] sm:$0x1] %vm670_vm15, %v669_v18   ;;  %vm793_vm15 = vcmask 679328  }
  0xed   :  { %1104 = vrot.lane.b32.xlu1 %v1615_v17, %s1903_s24 }
  0xee   :  { %v676_v20 = vpop.permute.xlu0 %675  }
  0xef   :  { %679 = vst.msk [vmem:[#allocation0 + $0xb0] sm:$0x1] %vm677_vm14, %v676_v20   ;;  %v683_v22 = vpop.permute.xlu1 %682   ;;  %vm800_vm14 = vcmask 671128  }
  0xf0   :  { %1111 = vrot.lane.b32.xlu0 %v1616_v19, %s1904_s27  ;;  %686 = vst.msk [vmem:[#allocation0 + $0xf0] sm:$0x1] %vm684_vm0, %v683_v22   ;;  %vm811_vm0 = vcmask 662928  }
  0xf1   :  { %1118 = vrot.lane.b32.xlu1 %v1617_v21, %s1905_s30 }
  0xf2   :  { %v690_v24 = vpop.permute.xlu0 %689  }
  0xf3   :  { %693 = vst.msk [vmem:[#allocation0 + $0x38] sm:$0x1] %vm691_vm2, %v690_v24   ;;  %v697_v26 = vpop.permute.xlu1 %696   ;;  %vm818_vm2 = vcmask 654728  }
  0xf4   :  { %1125 = vrot.lane.b32.xlu0 %v1618_v23, %s1906_s4  ;;  %700 = vst.msk [vmem:[#allocation0 + $0x78] sm:$0x1] %vm698_vm13, %v697_v26   ;;  %vm825_vm13 = vcmask 646528  }
  0xf5   :  { %1132 = vrot.lane.b32.xlu1 %v1619_v25, %s1907_s7 }
  0xf6   :  { %v704_v28 = vpop.permute.xlu0 %703  }
  0xf7   :  { %707 = vst.msk [vmem:[#allocation0 + $0xb8] sm:$0x1] %vm705_vm12, %v704_v28   ;;  %v715_v30 = vpop.permute.xlu1 %714   ;;  %vm832_vm12 = vcmask 638328  }
  0xf8   :  { %1139 = vrot.lane.b32.xlu0 %v1620_v27, %s1908_s10  ;;  %717 = vst.msk [vmem:[#allocation0] ss:$248 sm:$0x3] %vm716_vm11, %v715_v30   ;;  %vm839_vm11 = vcmask 630128  }
  0xf9   :  { %1146 = vrot.lane.b32.xlu1 %v1621_v29, %s1909_s13 }
  0xfa   :  { %v721_v32 = vpop.permute.xlu0 %720  }
  0xfb   :  { %724 = vst.msk [vmem:[#allocation0 + $0x40] sm:$0x1] %vm722_vm10, %v721_v32   ;;  %v728_v34 = vpop.permute.xlu1 %727   ;;  %vm846_vm10 = vcmask 621928  }
  0xfc   :  { %1153 = vrot.lane.b32.xlu0 %v1622_v31, %s1910_s16  ;;  %731 = vst.msk [vmem:[#allocation0 + $0x80] sm:$0x1] %vm729_vm4, %v728_v34   ;;  %vm853_vm4 = vcmask 613728  }
  0xfd   :  { %1160 = vrot.lane.b32.xlu1 %v1623_v33, %s1911_s0 }
  0xfe   :  { %v735_v36 = vpop.permute.xlu0 %734  }
  0xff   :  { %738 = vst.msk [vmem:[#allocation0 + $0xc0] sm:$0x1] %vm736_vm9, %v735_v36   ;;  %v746_v37 = vpop.permute.xlu1 %745   ;;  %vm860_vm9 = vcmask 605528  }
 0x100   :  { %1167 = vrot.lane.b32.xlu0 %v1624_v35, %s1912_s19  ;;  %749 = vst.msk [vmem:[#allocation0 + $0x100] ss:$-248 sm:$0x3] %vm747_vm8, %v746_v37   ;;  %vm867_vm8 = vcmask 597328  }
 0x102   :  { %v753_v38 = vpop.permute.xlu0 %752  }
 0x103   :  { %756 = vst.msk [vmem:[#allocation0 + $0x48] sm:$0x1] %vm754_vm7, %v753_v38   ;;  %v760_v39 = vpop.permute.xlu1 %759   ;;  %vm874_vm7 = vcmask 589128  }
 0x104   :  { %763 = vst.msk [vmem:[#allocation0 + $0x88] sm:$0x1] %vm761_vm6, %v760_v39   ;;  %vm881_vm6 = vcmask 580928  }
 0x106   :  { %v767_v40 = vpop.permute.xlu0 %766  }
 0x107   :  { %770 = vst.msk [vmem:[#allocation0 + $0xc8] sm:$0x1] %vm768_vm3, %v767_v40   ;;  %v778_v41 = vpop.permute.xlu1 %777   ;;  %vm888_vm3 = vcmask 572728  }
 0x108   :  { %781 = vst.msk [vmem:[#allocation0 + $0x108] ss:$-248 sm:$0x3] %vm779_vm5, %v778_v41   ;;  %vm895_vm5 = vcmask 564528  }
 0x10a   :  { %v785_v42 = vpop.permute.xlu0 %784  }
 0x10b   :  { %788 = vst.msk [vmem:[#allocation0 + $0x50] sm:$0x1] %vm786_vm1, %v785_v42   ;;  %v792_v43 = vpop.permute.xlu1 %791   ;;  %vm902_vm1 = vcmask 556328  }
 0x10c   :  { %795 = vst.msk [vmem:[#allocation0 + $0x90] sm:$0x1] %vm793_vm15, %v792_v43   ;;  %vm909_vm15 = vcmask 548128  }
 0x10e   :  { %v799_v44 = vpop.permute.xlu0 %798  }
 0x10f   :  { %802 = vst.msk [vmem:[#allocation0 + $0xd0] sm:$0x1] %vm800_vm14, %v799_v44   ;;  %v810_v45 = vpop.permute.xlu1 %809   ;;  %vm916_vm14 = vcmask 539928  }
 0x110   :  { %813 = vst.msk [vmem:[#allocation0 + $0x110] ss:$-248 sm:$0x3] %vm811_vm0, %v810_v45   ;;  %vm923_vm0 = vcmask 531728  }
 0x112   :  { %v817_v46 = vpop.permute.xlu0 %816  }
 0x113   :  { %820 = vst.msk [vmem:[#allocation0 + $0x58] sm:$0x1] %vm818_vm2, %v817_v46   ;;  %v824_v47 = vpop.permute.xlu1 %823   ;;  %vm930_vm2 = vcmask 523528  }
 0x114   :  { %827 = vst.msk [vmem:[#allocation0 + $0x98] sm:$0x1] %vm825_vm13, %v824_v47   ;;  %vm937_vm13 = vcmask 515328  }
 0x116   :  { %v831_v48 = vpop.permute.xlu0 %830  }
 0x117   :  { %834 = vst.msk [vmem:[#allocation0 + $0xd8] sm:$0x1] %vm832_vm12, %v831_v48   ;;  %v838_v49 = vpop.permute.xlu1 %837   ;;  %vm948_vm12 = vcmask 507128  }
 0x118   :  { %841 = vst.msk [vmem:[#allocation0 + $0x20] sm:$0x1] %vm839_vm11, %v838_v49   ;;  %vm954_vm11 = vcmask 498928  }
 0x11a   :  { %v845_v50 = vpop.permute.xlu0 %844  }
 0x11b   :  { %848 = vst.msk [vmem:[#allocation0 + $0x60] sm:$0x1] %vm846_vm10, %v845_v50   ;;  %v852_v51 = vpop.permute.xlu1 %851   ;;  %vm961_vm10 = vcmask 490728  }
 0x11c   :  { %855 = vst.msk [vmem:[#allocation0 + $0xa0] sm:$0x1] %vm853_vm4, %v852_v51   ;;  %vm968_vm4 = vcmask 482528  }
 0x11e   :  { %v859_v52 = vpop.permute.xlu0 %858  }
 0x11f   :  { %862 = vst.msk [vmem:[#allocation0 + $0xe0] sm:$0x1] %vm860_vm9, %v859_v52   ;;  %v866_v53 = vpop.permute.xlu1 %865   ;;  %vm979_vm9 = vcmask 474328  }
 0x120   :  { %869 = vst.msk [vmem:[#allocation0 + $0x28] sm:$0x1] %vm867_vm8, %v866_v53   ;;  %vm986_vm8 = vcmask 466128  }
 0x122   :  { %v873_v54 = vpop.permute.xlu0 %872  }
 0x123   :  { %876 = vst.msk [vmem:[#allocation0 + $0x68] sm:$0x1] %vm874_vm7, %v873_v54   ;;  %v880_v55 = vpop.permute.xlu1 %879   ;;  %vm993_vm7 = vcmask 457928  }
 0x124   :  { %883 = vst.msk [vmem:[#allocation0 + $0xa8] sm:$0x1] %vm881_vm6, %v880_v55   ;;  %vm1000_vm6 = vcmask 449728  }
 0x126   :  { %v887_v56 = vpop.permute.xlu0 %886  }
 0x127   :  { %890 = vst.msk [vmem:[#allocation0 + $0xe8] sm:$0x1] %vm888_vm3, %v887_v56   ;;  %v894_v57 = vpop.permute.xlu1 %893   ;;  %vm1011_vm3 = vcmask 441528  }
 0x128   :  { %897 = vst.msk [vmem:[#allocation0 + $0x30] sm:$0x1] %vm895_vm5, %v894_v57   ;;  %vm1018_vm5 = vcmask 433328  }
 0x12a   :  { %v901_v58 = vpop.permute.xlu0 %900  }
 0x12b   :  { %904 = vst.msk [vmem:[#allocation0 + $0x70] sm:$0x1] %vm902_vm1, %v901_v58   ;;  %v908_v59 = vpop.permute.xlu1 %907   ;;  %vm1025_vm1 = vcmask 425128  }
 0x12c   :  { %911 = vst.msk [vmem:[#allocation0 + $0xb0] sm:$0x1] %vm909_vm15, %v908_v59   ;;  %vm1032_vm15 = vcmask 416928  }
 0x12e   :  { %v915_v60 = vpop.permute.xlu0 %914  }
 0x12f   :  { %918 = vst.msk [vmem:[#allocation0 + $0xf0] sm:$0x1] %vm916_vm14, %v915_v60   ;;  %v922_v61 = vpop.permute.xlu1 %921   ;;  %vm1043_vm14 = vcmask 408728  }
 0x130   :  { %925 = vst.msk [vmem:[#allocation0 + $0x38] sm:$0x1] %vm923_vm0, %v922_v61   ;;  %vm1050_vm0 = vcmask 400528  }
 0x132   :  { %v929_v62 = vpop.permute.xlu0 %928  }
 0x133   :  { %932 = vst.msk [vmem:[#allocation0 + $0x78] sm:$0x1] %vm930_vm2, %v929_v62   ;;  %v936_v63 = vpop.permute.xlu1 %935   ;;  %vm1057_vm2 = vcmask 392328  }
 0x134   :  { %939 = vst.msk [vmem:[#allocation0 + $0xb8] sm:$0x1] %vm937_vm13, %v936_v63   ;;  %vm1064_vm13 = vcmask 384128  }
 0x136   :  { %v947_v0 = vpop.permute.xlu0 %946  }
 0x137   :  { %949 = vst.msk [vmem:[#allocation0] ss:$248 sm:$0x3] %vm948_vm12, %v947_v0   ;;  %v953_v1 = vpop.permute.xlu1 %952   ;;  %vm1071_vm12 = vcmask 375928  }
 0x138   :  { %956 = vst.msk [vmem:[#allocation0 + $0x40] sm:$0x1] %vm954_vm11, %v953_v1   ;;  %vm1078_vm11 = vcmask 367728  }
 0x13a   :  { %v960_v2 = vpop.permute.xlu0 %959  }
 0x13b   :  { %963 = vst.msk [vmem:[#allocation0 + $0x80] sm:$0x1] %vm961_vm10, %v960_v2   ;;  %v967_v3 = vpop.permute.xlu1 %966   ;;  %vm1085_vm10 = vcmask 359528  }
 0x13c   :  { %970 = vst.msk [vmem:[#allocation0 + $0xc0] sm:$0x1] %vm968_vm4, %v967_v3   ;;  %vm1092_vm4 = vcmask 351328  }
 0x13e   :  { %v1176_v4 = vld [vmem:[#allocation0] sm:$0x1]  ;;  %v1390_v5 = vld [vmem:[#allocation0 + $0xf8] sm:$0x1]  ;;  %v978_v6 = vpop.permute.xlu0 %977  }
 0x13f   :  { %1179 = vst [vmem:[%s2635_s1] sm:$0x1] %v1176_v4  ;;  %1655 = vst [vmem:[%s2635_s1 + $0x1f] sm:$0x1] %v1390_v5  ;;  %v1229_v7 = vld [vmem:[#allocation0 + $0x40] sm:$0x1]  ;;  %v985_v8 = vpop.permute.xlu1 %984  }
 0x140   :  { %981 = vst.msk [vmem:[#allocation0 + $0x100] ss:$-248 sm:$0x3] %vm979_vm9, %v978_v6   ;;  %1632 = vst [vmem:[%s2635_s1 + $0x8] sm:$0x1] %v1229_v7  ;;  %vm1099_vm9 = vcmask 343128  }
 0x141   :  { %988 = vst.msk [vmem:[#allocation0 + $0x48] sm:$0x1] %vm986_vm8, %v985_v8   ;;  %vm1106_vm8 = vcmask 334928  }
 0x142   :  { %v1285_v9 = vld [vmem:[#allocation0 + $0x80] sm:$0x1]  ;;  %v992_v10 = vpop.permute.xlu0 %991  }
 0x143   :  { %1640 = vst [vmem:[%s2635_s1 + $0x10] sm:$0x1] %v1285_v9  ;;  %995 = vst.msk [vmem:[#allocation0 + $0x88] sm:$0x1] %vm993_vm7, %v992_v10   ;;  %v1341_v11 = vld [vmem:[#allocation0 + $0xc0] sm:$0x1]  ;;  %v999_v12 = vpop.permute.xlu1 %998  }
 0x144   :  { %1648 = vst [vmem:[%s2635_s1 + $0x18] sm:$0x1] %v1341_v11  ;;  %1002 = vst.msk [vmem:[#allocation0 + $0xc8] sm:$0x1] %vm1000_vm6, %v999_v12   ;;  %vm1113_vm7 = vcmask 326728   ;;  %vm1120_vm6 = vcmask 318528  }
 0x146   :  { %v1010_v15 = vpop.permute.xlu0 %1009  }
 0x147   :  { %v1181_v13 = vld [vmem:[#allocation0 + $0x8] sm:$0x1]  ;;  %v1397_v14 = vld [vmem:[#allocation0 + $0x100] sm:$0x1]  ;;  %v1017_v17 = vpop.permute.xlu1 %1016  }
 0x148   :  { %1625 = vst [vmem:[%s2635_s1 + $0x1] sm:$0x1] %v1181_v13  ;;  %1656 = vst [vmem:[%s2635_s1 + $0x20] sm:$0x1] %v1397_v14  ;;  %v1236_v16 = vld [vmem:[#allocation0 + $0x48] sm:$0x1] }
 0x149   :  { %1013 = vst.msk [vmem:[#allocation0 + $0x108] ss:$-248 sm:$0x3] %vm1011_vm3, %v1010_v15   ;;  %1633 = vst [vmem:[%s2635_s1 + $0x9] sm:$0x1] %v1236_v16  ;;  %vm1127_vm3 = vcmask 310328  }
 0x14a   :  { %1020 = vst.msk [vmem:[#allocation0 + $0x50] sm:$0x1] %vm1018_vm5, %v1017_v17   ;;  %v1292_v18 = vld [vmem:[#allocation0 + $0x88] sm:$0x1]  ;;  %v1024_v19 = vpop.permute.xlu0 %1023   ;;  %vm1134_vm5 = vcmask 302128  }
 0x14b   :  { %1641 = vst [vmem:[%s2635_s1 + $0x11] sm:$0x1] %v1292_v18  ;;  %1027 = vst.msk [vmem:[#allocation0 + $0x90] sm:$0x1] %vm1025_vm1, %v1024_v19   ;;  %v1348_v20 = vld [vmem:[#allocation0 + $0xc8] sm:$0x1]  ;;  %v1031_v21 = vpop.permute.xlu1 %1030  }
 0x14c   :  { %1649 = vst [vmem:[%s2635_s1 + $0x19] sm:$0x1] %v1348_v20  ;;  %1034 = vst.msk [vmem:[#allocation0 + $0xd0] sm:$0x1] %vm1032_vm15, %v1031_v21   ;;  %vm1141_vm1 = vcmask 293928   ;;  %vm1148_vm15 = vcmask 285728  }
 0x14e   :  { %v1042_v24 = vpop.permute.xlu0 %1041  }
 0x14f   :  { %1045 = vst.msk [vmem:[#allocation0 + $0x110] ss:$-248 sm:$0x3] %vm1043_vm14, %v1042_v24   ;;  %v1049_v26 = vpop.permute.xlu1 %1048   ;;  %vm1155_vm14 = vcmask 277528  }
 0x150   :  { %v1187_v22 = vld [vmem:[#allocation0 + $0x10] sm:$0x1]  ;;  %v1404_v23 = vld [vmem:[#allocation0 + $0x108] sm:$0x1]  ;;  %1052 = vst.msk [vmem:[#allocation0 + $0x58] sm:$0x1] %vm1050_vm0, %v1049_v26  }
 0x151   :  { %1626 = vst [vmem:[%s2635_s1 + $0x2] sm:$0x1] %v1187_v22  ;;  %1657 = vst [vmem:[%s2635_s1 + $0x21] sm:$0x1] %v1404_v23  ;;  %v1243_v25 = vld [vmem:[#allocation0 + $0x50] sm:$0x1] }
 0x152   :  { %1634 = vst [vmem:[%s2635_s1 + $0xa] sm:$0x1] %v1243_v25  ;;  %v1299_v27 = vld [vmem:[#allocation0 + $0x90] sm:$0x1]  ;;  %v1056_v28 = vpop.permute.xlu0 %1055   ;;  %vm1162_vm0 = vcmask 269328  }
 0x153   :  { %1642 = vst [vmem:[%s2635_s1 + $0x12] sm:$0x1] %v1299_v27  ;;  %1059 = vst.msk [vmem:[#allocation0 + $0x98] sm:$0x1] %vm1057_vm2, %v1056_v28   ;;  %v1355_v29 = vld [vmem:[#allocation0 + $0xd0] sm:$0x1]  ;;  %v1063_v30 = vpop.permute.xlu1 %1062  }
 0x154   :  { %1650 = vst [vmem:[%s2635_s1 + $0x1a] sm:$0x1] %v1355_v29  ;;  %1066 = vst.msk [vmem:[#allocation0 + $0xd8] sm:$0x1] %vm1064_vm13, %v1063_v30   ;;  %vm1169_vm2 = vcmask 261128  }
 0x156   :  { %v1194_v31 = vld [vmem:[#allocation0 + $0x18] sm:$0x1]  ;;  %v1411_v32 = vld [vmem:[#allocation0 + $0x110] sm:$0x1]  ;;  %v1070_v33 = vpop.permute.xlu0 %1069  }
 0x157   :  { %1627 = vst [vmem:[%s2635_s1 + $0x3] sm:$0x1] %v1194_v31  ;;  %1658 = vst [vmem:[%s2635_s1 + $0x22] sm:$0x1] %v1411_v32  ;;  %v1250_v34 = vld [vmem:[#allocation0 + $0x58] sm:$0x1]  ;;  %v1077_v35 = vpop.permute.xlu1 %1076  }
 0x158   :  { %1073 = vst.msk [vmem:[#allocation0 + $0x20] sm:$0x1] %vm1071_vm12, %v1070_v33   ;;  %1635 = vst [vmem:[%s2635_s1 + $0xb] sm:$0x1] %v1250_v34 }
 0x159   :  { %1080 = vst.msk [vmem:[#allocation0 + $0x60] sm:$0x1] %vm1078_vm11, %v1077_v35  }
 0x15a   :  { %v1306_v36 = vld [vmem:[#allocation0 + $0x98] sm:$0x1]  ;;  %v1084_v37 = vpop.permute.xlu0 %1083  }
 0x15b   :  { %1643 = vst [vmem:[%s2635_s1 + $0x13] sm:$0x1] %v1306_v36  ;;  %1087 = vst.msk [vmem:[#allocation0 + $0xa0] sm:$0x1] %vm1085_vm10, %v1084_v37   ;;  %v1362_v38 = vld [vmem:[#allocation0 + $0xd8] sm:$0x1]  ;;  %v1091_v39 = vpop.permute.xlu1 %1090  }
 0x15c   :  { %1651 = vst [vmem:[%s2635_s1 + $0x1b] sm:$0x1] %v1362_v38  ;;  %1094 = vst.msk [vmem:[#allocation0 + $0xe0] sm:$0x1] %vm1092_vm4, %v1091_v39  }
 0x15e   :  { %v1098_v41 = vpop.permute.xlu0 %1097  }
 0x15f   :  { %v1201_v40 = vld [vmem:[#allocation0 + $0x20] sm:$0x1]  ;;  %1101 = vst.msk [vmem:[#allocation0 + $0x28] sm:$0x1] %vm1099_vm9, %v1098_v41   ;;  %v1105_v43 = vpop.permute.xlu1 %1104  }
 0x160   :  { %1628 = vst [vmem:[%s2635_s1 + $0x4] sm:$0x1] %v1201_v40  ;;  %v1257_v42 = vld [vmem:[#allocation0 + $0x60] sm:$0x1]  ;;  %1108 = vst.msk [vmem:[#allocation0 + $0x68] sm:$0x1] %vm1106_vm8, %v1105_v43  }
 0x161   :  { %1636 = vst [vmem:[%s2635_s1 + $0xc] sm:$0x1] %v1257_v42 }
 0x162   :  { %v1313_v44 = vld [vmem:[#allocation0 + $0xa0] sm:$0x1]  ;;  %v1112_v45 = vpop.permute.xlu0 %1111  }
 0x163   :  { %1644 = vst [vmem:[%s2635_s1 + $0x14] sm:$0x1] %v1313_v44  ;;  %1115 = vst.msk [vmem:[#allocation0 + $0xa8] sm:$0x1] %vm1113_vm7, %v1112_v45   ;;  %v1369_v46 = vld [vmem:[#allocation0 + $0xe0] sm:$0x1]  ;;  %v1119_v47 = vpop.permute.xlu1 %1118  }
 0x164   :  { %1652 = vst [vmem:[%s2635_s1 + $0x1c] sm:$0x1] %v1369_v46  ;;  %1122 = vst.msk [vmem:[#allocation0 + $0xe8] sm:$0x1] %vm1120_vm6, %v1119_v47  }
 0x166   :  { %v1208_v48 = vld [vmem:[#allocation0 + $0x28] sm:$0x1]  ;;  %v1126_v49 = vpop.permute.xlu0 %1125  }
 0x167   :  { %1629 = vst [vmem:[%s2635_s1 + $0x5] sm:$0x1] %v1208_v48  ;;  %1129 = vst.msk [vmem:[#allocation0 + $0x30] sm:$0x1] %vm1127_vm3, %v1126_v49   ;;  %v1264_v50 = vld [vmem:[#allocation0 + $0x68] sm:$0x1]  ;;  %v1133_v51 = vpop.permute.xlu1 %1132  }
 0x168   :  { %1637 = vst [vmem:[%s2635_s1 + $0xd] sm:$0x1] %v1264_v50  ;;  %1136 = vst.msk [vmem:[#allocation0 + $0x70] sm:$0x1] %vm1134_vm5, %v1133_v51  }
 0x16a   :  { %v1320_v52 = vld [vmem:[#allocation0 + $0xa8] sm:$0x1]  ;;  %v1140_v53 = vpop.permute.xlu0 %1139  }
 0x16b   :  { %1645 = vst [vmem:[%s2635_s1 + $0x15] sm:$0x1] %v1320_v52  ;;  %1143 = vst.msk [vmem:[#allocation0 + $0xb0] sm:$0x1] %vm1141_vm1, %v1140_v53   ;;  %v1376_v54 = vld [vmem:[#allocation0 + $0xe8] sm:$0x1]  ;;  %v1147_v55 = vpop.permute.xlu1 %1146  }
 0x16c   :  { %1653 = vst [vmem:[%s2635_s1 + $0x1d] sm:$0x1] %v1376_v54  ;;  %1150 = vst.msk [vmem:[#allocation0 + $0xf0] sm:$0x1] %vm1148_vm15, %v1147_v55  }
 0x16e   :  { %v1215_v56 = vld [vmem:[#allocation0 + $0x30] sm:$0x1]  ;;  %v1154_v57 = vpop.permute.xlu0 %1153  }
 0x16f   :  { %1630 = vst [vmem:[%s2635_s1 + $0x6] sm:$0x1] %v1215_v56  ;;  %1157 = vst.msk [vmem:[#allocation0 + $0x38] sm:$0x1] %vm1155_vm14, %v1154_v57   ;;  %v1271_v58 = vld [vmem:[#allocation0 + $0x70] sm:$0x1]  ;;  %v1161_v59 = vpop.permute.xlu1 %1160  }
 0x170   :  { %1638 = vst [vmem:[%s2635_s1 + $0xe] sm:$0x1] %v1271_v58  ;;  %1164 = vst.msk [vmem:[#allocation0 + $0x78] sm:$0x1] %vm1162_vm0, %v1161_v59  }
 0x172   :  { %v1327_v60 = vld [vmem:[#allocation0 + $0xb0] sm:$0x1]  ;;  %v1168_v61 = vpop.permute.xlu0 %1167  }
 0x173   :  { %1646 = vst [vmem:[%s2635_s1 + $0x16] sm:$0x1] %v1327_v60  ;;  %1171 = vst.msk [vmem:[#allocation0 + $0xb8] sm:$0x1] %vm1169_vm2, %v1168_v61   ;;  %v1383_v62 = vld [vmem:[#allocation0 + $0xf0] sm:$0x1] }
 0x174   :  { %1654 = vst [vmem:[%s2635_s1 + $0x1e] sm:$0x1] %v1383_v62 }
 0x176   :  { %v1222_v63 = vld [vmem:[#allocation0 + $0x38] sm:$0x1] }
 0x177   :  { %1631 = vst [vmem:[%s2635_s1 + $0x7] sm:$0x1] %v1222_v63  ;;  %v1278_v0 = vld [vmem:[#allocation0 + $0x78] sm:$0x1] }
 0x178   :  { %1639 = vst [vmem:[%s2635_s1 + $0xf] sm:$0x1] %v1278_v0 }
 0x17a   :  { %v1334_v1 = vld [vmem:[#allocation0 + $0xb8] sm:$0x1] }
 0x17b   :  { %1647 = vst [vmem:[%s2635_s1 + $0x17] sm:$0x1] %v1334_v1 }

// kernel: conv_transpose_sigmoid.1
= control target key start
LH: loop header
LB: loop body
LE: loop exit
PB: predicated region body
PF: predicated region fallthrough
CT: control target
= control target key end

     0   :  { %s5917_s9 = smov 0   ;;  %s5919_s10 = smov 0   ;;  %s8263_s0 = inlined_call_operand.vmem [shape: f32[64,32], index: 0, kind: input, shape index: {}]   ;;  %s8264_s1 = inlined_call_operand.vmem [shape: f32[32,4608], index: 1, kind: input, shape index: {}]   ;;  %s8265_s2 = inlined_call_operand.vmem [shape: f32[64,4608], index: 2, kind: output, shape index: {}]  }
   0x1   :  { %s5921_s11 = smov 0  }
   0x2 LB: > { %s5358_s12 = sadd.s32 4294967295, %s5899_s11   ;;  %s5934_s13 = sadd.s32 1, %s5899_s11   ;;  %s5899_s11 = sphi %s5921_s11, %s8654_s11   ;;  %s5895_s10 = sphi %s5919_s10, %s8653_s10   ;;  %s5891_s9 = sphi %s5917_s9, %s8652_s9  }
   0x3   : > { %s37_s14 = ssub.s32 %s5899_s11, %s5934_s13  ;;  %s40_s15 = sadd.s32 1, %s5895_s10 }
   0x4   : > { %p38_p0 = scmp.eq.s32.totalorder %s37_s14, 0  ;;  %p47_p1 = scmp.ne.s32.totalorder %s5895_s10, %s5891_s9 }
   0x5   : > { %p48_p2 = scmp.eq.s32.totalorder %s5899_s11, 0  ;;  %p77_p3 = scmp.eq.s32.totalorder %s5358_s12, 3 }
   0x6   : > { %s5945_s16 = scalar_select %p38_p0, %s5895_s10, %s40_s15  }
   0x7   : > { %p49_p4 = por %p48_p2, %p47_p1  ;;  %p5947_p5 = por %p77_p3, %p47_p1 }
   0x8   : > { %p5361_p6 = scmp.ge.s32.totalorder %s5899_s11, 4 }
   0xa   : > { %102 = sbr.rel (%p5361_p6) target bundleno = 38 (0x26), region = 20 }
   0xf   : > { %105 = sbr.rel (!%p49_p4) target bundleno = 38 (0x26), region = 24  ;;  %s107_s18 = sand.u32 (%p49_p4), 1, %s5895_s10  }
  0x10   : > { %s5367_s19 = smul.u32 (%p49_p4), 72, %s5899_s11 }
  0x11   : > { %s5561_s20 = smul.u32 (%p49_p4), 288, %s107_s18 }
  0x12   : > { %s5957_s23 = scalar_lea.vmem (%p49_p4), %s8264_s1, %s5367_s19 }
  0x13   : > { %v125_v0 = vld [vmem:[%s5957_s23] sm:$0xff] (%p49_p4)  ;;  %v127_v1 = vld [vmem:[%s5957_s23 + $0x8] sm:$0xff] (%p49_p4)  ;;  %v129_v2 = vld [vmem:[%s5957_s23 + $0x10] sm:$0xff] (%p49_p4)  ;;  %s5962_s24 = scalar_lea.vmem (%p49_p4), [#allocation2], %s5561_s20 }
  0x14   : > { %126 = vst [vmem:[%s5962_s24] sm:$0xff] %v125_v0  ;;  %128 = vst [vmem:[%s5962_s24 + $0x8] sm:$0xff] %v127_v1  ;;  %v131_v3 = vld [vmem:[%s5957_s23 + $0x18] sm:$0xff]  ;;  %v133_v4 = vld [vmem:[%s5957_s23 + $0x20] sm:$0xff] }
  0x15   : > { %130 = vst [vmem:[%s5962_s24 + $0x10] sm:$0xff] %v129_v2  ;;  %v135_v5 = vld [vmem:[%s5957_s23 + $0x28] sm:$0xff]  ;;  %132 = vst [vmem:[%s5962_s24 + $0x18] sm:$0xff] %v131_v3  ;;  %v137_v6 = vld [vmem:[%s5957_s23 + $0x30] sm:$0xff] }
  0x16   : > { %134 = vst [vmem:[%s5962_s24 + $0x20] sm:$0xff] %v133_v4  ;;  %136 = vst [vmem:[%s5962_s24 + $0x28] sm:$0xff] %v135_v5  ;;  %v139_v7 = vld [vmem:[%s5957_s23 + $0x38] sm:$0xff]  ;;  %v141_v8 = vld [vmem:[%s5957_s23 + $0x40] sm:$0xff] }
  0x17   : > { %138 = vst [vmem:[%s5962_s24 + $0x30] sm:$0xff] %v137_v6  ;;  %140 = vst [vmem:[%s5962_s24 + $0x38] sm:$0xff] %v139_v7  ;;  %v143_v9 = vld [vmem:[%s5957_s23 + $0x120] sm:$0xff]  ;;  %v145_v10 = vld [vmem:[%s5957_s23 + $0x128] sm:$0xff] }
  0x18   : > { %142 = vst [vmem:[%s5962_s24 + $0x40] sm:$0xff] %v141_v8  ;;  %v147_v11 = vld [vmem:[%s5957_s23 + $0x130] sm:$0xff]  ;;  %144 = vst [vmem:[%s5962_s24 + $0x48] sm:$0xff] %v143_v9  ;;  %v149_v12 = vld [vmem:[%s5957_s23 + $0x138] sm:$0xff] }
  0x19   : > { %146 = vst [vmem:[%s5962_s24 + $0x50] sm:$0xff] %v145_v10  ;;  %148 = vst [vmem:[%s5962_s24 + $0x58] sm:$0xff] %v147_v11  ;;  %v151_v13 = vld [vmem:[%s5957_s23 + $0x140] sm:$0xff]  ;;  %v153_v14 = vld [vmem:[%s5957_s23 + $0x148] sm:$0xff] }
  0x1a   : > { %150 = vst [vmem:[%s5962_s24 + $0x60] sm:$0xff] %v149_v12  ;;  %152 = vst [vmem:[%s5962_s24 + $0x68] sm:$0xff] %v151_v13  ;;  %v155_v15 = vld [vmem:[%s5957_s23 + $0x150] sm:$0xff]  ;;  %v157_v16 = vld [vmem:[%s5957_s23 + $0x158] sm:$0xff] }
  0x1b   : > { %154 = vst [vmem:[%s5962_s24 + $0x70] sm:$0xff] %v153_v14  ;;  %v159_v17 = vld [vmem:[%s5957_s23 + $0x160] sm:$0xff]  ;;  %156 = vst [vmem:[%s5962_s24 + $0x78] sm:$0xff] %v155_v15  ;;  %v163_v19 = vld [vmem:[%s5957_s23 + $0x248] sm:$0xff] }
  0x1c   : > { %158 = vst [vmem:[%s5962_s24 + $0x80] sm:$0xff] %v157_v16  ;;  %160 = vst [vmem:[%s5962_s24 + $0x88] sm:$0xff] %v159_v17  ;;  %v161_v18 = vld [vmem:[%s5957_s23 + $0x240] sm:$0xff]  ;;  %v165_v20 = vld [vmem:[%s5957_s23 + $0x250] sm:$0xff] }
  0x1d   : > { %162 = vst [vmem:[%s5962_s24 + $0x90] sm:$0xff] %v161_v18  ;;  %164 = vst [vmem:[%s5962_s24 + $0x98] sm:$0xff] %v163_v19  ;;  %v167_v21 = vld [vmem:[%s5957_s23 + $0x258] sm:$0xff]  ;;  %v169_v22 = vld [vmem:[%s5957_s23 + $0x260] sm:$0xff] }
  0x1e   : > { %166 = vst [vmem:[%s5962_s24 + $0xa0] sm:$0xff] %v165_v20  ;;  %v171_v23 = vld [vmem:[%s5957_s23 + $0x268] sm:$0xff]  ;;  %168 = vst [vmem:[%s5962_s24 + $0xa8] sm:$0xff] %v167_v21  ;;  %v173_v24 = vld [vmem:[%s5957_s23 + $0x270] sm:$0xff] }
  0x1f   : > { %170 = vst [vmem:[%s5962_s24 + $0xb0] sm:$0xff] %v169_v22  ;;  %172 = vst [vmem:[%s5962_s24 + $0xb8] sm:$0xff] %v171_v23  ;;  %v175_v25 = vld [vmem:[%s5957_s23 + $0x278] sm:$0xff]  ;;  %v177_v26 = vld [vmem:[%s5957_s23 + $0x280] sm:$0xff] }
  0x20   : > { %174 = vst [vmem:[%s5962_s24 + $0xc0] sm:$0xff] %v173_v24  ;;  %176 = vst [vmem:[%s5962_s24 + $0xc8] sm:$0xff] %v175_v25  ;;  %v179_v27 = vld [vmem:[%s5957_s23 + $0x360] sm:$0xff]  ;;  %v181_v28 = vld [vmem:[%s5957_s23 + $0x368] sm:$0xff] }
  0x21   : > { %178 = vst [vmem:[%s5962_s24 + $0xd0] sm:$0xff] %v177_v26  ;;  %v183_v29 = vld [vmem:[%s5957_s23 + $0x370] sm:$0xff]  ;;  %180 = vst [vmem:[%s5962_s24 + $0xd8] sm:$0xff] %v179_v27  ;;  %v185_v30 = vld [vmem:[%s5957_s23 + $0x378] sm:$0xff] }
  0x22   : > { %182 = vst [vmem:[%s5962_s24 + $0xe0] sm:$0xff] %v181_v28  ;;  %184 = vst [vmem:[%s5962_s24 + $0xe8] sm:$0xff] %v183_v29  ;;  %v187_v31 = vld [vmem:[%s5957_s23 + $0x380] sm:$0xff]  ;;  %v189_v32 = vld [vmem:[%s5957_s23 + $0x388] sm:$0xff] }
  0x23   : > { %186 = vst [vmem:[%s5962_s24 + $0xf0] sm:$0xff] %v185_v30  ;;  %188 = vst [vmem:[%s5962_s24 + $0xf8] sm:$0xff] %v187_v31  ;;  %v191_v33 = vld [vmem:[%s5957_s23 + $0x390] sm:$0xff]  ;;  %v193_v34 = vld [vmem:[%s5957_s23 + $0x398] sm:$0xff] }
  0x24   : > { %190 = vst [vmem:[%s5962_s24 + $0x100] sm:$0xff] %v189_v32  ;;  %v195_v35 = vld [vmem:[%s5957_s23 + $0x3a0] sm:$0xff]  ;;  %192 = vst [vmem:[%s5962_s24 + $0x108] sm:$0xff] %v191_v33 }
  0x25   : > { %194 = vst [vmem:[%s5962_s24 + $0x110] sm:$0xff] %v193_v34  ;;  %196 = vst [vmem:[%s5962_s24 + $0x118] sm:$0xff] %v195_v35 }
  0x26 PF: > { %p5363_p7 = scmp.ge.s32.totalorder %s5899_s11, 1  ;;  %p201_p8 = scmp.lt.s32.totalorder %s5899_s11, 5 }
  0x28   : > { %p202_p9 = pnand %p5363_p7, %p201_p8 }
  0x2a   : > { %205 = sbr.rel (%p202_p9) target bundleno = 740 (0x2e4), region = 47 }
  0x2f   : > { %s208_s25 = sand.u32 1, %s5891_s9   ;;  %v230_v36 = vld [vmem:[%s8263_s0] sm:$0xff]  ;;  %vm274_vm0 = vcmask 261120   ;;  %v231_v37 = vld [vmem:[%s8263_s0 + $0x8] sm:$0xff]  ;;  %v232_v38 = vld [vmem:[%s8263_s0 + $0x10] sm:$0xff]  ;;  %v8308_v39 = vmov 0.0  }
  0x30   : > { %s5562_s4 = smul.u32 288, %s208_s25  ;;  %371 = vmatprep.mubr.f32.mxu0 %v8308_v39  ;;  %v276_v40 = vsel %vm274_vm0, %v230_v36, 0  ;;  %v279_v41 = vsel %vm274_vm0, %v231_v37, 0  ;;  %564 = vmatprep.mubr.f32.mxu1 %v8308_v39  ;;  %v282_v42 = vsel %vm274_vm0, %v232_v38, 0  ;;  %v233_v43 = vld [vmem:[%s8263_s0 + $0x18] sm:$0xff]  ;;  %v234_v44 = vld [vmem:[%s8263_s0 + $0x20] sm:$0xff] }
  0x31   : > { %v6058_v45 = vand.u32 4294901760, %v276_v40  ;;  %v6060_v46 = vand.u32 4294901760, %v279_v41  ;;  %v6062_v47 = vand.u32 4294901760, %v282_v42  ;;  %v285_v48 = vsel %vm274_vm0, %v233_v43, 0  ;;  %v235_v49 = vld [vmem:[%s8263_s0 + $0x28] sm:$0xff]  ;;  %s7170_s23 = smul.u32 576, %s208_s25 }
  0x32   : > { %v6068_v50 = vand.u32 4294901760, %v285_v48  ;;  %v6071_v51 = vsel %vm274_vm0, %v234_v44, 0  ;;  %v6074_v52 = vsel %vm274_vm0, %v235_v49, 0  ;;  %s6076_s18 = scalar_lea.vmem [#allocation2], %s5562_s4  ;;  %s5368_s24 = smul.u32 (%p5947_p5), 72, %s5358_s12 }
  0x33   : > { %v266_v53 = vld [vmem:[%s6076_s18 + $0xe0] sm:$0xff]  ;;  %v265_v54 = vld [vmem:[%s6076_s18 + $0xd8] sm:$0xff]  ;;  %v6082_v56 = vsub.f32 %v276_v40, %v6058_v45  ;;  %v6085_v57 = vsub.f32 %v279_v41, %v6060_v46  ;;  %v6088_v58 = vsub.f32 %v282_v42, %v6062_v47  ;;  %v6091_v59 = vand.u32 4294901760, %v6071_v51  ;;  %v256_v63 = vld [vmem:[%s6076_s18 + $0x90] sm:$0xff]  ;;  %s7199_s9 = scalar_lea.vmem [#allocation3], %s7170_s23 }
  0x34   : > { %8367 = vst [vmem:[#allocation4_spill] sm:$0xff] %v6068_v50  ;;  %v257_v55 = vld [vmem:[%s6076_s18 + $0x98] sm:$0xff]  ;;  %v6093_v60 = vand.u32 4294901760, %v266_v53  ;;  %v6095_v61 = vand.u32 4294901760, %v265_v54  ;;  %v248_v0 = vld [vmem:[%s6076_s18 + $0x50] sm:$0xff]  ;;  %v247_v1 = vld [vmem:[%s6076_s18 + $0x48] sm:$0xff]  ;;  %v6103_v2 = vsub.f32 %v285_v48, %v6068_v50  ;;  %s8113_s25 = scalar_lea.vmem (%p5947_p5), %s8265_s2, %s5368_s24 }
  0x35   : > { %8368 = vst [vmem:[#allocation5_spill] sm:$0xff] %v6082_v56  ;;  %8369 = vst [vmem:[#allocation6_spill] sm:$0xff] %v6085_v57  ;;  %v6097_v62 = vand.u32 4294901760, %v257_v55  ;;  %v6105_v3 = vand.u32 4294901760, %v256_v63  ;;  %v6107_v4 = vand.u32 4294901760, %v248_v0  ;;  %v6109_v5 = vand.u32 4294901760, %v247_v1 }
  0x36   : > { %8370 = vst [vmem:[#allocation7_spill] sm:$0xff] %v6088_v58  ;;  %8371 = vst [vmem:[#allocation8_spill] sm:$0xff] %v6091_v59  ;;  %v239_v6 = vld [vmem:[%s6076_s18 + $0x8] sm:$0xff]  ;;  %v238_v7 = vld [vmem:[%s6076_s18] sm:$0xff]  ;;  %v6114_v8 = vand.u32 4294901760, %v6082_v56  ;;  %324 = vmatprep.subr.mxu0 %v6093_v60  ;;  %v6122_v11 = vsub.f32 %v266_v53, %v6093_v60  ;;  %v6125_v12 = vsub.f32 %v265_v54, %v6095_v61  ;;  %v6137_v16 = vand.u32 4294901760, %v6085_v57 }
  0x37   : > { %8372 = vst [vmem:[#allocation9_spill] sm:$0xff] %v6103_v2  ;;  %v6117_v9 = vand.u32 4294901760, %v239_v6  ;;  %v6119_v10 = vand.u32 4294901760, %v238_v7  ;;  %326 = vmatpush1.msra.mxu0 %v6095_v61  ;;  %v6131_v14 = vsub.f32 %v257_v55, %v6097_v62  ;;  %v6134_v15 = vsub.f32 %v256_v63, %v6105_v3  ;;  %v236_v42 = vld [vmem:[%s8263_s0 + $0x30] sm:$0xff] }
  0x38   : > { %8373 = vst [vmem:[#allocation10_spill] sm:$0xff] %v6114_v8  ;;  %v375_v13 = vsub.f32 %v6082_v56, %v6114_v8  ;;  %8374 = vst [vmem:[#allocation11_spill] sm:$0xff] %v6137_v16  ;;  %328 = vmatprep.subr.mxu0 %v6097_v62  ;;  %v486_v17 = vand.u32 4294901760, %v6122_v11  ;;  %v492_v18 = vand.u32 4294901760, %v6125_v12  ;;  %v6143_v19 = vsub.f32 %v248_v0, %v6107_v4 }
  0x39   : > { %v6146_v20 = vsub.f32 %v247_v1, %v6109_v5  ;;  %330 = vmatpush1.msra.mxu0 %v6105_v3  ;;  %v498_v22 = vand.u32 4294901760, %v6131_v14  ;;  %v504_v23 = vand.u32 4294901760, %v6134_v15  ;;  %v386_v24 = vsub.f32 %v6085_v57, %v6137_v16 }
  0x3a   : > { %v6149_v21 = vand.u32 4294901760, %v375_v13  ;;  %332 = vmatprep.subr.mxu0 %v6107_v4  ;;  %v487_v25 = vsub.f32 %v6122_v11, %v486_v17  ;;  %v493_v26 = vsub.f32 %v6125_v12, %v492_v18  ;;  %v510_v27 = vand.u32 4294901760, %v6143_v19 }
  0x3b   : > { %v516_v28 = vand.u32 4294901760, %v6146_v20  ;;  %334 = vmatpush1.msra.mxu0 %v6109_v5  ;;  %v499_v29 = vsub.f32 %v6131_v14, %v498_v22  ;;  %v505_v30 = vsub.f32 %v6134_v15, %v504_v23  ;;  %v6171_v31 = vand.u32 4294901760, %v386_v24 }
  0x3c   : > { %8375 = vst [vmem:[#allocation12_spill] sm:$0xff] %v6149_v21  ;;  %v6174_v32 = vsub.f32 %v239_v6, %v6117_v9  ;;  %336 = vmatprep.subr.mxu0 %v6117_v9  ;;  %v488_v33 = vand.u32 4294901760, %v487_v25  ;;  %v494_v34 = vand.u32 4294901760, %v493_v26  ;;  %v511_v35 = vsub.f32 %v6143_v19, %v510_v27  ;;  %v237_v6 = vld [vmem:[%s8263_s0 + $0x38] sm:$0xff] }
  0x3d   : > { %8376 = vst [vmem:[#allocation13_spill] sm:$0xff] %v6171_v31  ;;  %v517_v36 = vsub.f32 %v6146_v20, %v516_v28  ;;  %338 = vmatpush1.msra.mxu0 %v6119_v10  ;;  %v500_v37 = vand.u32 4294901760, %v499_v29  ;;  %v506_v38 = vand.u32 4294901760, %v505_v30  ;;  %v6186_v41 = vsub.f32 %v238_v7, %v6119_v10 }
  0x3e   : > { %v522_v40 = vand.u32 4294901760, %v6174_v32  ;;  %377 = vmatmul.mubr.f32.vlgmr.msra.gmra.mxu0 %v6149_v21  ;;  %489 = vmatprep.subr.mxu1 %v488_v33  ;;  %v512_v43 = vand.u32 4294901760, %v511_v35  ;;  %v6193_v48 = vand.u32 4294901760, %v6088_v58  ;;  %v6196_v49 = vand.u32 4294901760, %v6103_v2 }
  0x3f   : > { %v518_v44 = vand.u32 4294901760, %v517_v36  ;;  %495 = vmatpush1.msra.mxu1 %v494_v34  ;;  %382 = vmatprep.mubr.f32.mxu0 %v8308_v39  ;;  %v528_v54 = vand.u32 4294901760, %v6186_v41  ;;  %v6205_v55 = vsub.f32 %v6071_v51, %v6091_v59  ;;  %v6208_v63 = vand.u32 4294901760, %v6074_v52 }
  0x40   : > { %8377 = vst [vmem:[#allocation14_spill] sm:$0xff] %v6193_v48  ;;  %8378 = vst [vmem:[#allocation15_spill] sm:$0xff] %v6196_v49  ;;  %v523_v53 = vsub.f32 %v6174_v32, %v522_v40  ;;  %501 = vmatprep.subr.mxu1 %v500_v37  ;;  %647 = vmatprep.subr.mxu0 %v6122_v11  ;;  %v397_v0 = vsub.f32 %v6088_v58, %v6193_v48  ;;  %v294_v1 = vsel %vm274_vm0, %v236_v42, 0 }
  0x41   : > { %8379 = vst [vmem:[#allocation16_spill] sm:$0xff] %v6205_v55  ;;  %8380 = vst [vmem:[#allocation17_spill] sm:$0xff] %v6208_v63  ;;  %507 = vmatpush1.msra.mxu1 %v506_v38  ;;  %v529_v51 = vsub.f32 %v6186_v41, %v528_v54  ;;  %650 = vmatpush1.msra.mxu0 %v6125_v12  ;;  %v408_v13 = vsub.f32 %v6103_v2, %v6196_v49  ;;  %v6227_v25 = vand.u32 4294901760, %v6205_v55 }
  0x42   : > { %v524_v7 = vand.u32 4294901760, %v523_v53  ;;  %388 = vmatmul.mubr.f32.gmra.mxu0 %v6171_v31  ;;  %513 = vmatprep.subr.mxu1 %v512_v43  ;;  %v6224_v24 = vand.u32 4294901760, %v397_v0  ;;  %v6231_v26 = vsub.f32 %v6074_v52, %v6208_v63  ;;  %v6233_v29 = vand.u32 4294901760, %v294_v1 }
  0x43   : > { %8382 = vst [vmem:[#allocation19_spill] sm:$0xff] %v6227_v25  ;;  %519 = vmatpush1.msra.mxu1 %v518_v44  ;;  %393 = vmatprep.mubr.f32.mxu0 %v8308_v39  ;;  %v530_v30 = vand.u32 4294901760, %v529_v51  ;;  %v297_v33 = vsel %vm274_vm0, %v237_v6, 0  ;;  %v6238_v34 = vand.u32 4294901760, %v408_v13  ;;  %v419_v52 = vsub.f32 %v6205_v55, %v6227_v25 }
  0x44   : > { %8381 = vst [vmem:[#allocation18_spill] sm:$0xff] %v6224_v24  ;;  %8383 = vst [vmem:[#allocation20_spill] sm:$0xff] %v6231_v26  ;;  %525 = vmatprep.subr.mxu1 %v524_v7  ;;  %653 = vmatprep.subr.mxu0 %v6131_v14  ;;  %v6246_v35 = vand.u32 4294901760, %v6231_v26  ;;  %v6249_v36 = vsub.f32 %v294_v1, %v6233_v29  ;;  %v6251_v37 = vand.u32 4294901760, %v297_v33 }
  0x45   : > { %8384 = vst [vmem:[#allocation21_spill] sm:$0xff] %v6233_v29  ;;  %531 = vmatpush1.msra.mxu1 %v530_v30  ;;  %8385 = vst [vmem:[#allocation22_spill] sm:$0xff] %v6238_v34  ;;  %656 = vmatpush1.msra.mxu0 %v6134_v15  ;;  %v6261_v38 = vand.u32 4294901760, %v419_v52 }
  0x46   : > { %399 = vmatmul.mubr.f32.gmra.mxu0 %v6224_v24  ;;  %566 = vmatmul.mubr.f32.vlgmr.msra.gmra.mxu1 %v6058_v45  ;;  %8386 = vst [vmem:[#allocation23_spill] sm:$0xff] %v6246_v35  ;;  %8387 = vst [vmem:[#allocation24_spill] sm:$0xff] %v6249_v36  ;;  %v430_v42 = vsub.f32 %v6231_v26, %v6246_v35  ;;  %v6266_v43 = vand.u32 4294901760, %v6249_v36  ;;  %v6269_v44 = vsub.f32 %v297_v33, %v6251_v37 }
  0x47   : > { %8388 = vst [vmem:[#allocation25_spill] sm:$0xff] %v6251_v37  ;;  %791 = vmatprep.subr.mxu1 %v6093_v60  ;;  %404 = vmatprep.mubr.f32.mxu0 %v8308_v39  ;;  %8389 = vst [vmem:[#allocation26_spill] sm:$0xff] %v6261_v38 }
  0x48   : > { %793 = vmatpush1.msra.mxu1 %v6095_v61  ;;  %571 = vmatprep.mubr.f32.mxu1 %v8308_v39  ;;  %8390 = vst [vmem:[#allocation27_spill] sm:$0xff] %v6266_v43  ;;  %8391 = vst [vmem:[#allocation28_spill] sm:$0xff] %v6269_v44  ;;  %v6279_v53 = vand.u32 4294901760, %v430_v42  ;;  %v441_v0 = vsub.f32 %v6249_v36, %v6266_v43  ;;  %v6284_v1 = vand.u32 4294901760, %v6269_v44 }
  0x49   : > { %795 = vmatprep.subr.mxu1 %v6097_v62  ;;  %659 = vmatprep.subr.mxu0 %v6143_v19 }
  0x4a   : > { %410 = vmatmul.mubr.f32.gmra.mxu0 %v6238_v34  ;;  %573 = vmatmul.mubr.f32.gmra.mxu1 %v6060_v46  ;;  %8392 = vst [vmem:[#allocation29_spill] sm:$0xff] %v6279_v53  ;;  %8393 = vst [vmem:[#allocation30_spill] sm:$0xff] %v6284_v1  ;;  %v6295_v6 = vand.u32 4294901760, %v441_v0  ;;  %v452_v7 = vsub.f32 %v6269_v44, %v6284_v1 }
  0x4b   : > { %415 = vmatprep.mubr.f32.mxu0 %v8308_v39  ;;  %578 = vmatprep.mubr.f32.mxu1 %v8308_v39 }
  0x4c   : > { %797 = vmatpush1.msra.mxu1 %v6105_v3  ;;  %662 = vmatpush1.msra.mxu0 %v6146_v20  ;;  %8394 = vst [vmem:[#allocation31_spill] sm:$0xff] %v6295_v6  ;;  %v6305_v11 = vand.u32 4294901760, %v452_v7 }
  0x4d   : > { %799 = vmatprep.subr.mxu1 %v6107_v4  ;;  %665 = vmatprep.subr.mxu0 %v6174_v32  ;;  %v240_v32 = vld [vmem:[%s6076_s18 + $0x10] sm:$0xff] }
  0x4e   : > { %421 = vmatmul.mubr.f32.gmra.mxu0 %v6261_v38  ;;  %580 = vmatmul.mubr.f32.gmra.mxu1 %v6062_v47  ;;  %8395 = vst [vmem:[#allocation32_spill] sm:$0xff] %v6305_v11  ;;  %v6414_v52 = vand.u32 4294901760, %v240_v32 }
  0x4f   : > { %426 = vmatprep.mubr.f32.mxu0 %v8308_v39  ;;  %585 = vmatprep.mubr.f32.mxu1 %v8308_v39 }
  0x50   : > { %801 = vmatpush1.msra.mxu1 %v6109_v5  ;;  %668 = vmatpush1.msra.mxu0 %v6186_v41 }
  0x51   : > { %803 = vmatprep.subr.mxu1 %v6117_v9  ;;  %938 = vmatprep.subr.mxu0 %v486_v17  ;;  %v268_v17 = vld [vmem:[%s6076_s18 + $0xf0] sm:$0xff] }
  0x52   : > { %432 = vmatmul.mubr.f32.gmra.mxu0 %v6279_v53  ;;  %587 = vmatmul.mubr.f32.gmra.mxu1 %v6068_v50 }
  0x53   : > { %437 = vmatprep.mubr.f32.mxu0 %v8308_v39  ;;  %592 = vmatprep.mubr.f32.mxu1 %v8308_v39 }
  0x54   : > { %805 = vmatpush1.msra.mxu1 %v6119_v10 }
  0x55   : > { %1081 = vmatprep.subr.mxu1 %v6093_v60  ;;  %v6320_v60 = vand.u32 4294901760, %v268_v17 }
  0x56   : > { %443 = vmatmul.mubr.f32.gmra.mxu0 %v6295_v6  ;;  %594 = vmatmul.mubr.f32.gmra.mxu1 %v6091_v59 }
  0x57   : > { %448 = vmatprep.mubr.f32.mxu0 %v8308_v39  ;;  %599 = vmatprep.mubr.f32.mxu1 %v8308_v39  ;;  %v6331_v51 = vsub.f32 %v268_v17, %v6320_v60 }
  0x59   : > { %v1372_v12 = vand.u32 4294901760, %v6331_v51 }
  0x5a   : > { %454 = vmatmul.mubr.f32.gmra.mxu0 %v6305_v11  ;;  %601 = vmatmul.mubr.f32.gmra.mxu1 %v6208_v63 }
  0x5b   : > { %606 = vmatprep.mubr.f32.mxu1 %v8308_v39  ;;  %701 = vmatprep.mubr.f32.mxu0 %v8308_v39 }
  0x5e   : > { %608 = vmatmul.mubr.f32.gmra.mxu1 %v6233_v29  ;;  %704 = vmatmul.mubr.f32.vlgmr.msra.gmra.mxu0 %v6082_v56 }
  0x5f   : > { %613 = vmatprep.mubr.f32.mxu1 %v8308_v39  ;;  %709 = vmatprep.mubr.f32.mxu0 %v8308_v39 }
  0x60   : > { %942 = vmatpush1.msra.mxu0 %v492_v18  ;;  %v249_v18 = vld [vmem:[%s6076_s18 + $0x58] sm:$0xff] }
  0x61   : > { %946 = vmatprep.subr.mxu0 %v498_v22 }
  0x62   : > { %615 = vmatmul.mubr.f32.gmra.mxu1 %v6251_v37  ;;  %712 = vmatmul.mubr.f32.gmra.mxu0 %v6085_v57 }
  0x63   : > { %717 = vmatprep.mubr.f32.mxu0 %v8308_v39  ;;  %838 = vmatprep.mubr.f32.mxu1 %v8308_v39 }
  0x64   : > { %950 = vmatpush1.msra.mxu0 %v504_v23 }
  0x65   : > { %954 = vmatprep.subr.mxu0 %v510_v27  ;;  %v6395_v27 = vand.u32 4294901760, %v249_v18 }
  0x66   : > { %720 = vmatmul.mubr.f32.gmra.mxu0 %v6088_v58  ;;  %842 = vmatmul.mubr.f32.vlgmr.msra.gmra.mxu1 %v6114_v8 }
  0x67   : > { %1083 = vmatpush1.msra.mxu1 %v6095_v61  ;;  %725 = vmatprep.mubr.f32.mxu0 %v8308_v39  ;;  %v1373_v61 = vsub.f32 %v6331_v51, %v1372_v12  ;;  %v6412_v33 = vsub.f32 %v249_v18, %v6395_v27 }
  0x68   : > { %847 = vmatprep.mubr.f32.mxu1 %v8308_v39  ;;  %1085 = vmatprep.subr.mxu1 %v6097_v62  ;;  %v267_v62 = vld [vmem:[%s6076_s18 + $0xe8] sm:$0xff] }
  0x69   : > { %1087 = vmatpush1.msra.mxu1 %v6105_v3  ;;  %958 = vmatpush1.msra.mxu0 %v516_v28  ;;  %v1374_v3 = vand.u32 4294901760, %v1373_v61  ;;  %v6372_v14 = vand.u32 4294901760, %v267_v62  ;;  %v241_v28 = vld [vmem:[%s6076_s18 + $0x18] sm:$0xff] }
  0x6a   : > { %728 = vmatmul.mubr.f32.gmra.mxu0 %v6103_v2  ;;  %851 = vmatmul.mubr.f32.gmra.mxu1 %v6137_v16  ;;  %v6408_v13 = vand.u32 4294901760, %v241_v28 }
  0x6b   : > { %733 = vmatprep.mubr.f32.mxu0 %v8308_v39  ;;  %856 = vmatprep.mubr.f32.mxu1 %v8308_v39  ;;  %v6385_v19 = vsub.f32 %v267_v62, %v6372_v14  ;;  %v8267_v62 = vand.u32 4294901760, %v6412_v33 }
  0x6c   : > { %1089 = vmatprep.subr.mxu1 %v6107_v4  ;;  %962 = vmatprep.subr.mxu0 %v522_v40  ;;  %v259_v4 = vld [vmem:[%s6076_s18 + $0xa8] sm:$0xff]  ;;  %v6429_v17 = vsub.f32 %v241_v28, %v6408_v13 }
  0x6d   : > { %1091 = vmatpush1.msra.mxu1 %v6109_v5  ;;  %966 = vmatpush1.msra.mxu0 %v528_v54  ;;  %v258_v5 = vld [vmem:[%s6076_s18 + $0xa0] sm:$0xff]  ;;  %v1378_v40 = vand.u32 4294901760, %v6385_v19 }
  0x6e   : > { %736 = vmatmul.mubr.f32.gmra.mxu0 %v6205_v55  ;;  %860 = vmatmul.mubr.f32.gmra.mxu1 %v6193_v48  ;;  %v6376_v15 = vand.u32 4294901760, %v258_v5  ;;  %v1408_v18 = vand.u32 4294901760, %v6429_v17 }
  0x6f   : > { %741 = vmatprep.mubr.f32.mxu0 %v8308_v39  ;;  %865 = vmatprep.mubr.f32.mxu1 %v8308_v39  ;;  %v1379_v42 = vsub.f32 %v6385_v19, %v1378_v40 }
  0x70   : > { %1093 = vmatprep.subr.mxu1 %v6117_v9  ;;  %1210 = vmatprep.subr.mxu0 %v6320_v60  ;;  %v6374_v9 = vand.u32 4294901760, %v259_v4  ;;  %v6393_v23 = vsub.f32 %v258_v5, %v6376_v15 }
  0x71   : > { %1095 = vmatpush1.msra.mxu1 %v6119_v10  ;;  %v250_v10 = vld [vmem:[%s6076_s18 + $0x60] sm:$0xff] }
  0x72   : > { %744 = vmatmul.mubr.f32.gmra.mxu0 %v6231_v26  ;;  %869 = vmatmul.mubr.f32.gmra.mxu1 %v6196_v49  ;;  %v6388_v20 = vsub.f32 %v259_v4, %v6374_v9  ;;  %v6390_v22 = vand.u32 4294901760, %v250_v10  ;;  %v8266_v30 = vand.u32 4294901760, %v6393_v23  ;;  %v1380_v4 = vand.u32 4294901760, %v1379_v42 }
  0x73   : > { %749 = vmatprep.mubr.f32.mxu0 %v8308_v39  ;;  %874 = vmatprep.mubr.f32.mxu1 %v8308_v39 }
  0x74   : > { %1375 = vmatprep.subr.mxu1 %v1374_v3  ;;  %v1384_v41 = vand.u32 4294901760, %v6388_v20  ;;  %v6406_v54 = vsub.f32 %v250_v10, %v6390_v22  ;;  %v1391_v61 = vsub.f32 %v6393_v23, %v8266_v30  ;;  %v6437_v3 = vsub.f32 %v240_v32, %v6414_v52 }
  0x75   : > { %v1403_v32 = vsub.f32 %v6412_v33, %v8267_v62 }
  0x76   : > { %752 = vmatmul.mubr.f32.gmra.mxu0 %v6249_v36  ;;  %878 = vmatmul.mubr.f32.gmra.mxu1 %v6227_v25  ;;  %v1385_v0 = vsub.f32 %v6388_v20, %v1384_v41  ;;  %v1396_v7 = vand.u32 4294901760, %v6406_v54  ;;  %v1392_v28 = vand.u32 4294901760, %v1391_v61  ;;  %v1414_v30 = vand.u32 4294901760, %v6437_v3 }
  0x77   : > { %757 = vmatprep.mubr.f32.mxu0 %v8308_v39  ;;  %883 = vmatprep.mubr.f32.mxu1 %v8308_v39  ;;  %v1404_v61 = vand.u32 4294901760, %v1403_v32 }
  0x78   : > { %v1386_v5 = vand.u32 4294901760, %v1385_v0  ;;  %v1397_v10 = vsub.f32 %v6406_v54, %v1396_v7  ;;  %v1409_v0 = vsub.f32 %v6429_v17, %v1408_v18  ;;  %v1415_v62 = vsub.f32 %v6437_v3, %v1414_v30 }
  0x7a   : > { %760 = vmatmul.mubr.f32.gmra.mxu0 %v6269_v44  ;;  %887 = vmatmul.mubr.f32.gmra.mxu1 %v6246_v35  ;;  %v1398_v42 = vand.u32 4294901760, %v1397_v10  ;;  %v242_v10 = vld [vmem:[%s6076_s18 + $0x20] sm:$0xff] }
  0x7b   : > { %892 = vmatprep.mubr.f32.mxu1 %v8308_v39  ;;  %999 = vmatprep.mubr.f32.mxu0 %v8308_v39 }
  0x7e   : > { %896 = vmatmul.mubr.f32.gmra.mxu1 %v6266_v43  ;;  %1001 = vmatmul.mubr.f32.vlgmr.msra.gmra.mxu0 %v6058_v45 }
  0x7f   : > { %901 = vmatprep.mubr.f32.mxu1 %v8308_v39  ;;  %1006 = vmatprep.mubr.f32.mxu0 %v8308_v39 }
  0x80   : > { %1212 = vmatpush1.msra.mxu0 %v6372_v14 }
  0x81   : > { %1214 = vmatprep.subr.mxu0 %v6374_v9 }
  0x82   : > { %905 = vmatmul.mubr.f32.gmra.mxu1 %v6284_v1  ;;  %1008 = vmatmul.mubr.f32.gmra.mxu0 %v6060_v46 }
  0x83   : > { %1013 = vmatprep.mubr.f32.mxu0 %v8308_v39  ;;  %1128 = vmatprep.mubr.f32.mxu1 %v8308_v39 }
  0x84   : > { %1216 = vmatpush1.msra.mxu0 %v6376_v15 }
  0x85   : > { %1218 = vmatprep.subr.mxu0 %v6390_v22 }
  0x86   : > { %1015 = vmatmul.mubr.f32.gmra.mxu0 %v6062_v47  ;;  %1130 = vmatmul.mubr.f32.vlgmr.msra.gmra.mxu1 %v6058_v45 }
  0x87   : > { %1381 = vmatpush1.msra.mxu1 %v1380_v4  ;;  %1020 = vmatprep.mubr.f32.mxu0 %v8308_v39  ;;  %v1410_v4 = vand.u32 4294901760, %v1409_v0 }
  0x88   : > { %1135 = vmatprep.mubr.f32.mxu1 %v8308_v39  ;;  %1387 = vmatprep.subr.mxu1 %v1386_v5  ;;  %v1416_v5 = vand.u32 4294901760, %v1415_v62 }
  0x89   : > { %1393 = vmatpush1.msra.mxu1 %v1392_v28  ;;  %1220 = vmatpush1.msra.mxu0 %v6395_v27 }
  0x8a   : > { %1022 = vmatmul.mubr.f32.gmra.mxu0 %v6068_v50  ;;  %1137 = vmatmul.mubr.f32.gmra.mxu1 %v6060_v46 }
  0x8b   : > { %1027 = vmatprep.mubr.f32.mxu0 %v8308_v39  ;;  %1142 = vmatprep.mubr.f32.mxu1 %v8308_v39 }
  0x8c   : > { %1399 = vmatprep.subr.mxu1 %v1398_v42  ;;  %1222 = vmatprep.subr.mxu0 %v6408_v13 }
  0x8d   : > { %1405 = vmatpush1.msra.mxu1 %v1404_v61  ;;  %1224 = vmatpush1.msra.mxu0 %v6414_v52 }
  0x8e   : > { %1029 = vmatmul.mubr.f32.gmra.mxu0 %v6091_v59  ;;  %1144 = vmatmul.mubr.f32.gmra.mxu1 %v6062_v47 }
  0x8f   : > { %1034 = vmatprep.mubr.f32.mxu0 %v8308_v39  ;;  %1149 = vmatprep.mubr.f32.mxu1 %v8308_v39 }
  0x90   : > { %1411 = vmatprep.subr.mxu1 %v1410_v4  ;;  %1533 = vmatprep.subr.mxu0 %v6331_v51  ;;  %v270_v51 = vld [vmem:[%s6076_s18 + $0x100] sm:$0xff]  ;;  %v6638_v4 = vand.u32 4294901760, %v242_v10 }
  0x91   : > { %1417 = vmatpush1.msra.mxu1 %v1416_v5 }
  0x92   : > { %1036 = vmatmul.mubr.f32.gmra.mxu0 %v6208_v63  ;;  %1151 = vmatmul.mubr.f32.gmra.mxu1 %v6068_v50 }
  0x93   : > { %1041 = vmatprep.mubr.f32.mxu0 %v8308_v39  ;;  %1156 = vmatprep.mubr.f32.mxu1 %v8308_v39 }
  0x94   : > { %1677 = vmatprep.subr.mxu1 %v6320_v60 }
  0x96   : > { %1043 = vmatmul.mubr.f32.gmra.mxu0 %v6233_v29  ;;  %1158 = vmatmul.mubr.f32.gmra.mxu1 %v6091_v59 }
  0x97   : > { %1048 = vmatprep.mubr.f32.mxu0 %v8308_v39  ;;  %1163 = vmatprep.mubr.f32.mxu1 %v8308_v39 }
  0x9a   : > { %1050 = vmatmul.mubr.f32.gmra.mxu0 %v6251_v37  ;;  %1165 = vmatmul.mubr.f32.gmra.mxu1 %v6208_v63 }
  0x9b   : > { %1170 = vmatprep.mubr.f32.mxu1 %v8308_v39  ;;  %1257 = vmatprep.mubr.f32.mxu0 %v8308_v39 }
  0x9e   : > { %1172 = vmatmul.mubr.f32.gmra.mxu1 %v6233_v29  ;;  %1263 = vmatmul.mubr.f32.vlgmr.msra.gmra.mxu0 %v6149_v21 }
  0x9f   : > { %1177 = vmatprep.mubr.f32.mxu1 %v8308_v39  ;;  %1268 = vmatprep.mubr.f32.mxu0 %v8308_v39 }
  0xa0   : > { %1536 = vmatpush1.msra.mxu0 %v6385_v19 }
  0xa1   : > { %1539 = vmatprep.subr.mxu0 %v6388_v20  ;;  %v8397_v20 = vand.u32 4294901760, %v6412_v33 }
  0xa2   : > { %1179 = vmatmul.mubr.f32.gmra.mxu1 %v6251_v37  ;;  %1274 = vmatmul.mubr.f32.gmra.mxu0 %v6171_v31 }
  0xa3   : > { %1279 = vmatprep.mubr.f32.mxu0 %v8308_v39  ;;  %1450 = vmatprep.mubr.f32.mxu1 %v8308_v39 }
  0xa4   : > { %1542 = vmatpush1.msra.mxu0 %v6393_v23 }
  0xa5   : > { %1545 = vmatprep.subr.mxu0 %v6406_v54  ;;  %v252_v54 = vld [vmem:[%s6076_s18 + $0x70] sm:$0xff] }
  0xa6   : > { %1285 = vmatmul.mubr.f32.gmra.mxu0 %v6224_v24  ;;  %1452 = vmatmul.mubr.f32.vlgmr.msra.gmra.mxu1 %v6058_v45 }
  0xa7   : > { %1679 = vmatpush1.msra.mxu1 %v6372_v14  ;;  %1290 = vmatprep.mubr.f32.mxu0 %v8308_v39 }
  0xa8   : > { %1457 = vmatprep.mubr.f32.mxu1 %v8308_v39  ;;  %1681 = vmatprep.subr.mxu1 %v6374_v9 }
  0xa9   : > { %1683 = vmatpush1.msra.mxu1 %v6376_v15  ;;  %1548 = vmatpush1.msra.mxu0 %v6412_v33 }
  0xaa   : > { %1296 = vmatmul.mubr.f32.gmra.mxu0 %v6238_v34  ;;  %1459 = vmatmul.mubr.f32.gmra.mxu1 %v6060_v46 }
  0xab   : > { %1301 = vmatprep.mubr.f32.mxu0 %v8308_v39  ;;  %1464 = vmatprep.mubr.f32.mxu1 %v8308_v39 }
  0xac   : > { %1685 = vmatprep.subr.mxu1 %v6390_v22  ;;  %1551 = vmatprep.subr.mxu0 %v6429_v17 }
  0xad   : > { %1687 = vmatpush1.msra.mxu1 %v6395_v27  ;;  %1554 = vmatpush1.msra.mxu0 %v6437_v3  ;;  %v243_v3 = vld [vmem:[%s6076_s18 + $0x28] sm:$0xff] }
  0xae   : > { %1307 = vmatmul.mubr.f32.gmra.mxu0 %v6261_v38  ;;  %1466 = vmatmul.mubr.f32.gmra.mxu1 %v6062_v47  ;;  %v6632_v42 = vand.u32 4294901760, %v243_v3 }
  0xaf   : > { %1312 = vmatprep.mubr.f32.mxu0 %v8308_v39  ;;  %1471 = vmatprep.mubr.f32.mxu1 %v8308_v39 }
  0xb0   : > { %1689 = vmatprep.subr.mxu1 %v6408_v13  ;;  %1824 = vmatprep.subr.mxu0 %v1372_v12  ;;  %v8396_v12 = vand.u32 4294901760, %v6393_v23  ;;  %v260_v23 = vld [vmem:[%s6076_s18 + $0xb0] sm:$0xff] }
  0xb1   : > { %1691 = vmatpush1.msra.mxu1 %v6414_v52 }
  0xb2   : > { %1318 = vmatmul.mubr.f32.gmra.mxu0 %v6279_v53  ;;  %1473 = vmatmul.mubr.f32.gmra.mxu1 %v6068_v50 }
  0xb3   : > { %1323 = vmatprep.mubr.f32.mxu0 %v8308_v39  ;;  %1478 = vmatprep.mubr.f32.mxu1 %v8308_v39 }
  0xb4   : > { %1967 = vmatprep.subr.mxu1 %v6320_v60  ;;  %v6544_v60 = vand.u32 4294901760, %v270_v51 }
  0xb6   : > { %1329 = vmatmul.mubr.f32.gmra.mxu0 %v6295_v6  ;;  %1480 = vmatmul.mubr.f32.gmra.mxu1 %v6091_v59  ;;  %v6555_v62 = vsub.f32 %v270_v51, %v6544_v60 }
  0xb7   : > { %1334 = vmatprep.mubr.f32.mxu0 %v8308_v39  ;;  %1485 = vmatprep.mubr.f32.mxu1 %v8308_v39 }
  0xb8   : > { %v8275_v19 = vand.u32 4294901760, %v6555_v62 }
  0xba   : > { %1340 = vmatmul.mubr.f32.gmra.mxu0 %v6305_v11  ;;  %1487 = vmatmul.mubr.f32.gmra.mxu1 %v6208_v63 }
  0xbb   : > { %1492 = vmatprep.mubr.f32.mxu1 %v8308_v39  ;;  %1587 = vmatprep.mubr.f32.mxu0 %v8308_v39 }
  0xbe   : > { %1494 = vmatmul.mubr.f32.gmra.mxu1 %v6233_v29  ;;  %1590 = vmatmul.mubr.f32.vlgmr.msra.gmra.mxu0 %v6082_v56 }
  0xbf   : > { %1499 = vmatprep.mubr.f32.mxu1 %v8308_v39  ;;  %1595 = vmatprep.mubr.f32.mxu0 %v8308_v39 }
  0xc0   : > { %1828 = vmatpush1.msra.mxu0 %v1378_v40 }
  0xc1   : > { %1832 = vmatprep.subr.mxu0 %v1384_v41  ;;  %v6600_v41 = vand.u32 4294901760, %v260_v23 }
  0xc2   : > { %1501 = vmatmul.mubr.f32.gmra.mxu1 %v6251_v37  ;;  %1598 = vmatmul.mubr.f32.gmra.mxu0 %v6085_v57 }
  0xc3   : > { %1603 = vmatprep.mubr.f32.mxu0 %v8308_v39  ;;  %1724 = vmatprep.mubr.f32.mxu1 %v8308_v39 }
  0xc4   : > { %1836 = vmatpush1.msra.mxu0 %v8396_v12 }
  0xc5   : > { %1840 = vmatprep.subr.mxu0 %v1396_v7  ;;  %v6617_v7 = vsub.f32 %v260_v23, %v6600_v41 }
  0xc6   : > { %1606 = vmatmul.mubr.f32.gmra.mxu0 %v6088_v58  ;;  %1728 = vmatmul.mubr.f32.vlgmr.msra.gmra.mxu1 %v6114_v8 }
  0xc7   : > { %1969 = vmatpush1.msra.mxu1 %v6372_v14  ;;  %1611 = vmatprep.mubr.f32.mxu0 %v8308_v39  ;;  %v2259_v14 = vsub.f32 %v6555_v62, %v8275_v19  ;;  %v8268_v0 = vand.u32 4294901760, %v6617_v7 }
  0xc8   : > { %1733 = vmatprep.mubr.f32.mxu1 %v8308_v39  ;;  %1971 = vmatprep.subr.mxu1 %v6374_v9  ;;  %v269_v9 = vld [vmem:[%s6076_s18 + $0xf8] sm:$0xff] }
  0xc9   : > { %1973 = vmatpush1.msra.mxu1 %v6376_v15  ;;  %1844 = vmatpush1.msra.mxu0 %v8397_v20  ;;  %v2260_v15 = vand.u32 4294901760, %v2259_v14  ;;  %v6653_v20 = vsub.f32 %v243_v3, %v6632_v42  ;;  %v2277_v14 = vsub.f32 %v6617_v7, %v8268_v0 }
  0xca   : > { %1614 = vmatmul.mubr.f32.gmra.mxu0 %v6103_v2  ;;  %1737 = vmatmul.mubr.f32.gmra.mxu1 %v6137_v16 }
  0xcb   : > { %1619 = vmatprep.mubr.f32.mxu0 %v8308_v39  ;;  %1742 = vmatprep.mubr.f32.mxu1 %v8308_v39  ;;  %v2278_v3 = vand.u32 4294901760, %v2277_v14 }
  0xcc   : > { %1975 = vmatprep.subr.mxu1 %v6390_v22  ;;  %1848 = vmatprep.subr.mxu0 %v1408_v18  ;;  %v261_v22 = vld [vmem:[%s6076_s18 + $0xb8] sm:$0xff] }
  0xcd   : > { %1977 = vmatpush1.msra.mxu1 %v6395_v27  ;;  %1852 = vmatpush1.msra.mxu0 %v1414_v30  ;;  %v6596_v27 = vand.u32 4294901760, %v269_v9  ;;  %v6598_v40 = vand.u32 4294901760, %v261_v22 }
  0xce   : > { %1622 = vmatmul.mubr.f32.gmra.mxu0 %v6205_v55  ;;  %1746 = vmatmul.mubr.f32.gmra.mxu1 %v6193_v48 }
  0xcf   : > { %1627 = vmatprep.mubr.f32.mxu0 %v8308_v39  ;;  %1751 = vmatprep.mubr.f32.mxu1 %v8308_v39  ;;  %v6609_v30 = vsub.f32 %v269_v9, %v6596_v27  ;;  %v6612_v33 = vsub.f32 %v261_v22, %v6598_v40 }
  0xd0   : > { %1979 = vmatprep.subr.mxu1 %v6408_v13  ;;  %2096 = vmatprep.subr.mxu0 %v6544_v60  ;;  %v251_v13 = vld [vmem:[%s6076_s18 + $0x68] sm:$0xff] }
  0xd1   : > { %1981 = vmatpush1.msra.mxu1 %v6414_v52  ;;  %v6614_v52 = vand.u32 4294901760, %v252_v54  ;;  %v6619_v17 = vand.u32 4294901760, %v251_v13  ;;  %v8274_v18 = vand.u32 4294901760, %v6609_v30  ;;  %v8273_v28 = vand.u32 4294901760, %v6612_v33 }
  0xd2   : > { %1630 = vmatmul.mubr.f32.gmra.mxu0 %v6231_v26  ;;  %1755 = vmatmul.mubr.f32.gmra.mxu1 %v6196_v49 }
  0xd3   : > { %1635 = vmatprep.mubr.f32.mxu0 %v8308_v39  ;;  %1760 = vmatprep.mubr.f32.mxu1 %v8308_v39  ;;  %v6630_v32 = vsub.f32 %v252_v54, %v6614_v52  ;;  %v6636_v61 = vsub.f32 %v251_v13, %v6619_v17  ;;  %v2265_v5 = vsub.f32 %v6609_v30, %v8274_v18  ;;  %v8271_v13 = vand.u32 4294901760, %v6653_v20 }
  0xd4   : > { %2261 = vmatprep.subr.mxu1 %v2260_v15  ;;  %v2271_v51 = vsub.f32 %v6612_v33, %v8273_v28  ;;  %v6661_v15 = vsub.f32 %v242_v10, %v6638_v4 }
  0xd5   : > { %v8272_v12 = vand.u32 4294901760, %v6630_v32  ;;  %v8269_v9 = vand.u32 4294901760, %v6636_v61  ;;  %v2266_v22 = vand.u32 4294901760, %v2265_v5 }
  0xd6   : > { %1638 = vmatmul.mubr.f32.gmra.mxu0 %v6249_v36  ;;  %1764 = vmatmul.mubr.f32.gmra.mxu1 %v6227_v25  ;;  %v2272_v23 = vand.u32 4294901760, %v2271_v51  ;;  %v8270_v0 = vand.u32 4294901760, %v6661_v15  ;;  %v2295_v51 = vsub.f32 %v6653_v20, %v8271_v13 }
  0xd7   : > { %1643 = vmatprep.mubr.f32.mxu0 %v8308_v39  ;;  %1769 = vmatprep.mubr.f32.mxu1 %v8308_v39  ;;  %v2283_v54 = vsub.f32 %v6630_v32, %v8272_v12  ;;  %v2289_v10 = vsub.f32 %v6636_v61, %v8269_v9 }
  0xd8   : > { %v2301_v9 = vsub.f32 %v6661_v15, %v8270_v0 }
  0xd9   : > { %v2284_v5 = vand.u32 4294901760, %v2283_v54  ;;  %v2290_v14 = vand.u32 4294901760, %v2289_v10 }
  0xda   : > { %1646 = vmatmul.mubr.f32.gmra.mxu0 %v6269_v44  ;;  %1773 = vmatmul.mubr.f32.gmra.mxu1 %v6246_v35 }
  0xdb   : > { %1778 = vmatprep.mubr.f32.mxu1 %v8308_v39  ;;  %1885 = vmatprep.mubr.f32.mxu0 %v8308_v39 }
  0xde   : > { %1782 = vmatmul.mubr.f32.gmra.mxu1 %v6266_v43  ;;  %1887 = vmatmul.mubr.f32.vlgmr.msra.gmra.mxu0 %v6058_v45 }
  0xdf   : > { %1787 = vmatprep.mubr.f32.mxu1 %v8308_v39  ;;  %1892 = vmatprep.mubr.f32.mxu0 %v8308_v39 }
  0xe0   : > { %2098 = vmatpush1.msra.mxu0 %v6596_v27 }
  0xe1   : > { %2100 = vmatprep.subr.mxu0 %v6598_v40 }
  0xe2   : > { %1791 = vmatmul.mubr.f32.gmra.mxu1 %v6284_v1  ;;  %1894 = vmatmul.mubr.f32.gmra.mxu0 %v6060_v46 }
  0xe3   : > { %1899 = vmatprep.mubr.f32.mxu0 %v8308_v39  ;;  %2014 = vmatprep.mubr.f32.mxu1 %v8308_v39 }
  0xe4   : > { %2102 = vmatpush1.msra.mxu0 %v6600_v41 }
  0xe5   : > { %2104 = vmatprep.subr.mxu0 %v6614_v52 }
  0xe6   : > { %1901 = vmatmul.mubr.f32.gmra.mxu0 %v6062_v47  ;;  %2016 = vmatmul.mubr.f32.vlgmr.msra.gmra.mxu1 %v6058_v45 }
  0xe7   : > { %2267 = vmatpush1.msra.mxu1 %v2266_v22  ;;  %1906 = vmatprep.mubr.f32.mxu0 %v8308_v39  ;;  %v2296_v22 = vand.u32 4294901760, %v2295_v51 }
  0xe8   : > { %2021 = vmatprep.mubr.f32.mxu1 %v8308_v39  ;;  %2273 = vmatprep.subr.mxu1 %v2272_v23  ;;  %v2302_v23 = vand.u32 4294901760, %v2301_v9 }
  0xe9   : > { %2279 = vmatpush1.msra.mxu1 %v2278_v3  ;;  %2106 = vmatpush1.msra.mxu0 %v6619_v17 }
  0xea   : > { %1908 = vmatmul.mubr.f32.gmra.mxu0 %v6068_v50  ;;  %2023 = vmatmul.mubr.f32.gmra.mxu1 %v6060_v46 }
  0xeb   : > { %1913 = vmatprep.mubr.f32.mxu0 %v8308_v39  ;;  %2028 = vmatprep.mubr.f32.mxu1 %v8308_v39 }
  0xec   : > { %2285 = vmatprep.subr.mxu1 %v2284_v5  ;;  %2108 = vmatprep.subr.mxu0 %v6632_v42 }
  0xed   : > { %2291 = vmatpush1.msra.mxu1 %v2290_v14  ;;  %2110 = vmatpush1.msra.mxu0 %v6638_v4 }
  0xee   : > { %1915 = vmatmul.mubr.f32.gmra.mxu0 %v6091_v59  ;;  %2030 = vmatmul.mubr.f32.gmra.mxu1 %v6062_v47 }
  0xef   : > { %1920 = vmatprep.mubr.f32.mxu0 %v8308_v39  ;;  %2035 = vmatprep.mubr.f32.mxu1 %v8308_v39 }
  0xf0   : > { %2297 = vmatprep.subr.mxu1 %v2296_v22  ;;  %2419 = vmatprep.subr.mxu0 %v6555_v62 }
  0xf1   : > { %2303 = vmatpush1.msra.mxu1 %v2302_v23 }
  0xf2   : > { %1922 = vmatmul.mubr.f32.gmra.mxu0 %v6208_v63  ;;  %2037 = vmatmul.mubr.f32.gmra.mxu1 %v6068_v50 }
  0xf3   : > { %1927 = vmatprep.mubr.f32.mxu0 %v8308_v39  ;;  %2042 = vmatprep.mubr.f32.mxu1 %v8308_v39 }
  0xf4   : > { %2563 = vmatprep.subr.mxu1 %v6544_v60 }
  0xf6   : > { %1929 = vmatmul.mubr.f32.gmra.mxu0 %v6233_v29  ;;  %2044 = vmatmul.mubr.f32.gmra.mxu1 %v6091_v59 }
  0xf7   : > { %1934 = vmatprep.mubr.f32.mxu0 %v8308_v39  ;;  %2049 = vmatprep.mubr.f32.mxu1 %v8308_v39 }
  0xfa   : > { %1936 = vmatmul.mubr.f32.gmra.mxu0 %v6251_v37  ;;  %2051 = vmatmul.mubr.f32.gmra.mxu1 %v6208_v63 }
  0xfb   : > { %2056 = vmatprep.mubr.f32.mxu1 %v8308_v39  ;;  %2143 = vmatprep.mubr.f32.mxu0 %v8308_v39 }
  0xfe   : > { %v6712_v9 = vpop.f32.mrf.mxu0  ;;  %2058 = vmatmul.mubr.f32.gmra.mxu1 %v6233_v29  ;;  %2149 = vmatmul.mubr.f32.vlgmr.msra.gmra.mxu0 %v6149_v21 }
  0xff   : > { %2063 = vmatprep.mubr.f32.mxu1 %v8308_v39  ;;  %2154 = vmatprep.mubr.f32.mxu0 %v8308_v39 }
 0x100   : > { %v6718_v54 = vpop.f32.mrf.mxu0  ;;  %2422 = vmatpush1.msra.mxu0 %v6609_v30 }
 0x101   : > { %2425 = vmatprep.subr.mxu0 %v6612_v33 }
 0x102   : > { %v6722_v3 = vpop.f32.mrf.mxu0  ;;  %2065 = vmatmul.mubr.f32.gmra.mxu1 %v6251_v37  ;;  %2160 = vmatmul.mubr.f32.gmra.mxu0 %v6171_v31 }
 0x103   : > { %2165 = vmatprep.mubr.f32.mxu0 %v8308_v39  ;;  %2336 = vmatprep.mubr.f32.mxu1 %v8308_v39 }
 0x104   : > { %v6728_v10 = vpop.f32.mrf.mxu0  ;;  %2428 = vmatpush1.msra.mxu0 %v6617_v7 }
 0x105   : > { %2431 = vmatprep.subr.mxu0 %v6630_v32 }
 0x106   : > { %v6732_v5 = vpop.f32.mrf.mxu0  ;;  %v6734_v51 = vpop.f32.mrf.mxu1  ;;  %2171 = vmatmul.mubr.f32.gmra.mxu0 %v6224_v24  ;;  %2338 = vmatmul.mubr.f32.vlgmr.msra.gmra.mxu1 %v6058_v45  ;;  %v8399_v24 = vand.u32 4294901760, %v6555_v62 }
 0x107   : > { %2565 = vmatpush1.msra.mxu1 %v6596_v27  ;;  %2176 = vmatprep.mubr.f32.mxu0 %v8308_v39 }
 0x108   : > { %v6740_v14 = vpop.f32.mrf.mxu0  ;;  %v6742_v22 = vpop.f32.mrf.mxu1  ;;  %2343 = vmatprep.mubr.f32.mxu1 %v8308_v39  ;;  %2567 = vmatprep.subr.mxu1 %v6598_v40 }
 0x109   : > { %2569 = vmatpush1.msra.mxu1 %v6600_v41  ;;  %2434 = vmatpush1.msra.mxu0 %v6636_v61 }
 0x10a   : > { %v6748_v23 = vpop.f32.mrf.mxu0  ;;  %v6750_v0 = vpop.f32.mrf.mxu1  ;;  %2182 = vmatmul.mubr.f32.gmra.mxu0 %v6238_v34  ;;  %2345 = vmatmul.mubr.f32.gmra.mxu1 %v6060_v46 }
 0x10b   : > { %2187 = vmatprep.mubr.f32.mxu0 %v8308_v39  ;;  %2350 = vmatprep.mubr.f32.mxu1 %v8308_v39 }
 0x10c   : > { %v6756_v13 = vpop.f32.mrf.mxu0  ;;  %v6758_v12 = vpop.f32.mrf.mxu1  ;;  %2571 = vmatprep.subr.mxu1 %v6614_v52  ;;  %2437 = vmatprep.subr.mxu0 %v6653_v20 }
 0x10d   : > { %2573 = vmatpush1.msra.mxu1 %v6619_v17  ;;  %2440 = vmatpush1.msra.mxu0 %v6661_v15 }
 0x10e   : > { %v6764_v28 = vpop.f32.mrf.mxu0  ;;  %v6766_v18 = vpop.f32.mrf.mxu1  ;;  %2193 = vmatmul.mubr.f32.gmra.mxu0 %v6261_v38  ;;  %2352 = vmatmul.mubr.f32.gmra.mxu1 %v6062_v47 }
 0x10f   : > { %2198 = vmatprep.mubr.f32.mxu0 %v8308_v39  ;;  %2357 = vmatprep.mubr.f32.mxu1 %v8308_v39 }
 0x110   : > { %v6772_v19 = vpop.f32.mrf.mxu0  ;;  %v6774_v34 = vpop.f32.mrf.mxu1  ;;  %2575 = vmatprep.subr.mxu1 %v6632_v42  ;;  %2710 = vmatprep.subr.mxu0 %v8399_v24 }
 0x111   : > { %8398 = vst [vmem:[#allocation33_spill] sm:$0xff] %v6772_v19  ;;  %2577 = vmatpush1.msra.mxu1 %v6638_v4 }
 0x112   : > { %v6780_v31 = vpop.f32.mrf.mxu0  ;;  %v6782_v38 = vpop.f32.mrf.mxu1  ;;  %2204 = vmatmul.mubr.f32.gmra.mxu0 %v6279_v53  ;;  %2359 = vmatmul.mubr.f32.gmra.mxu1 %v6068_v50 }
 0x113   : > { %8400 = vst [vmem:[#allocation34_spill] sm:$0xff] %v6780_v31  ;;  %2209 = vmatprep.mubr.f32.mxu0 %v8308_v39  ;;  %2364 = vmatprep.mubr.f32.mxu1 %v8308_v39 }
 0x114   : > { %v6788_v21 = vpop.f32.mrf.mxu0  ;;  %v6790_v19 = vpop.f32.mrf.mxu1  ;;  %2853 = vmatprep.subr.mxu1 %v6544_v60 }
 0x115   : > { %8401 = vst [vmem:[#allocation35_spill] sm:$0xff] %v6788_v21 }
 0x116   : > { %v6793_v24 = vpop.f32.mrf.mxu0  ;;  %v6795_v62 = vpop.f32.mrf.mxu1  ;;  %2215 = vmatmul.mubr.f32.gmra.mxu0 %v6295_v6  ;;  %2366 = vmatmul.mubr.f32.gmra.mxu1 %v6091_v59  ;;  %v272_v59 = vld [vmem:[%s6076_s18 + $0x110] sm:$0xff] }
 0x117   : > { %8402 = vst [vmem:[#allocation36_spill] sm:$0xff] %v6793_v24  ;;  %2220 = vmatprep.mubr.f32.mxu0 %v8308_v39  ;;  %2371 = vmatprep.mubr.f32.mxu1 %v8308_v39 }
 0x118   : > { %v6801_v53 = vpop.f32.mrf.mxu0  ;;  %v6803_v21 = vpop.f32.mrf.mxu1 }
 0x119   : > { %8403 = vst [vmem:[#allocation37_spill] sm:$0xff] %v6801_v53 }
 0x11a   : > { %v6805_v50 = vpop.f32.mrf.mxu0  ;;  %v6807_v60 = vpop.f32.mrf.mxu1  ;;  %2226 = vmatmul.mubr.f32.gmra.mxu0 %v6305_v11  ;;  %2373 = vmatmul.mubr.f32.gmra.mxu1 %v6208_v63  ;;  %v6832_v63 = vand.u32 4294901760, %v272_v59 }
 0x11b   : > { %8404 = vst [vmem:[#allocation38_spill] sm:$0xff] %v6805_v50  ;;  %2378 = vmatprep.mubr.f32.mxu1 %v8308_v39  ;;  %2473 = vmatprep.mubr.f32.mxu0 %v8308_v39 }
 0x11c   : > { %v6813_v6 = vpop.f32.mrf.mxu0  ;;  %v6815_v24 = vpop.f32.mrf.mxu1  ;;  %8410 = vst [vmem:[#allocation43_spill] sm:$0xff] %v6832_v63 }
 0x11d   : > { %8405 = vst [vmem:[#allocation39_spill] sm:$0xff] %v6813_v6  ;;  %8406 = vst [vmem:[#allocation40_spill] sm:$0xff] %v6815_v24  ;;  %v8409_v6 = vand.u32 4294901760, %v6609_v30  ;;  %v8414_v30 = vand.u32 4294901760, %v6617_v7 }
 0x11e   : > { %v6818_v53 = vpop.f32.mrf.mxu1  ;;  %v6820_v31 = vpop.f32.mrf.mxu0  ;;  %2380 = vmatmul.mubr.f32.gmra.mxu1 %v6233_v29  ;;  %2476 = vmatmul.mubr.f32.vlgmr.msra.gmra.mxu0 %v6082_v56 }
 0x11f   : > { %8407 = vst [vmem:[#allocation41_spill] sm:$0xff] %v6818_v53  ;;  %2385 = vmatprep.mubr.f32.mxu1 %v8308_v39  ;;  %2481 = vmatprep.mubr.f32.mxu0 %v8308_v39  ;;  %v8411_v53 = vand.u32 4294901760, %v6612_v33  ;;  %v8416_v33 = vand.u32 4294901760, %v6630_v32  ;;  %v8417_v32 = vand.u32 4294901760, %v6636_v61  ;;  %v8418_v61 = vand.u32 4294901760, %v6653_v20  ;;  %v271_v20 = vld [vmem:[%s6076_s18 + $0x108] sm:$0xff] }
 0x120   : > { %v6826_v11 = vpop.f32.mrf.mxu1  ;;  %v6828_v50 = vpop.f32.mrf.mxu0  ;;  %2714 = vmatpush1.msra.mxu0 %v8409_v6 }
 0x121   : > { %8408 = vst [vmem:[#allocation42_spill] sm:$0xff] %v6826_v11  ;;  %2718 = vmatprep.subr.mxu0 %v8411_v53  ;;  %v6851_v53 = vsub.f32 %v272_v59, %v6832_v63 }
 0x122   : > { %v6836_v24 = vpop.f32.mrf.mxu1  ;;  %v6838_v29 = vpop.f32.mrf.mxu0  ;;  %2387 = vmatmul.mubr.f32.gmra.mxu1 %v6251_v37  ;;  %2484 = vmatmul.mubr.f32.gmra.mxu0 %v6085_v57 }
 0x123   : > { %8412 = vst [vmem:[#allocation44_spill] sm:$0xff] %v6836_v24  ;;  %2489 = vmatprep.mubr.f32.mxu0 %v8308_v39  ;;  %2610 = vmatprep.mubr.f32.mxu1 %v8308_v39  ;;  %8415 = vst [vmem:[#allocation46_spill] sm:$0xff] %v6851_v53  ;;  %v8312_v59 = vand.u32 4294901760, %v6851_v53 }
 0x124   : > { %v6844_v56 = vpop.f32.mrf.mxu1  ;;  %v6846_v6 = vpop.f32.mrf.mxu0  ;;  %2722 = vmatpush1.msra.mxu0 %v8414_v30 }
 0x125   : > { %8413 = vst [vmem:[#allocation45_spill] sm:$0xff] %v6844_v56  ;;  %2726 = vmatprep.subr.mxu0 %v8416_v33  ;;  %v253_v56 = vld [vmem:[%s6076_s18 + $0x78] sm:$0xff] }
 0x126   : > { %v6855_v37 = vpop.f32.mrf.mxu0  ;;  %v6857_v57 = vpop.f32.mrf.mxu1  ;;  %2492 = vmatmul.mubr.f32.gmra.mxu0 %v6088_v58  ;;  %2614 = vmatmul.mubr.f32.vlgmr.msra.gmra.mxu1 %v6114_v8  ;;  %v6918_v8 = vand.u32 4294901760, %v271_v20 }
 0x127   : > { %2855 = vmatpush1.msra.mxu1 %v6596_v27  ;;  %2497 = vmatprep.mubr.f32.mxu0 %v8308_v39 }
 0x128   : > { %v6863_v7 = vpop.f32.mrf.mxu0  ;;  %v6865_v30 = vpop.f32.mrf.mxu1  ;;  %2619 = vmatprep.mubr.f32.mxu1 %v8308_v39  ;;  %2857 = vmatprep.subr.mxu1 %v6598_v40  ;;  %8424 = vst [vmem:[#allocation50_spill] sm:$0xff] %v6918_v8 }
 0x129   : > { %2859 = vmatpush1.msra.mxu1 %v6600_v41  ;;  %2730 = vmatpush1.msra.mxu0 %v8417_v32  ;;  %v3145_v32 = vsub.f32 %v6851_v53, %v8312_v59 }
 0x12a   : > { %v6873_v33 = vpop.f32.mrf.mxu0  ;;  %v6875_v27 = vpop.f32.mrf.mxu1  ;;  %2500 = vmatmul.mubr.f32.gmra.mxu0 %v6103_v2  ;;  %2623 = vmatmul.mubr.f32.gmra.mxu1 %v6137_v16  ;;  %v8419_v16 = vand.u32 4294901760, %v6661_v15  ;;  %v262_v15 = vld [vmem:[%s6076_s18 + $0xc0] sm:$0xff] }
 0x12b   : > { %2505 = vmatprep.mubr.f32.mxu0 %v8308_v39  ;;  %2628 = vmatprep.mubr.f32.mxu1 %v8308_v39 }
 0x12c   : > { %v6881_v40 = vpop.f32.mrf.mxu0  ;;  %v6883_v41 = vpop.f32.mrf.mxu1  ;;  %2861 = vmatprep.subr.mxu1 %v6614_v52  ;;  %2734 = vmatprep.subr.mxu0 %v8418_v61  ;;  %v8421_v52 = vmov 0.0   ;;  %v263_v61 = vld [vmem:[%s6076_s18 + $0xc8] sm:$0xff] }
 0x12d   : > { %2863 = vmatpush1.msra.mxu1 %v6619_v17  ;;  %2738 = vmatpush1.msra.mxu0 %v8419_v16  ;;  %v3146_v16 = vand.u32 4294901760, %v3145_v32  ;;  %v6924_v32 = vand.u32 4294901760, %v262_v15 }
 0x12e   : > { %v6894_v39 = vpop.f32.mrf.mxu0  ;;  %v6896_v2 = vpop.f32.mrf.mxu1  ;;  %2508 = vmatmul.mubr.f32.gmra.mxu0 %v6205_v55  ;;  %2632 = vmatmul.mubr.f32.gmra.mxu1 %v6193_v48 }
 0x12f   : > { %8420 = vst [vmem:[#allocation47_spill] sm:$0xff] %v6894_v39  ;;  %2513 = vmatprep.mubr.f32.mxu0 %v8421_v52  ;;  %2637 = vmatprep.mubr.f32.mxu1 %v8421_v52 }
 0x130   : > { %v6904_v59 = vpop.f32.mrf.mxu0  ;;  %v6906_v17 = vpop.f32.mrf.mxu1  ;;  %2865 = vmatprep.subr.mxu1 %v6632_v42  ;;  %2982 = vmatprep.subr.mxu0 %v6832_v63  ;;  %v6920_v42 = vand.u32 4294901760, %v263_v61  ;;  %v244_v63 = vld [vmem:[%s6076_s18 + $0x30] sm:$0xff] }
 0x131   : > { %8422 = vst [vmem:[#allocation48_spill] sm:$0xff] %v6904_v59  ;;  %2867 = vmatpush1.msra.mxu1 %v6638_v4  ;;  %v254_v4 = vld [vmem:[%s6076_s18 + $0x80] sm:$0xff]  ;;  %v6941_v59 = vsub.f32 %v271_v20, %v6918_v8 }
 0x132   : > { %v6912_v48 = vpop.f32.mrf.mxu0  ;;  %v6914_v55 = vpop.f32.mrf.mxu1  ;;  %2516 = vmatmul.mubr.f32.gmra.mxu0 %v6231_v26  ;;  %2641 = vmatmul.mubr.f32.gmra.mxu1 %v6196_v49  ;;  %v245_v26 = vld [vmem:[%s6076_s18 + $0x38] sm:$0xff]  ;;  %v6944_v11 = vsub.f32 %v263_v61, %v6920_v42 }
 0x133   : > { %8423 = vst [vmem:[#allocation49_spill] sm:$0xff] %v6912_v48  ;;  %2521 = vmatprep.mubr.f32.mxu0 %v8421_v52  ;;  %2646 = vmatprep.mubr.f32.mxu1 %v8421_v52  ;;  %8429 = vst [vmem:[#allocation55_spill] sm:$0xff] %v6941_v59  ;;  %v6959_v20 = vand.u32 4294901760, %v245_v26  ;;  %v8440_v53 = vand.u32 4294901760, %v6941_v59 }
 0x134   : > { %v6927_v58 = vpop.f32.mrf.mxu0  ;;  %v6929_v48 = vpop.f32.mrf.mxu1  ;;  %3147 = vmatprep.subr.mxu1 %v3146_v16  ;;  %8430 = vst [vmem:[#allocation56_spill] sm:$0xff] %v6944_v11  ;;  %v6951_v16 = vsub.f32 %v262_v15, %v6924_v32 }
 0x135   : > { %8425 = vst [vmem:[#allocation51_spill] sm:$0xff] %v6927_v58  ;;  %8426 = vst [vmem:[#allocation52_spill] sm:$0xff] %v6929_v48  ;;  %v6946_v58 = vand.u32 4294901760, %v254_v4 }
 0x136   : > { %v6934_v49 = vpop.f32.mrf.mxu0  ;;  %v6936_v24 = vpop.f32.mrf.mxu1  ;;  %2524 = vmatmul.mubr.f32.gmra.mxu0 %v6249_v36  ;;  %2650 = vmatmul.mubr.f32.gmra.mxu1 %v6227_v25  ;;  %v6957_v25 = vand.u32 4294901760, %v253_v56 }
 0x137   : > { %8427 = vst [vmem:[#allocation53_spill] sm:$0xff] %v6934_v49  ;;  %8428 = vst [vmem:[#allocation54_spill] sm:$0xff] %v6936_v24  ;;  %2529 = vmatprep.mubr.f32.mxu0 %v8421_v52  ;;  %2655 = vmatprep.mubr.f32.mxu1 %v8421_v52  ;;  %v6961_v24 = vand.u32 4294901760, %v244_v63 }
 0x138   : > { %v6953_v49 = vpop.f32.mrf.mxu0  ;;  %v6955_v36 = vpop.f32.mrf.mxu1 }
 0x139   : > { %8431 = vst [vmem:[#allocation57_spill] sm:$0xff] %v6953_v49  ;;  %8432 = vst [vmem:[#allocation58_spill] sm:$0xff] %v6955_v36  ;;  %v6972_v36 = vsub.f32 %v254_v4, %v6946_v58  ;;  %v6985_v15 = vsub.f32 %v244_v63, %v6961_v24  ;;  %v6988_v49 = vsub.f32 %v245_v26, %v6959_v20 }
 0x13a   : > { %v6963_v61 = vpop.f32.mrf.mxu0  ;;  %v6965_v48 = vpop.f32.mrf.mxu1  ;;  %2532 = vmatmul.mubr.f32.gmra.mxu0 %v6269_v44  ;;  %2659 = vmatmul.mubr.f32.gmra.mxu1 %v6246_v35  ;;  %v6982_v44 = vsub.f32 %v253_v56, %v6957_v25  ;;  %v8441_v56 = vand.u32 4294901760, %v6944_v11  ;;  %v568_v26 = vadd.f32 %v6734_v51, %v6712_v9  ;;  %v570_v9 = vadd.f32 %v6742_v22, %v6718_v54 }
 0x13b   : > { %8433 = vst [vmem:[#allocation59_spill] sm:$0xff] %v6963_v61  ;;  %8434 = vst [vmem:[#allocation60_spill] sm:$0xff] %v6965_v48  ;;  %2664 = vmatprep.mubr.f32.mxu1 %v8421_v52  ;;  %2771 = vmatprep.mubr.f32.mxu0 %v8421_v52  ;;  %v8443_v63 = vand.u32 4294901760, %v6972_v36  ;;  %v575_v54 = vadd.f32 %v6750_v0, %v6722_v3  ;;  %v8446_v3 = vand.u32 4294901760, %v6985_v15 }
 0x13c   : > { %v6977_v61 = vpop.f32.mrf.mxu0  ;;  %v6979_v48 = vpop.f32.mrf.mxu1  ;;  %8437 = vst [vmem:[#allocation63_spill] sm:$0xff] %v6985_v15  ;;  %8438 = vst [vmem:[#allocation64_spill] sm:$0xff] %v6988_v49  ;;  %v706_v51 = vadd.f32 %v6820_v31, %v568_v26  ;;  %v708_v31 = vadd.f32 %v6828_v50, %v570_v9  ;;  %v8445_v50 = vand.u32 4294901760, %v6988_v49 }
 0x13d   : > { %8435 = vst [vmem:[#allocation61_spill] sm:$0xff] %v6977_v61  ;;  %8436 = vst [vmem:[#allocation62_spill] sm:$0xff] %v6979_v48  ;;  %v3151_v61 = vsub.f32 %v6941_v59, %v8440_v53  ;;  %v3157_v48 = vsub.f32 %v6944_v11, %v8441_v56  ;;  %v7025_v11 = vsub.f32 %v6972_v36, %v8443_v63  ;;  %v8444_v63 = vand.u32 4294901760, %v6982_v44 }
 0x13e   : > { %v6990_v4 = vpop.f32.mrf.mxu1  ;;  %v1002_v35 = vpop.f32.mrf.mxu0  ;;  %2668 = vmatmul.mubr.f32.gmra.mxu1 %v6266_v43  ;;  %2773 = vmatmul.mubr.f32.vlgmr.msra.gmra.mxu0 %v6058_v45  ;;  %v8442_v43 = vand.u32 4294901760, %v6951_v16  ;;  %v844_v22 = vadd.f32 %v6857_v57, %v706_v51  ;;  %v7044_v57 = vsub.f32 %v6988_v49, %v8445_v50  ;;  %v846_v9 = vadd.f32 %v6865_v30, %v708_v31 }
 0x13f   : > { %8439 = vst [vmem:[#allocation65_spill] sm:$0xff] %v6990_v4  ;;  %2673 = vmatprep.mubr.f32.mxu1 %v8421_v52  ;;  %2778 = vmatprep.mubr.f32.mxu0 %v8421_v52  ;;  %v3158_v56 = vand.u32 4294901760, %v3157_v48  ;;  %v577_v48 = vadd.f32 %v6758_v12, %v6728_v10  ;;  %v3175_v0 = vsub.f32 %v6982_v44, %v8444_v63 }
 0x140   : > { %v3163_v4 = vsub.f32 %v6951_v16, %v8442_v43  ;;  %v7008_v39 = vpop.f32.mrf.mxu1  ;;  %v1004_v53 = vpop.f32.mrf.mxu0  ;;  %2984 = vmatpush1.msra.mxu0 %v6918_v8  ;;  %v3152_v8 = vand.u32 4294901760, %v3151_v61  ;;  %v582_v12 = vadd.f32 %v6766_v18, %v6732_v5  ;;  %v714_v10 = vadd.f32 %v6838_v29, %v575_v54 }
 0x141   : > { %2986 = vmatprep.subr.mxu0 %v6920_v42  ;;  %v1003_v51 = vadd.f32 %v1002_v35, %v844_v22  ;;  %v584_v63 = vadd.f32 %v6774_v34, %v6740_v14  ;;  %v589_v50 = vadd.f32 %v6782_v38, %v6748_v23  ;;  %v1005_v35 = vadd.f32 %v1004_v53, %v846_v9  ;;  %v8450_v9 = vld [vmem:[#allocation35_spill] sm:$0xff] }
 0x142   : > { %v7018_v59 = vpop.f32.mrf.mxu1  ;;  %v1009_v43 = vpop.f32.mrf.mxu0  ;;  %2677 = vmatmul.mubr.f32.gmra.mxu1 %v6284_v1  ;;  %2780 = vmatmul.mubr.f32.gmra.mxu0 %v6060_v46  ;;  %v3164_v26 = vand.u32 4294901760, %v3163_v4  ;;  %v7049_v4 = vsub.f32 %v6985_v15, %v8446_v3  ;;  %v7062_v3 = vadd.f32 %v6790_v19, %v6756_v13  ;;  %v853_v29 = vadd.f32 %v6875_v27, %v714_v10  ;;  %v8447_v19 = vld [vmem:[#allocation33_spill] sm:$0xff] }
 0x143   : > { %2785 = vmatprep.mubr.f32.mxu0 %v8421_v52  ;;  %2900 = vmatprep.mubr.f32.mxu1 %v8421_v52  ;;  %v3170_v34 = vand.u32 4294901760, %v7025_v11  ;;  %v596_v38 = vadd.f32 %v6795_v62, %v6764_v28  ;;  %v7073_v13 = vadd.f32 %v6803_v21, %v8447_v19  ;;  %v716_v5 = vadd.f32 %v6846_v6, %v577_v48  ;;  %v8448_v28 = vld [vmem:[#allocation34_spill] sm:$0xff] }
 0x144   : > { %v7035_v61 = vpop.f32.mrf.mxu1  ;;  %v1011_v1 = vpop.f32.mrf.mxu0  ;;  %2988 = vmatpush1.msra.mxu0 %v6924_v32  ;;  %v1010_v30 = vadd.f32 %v1009_v43, %v853_v29  ;;  %v7081_v21 = vadd.f32 %v6807_v60, %v8448_v28  ;;  %v724_v62 = vadd.f32 %v6863_v7, %v584_v63  ;;  %v730_v60 = vadd.f32 %v6873_v33, %v589_v50  ;;  %v8452_v29 = vld [vmem:[#allocation8_spill] sm:$0xff] }
 0x145   : > { %2990 = vmatprep.subr.mxu0 %v6946_v58  ;;  %v855_v6 = vadd.f32 %v6883_v41, %v716_v5  ;;  %v8455_v5 = vld [vmem:[#allocation47_spill] sm:$0xff] }
 0x146   : > { %v1016_v15 = vpop.f32.mrf.mxu0  ;;  %v1131_v49 = vpop.f32.mrf.mxu1  ;;  %2787 = vmatmul.mubr.f32.gmra.mxu0 %v6062_v47  ;;  %2902 = vmatmul.mubr.f32.vlgmr.msra.gmra.mxu1 %v6058_v45  ;;  %v864_v7 = vadd.f32 %v6906_v17, %v724_v62  ;;  %v8457_v62 = vld [vmem:[#allocation37_spill] sm:$0xff] }
 0x147   : > { %v1132_v18 = vadd.f32 %v1131_v49, %v1003_v51  ;;  %3153 = vmatpush1.msra.mxu1 %v3152_v8  ;;  %2792 = vmatprep.mubr.f32.mxu0 %v8421_v52  ;;  %v3176_v49 = vand.u32 4294901760, %v3175_v0  ;;  %v722_v8 = vadd.f32 %v6855_v37, %v582_v12  ;;  %v3182_v37 = vand.u32 4294901760, %v7044_v57  ;;  %v8451_v51 = vld [vmem:[#allocation40_spill] sm:$0xff] }
 0x148   : > { %v1018_v14 = vpop.f32.mrf.mxu0  ;;  %v1133_v23 = vpop.f32.mrf.mxu1  ;;  %2907 = vmatprep.mubr.f32.mxu1 %v8421_v52  ;;  %3159 = vmatprep.subr.mxu1 %v3158_v56  ;;  %v8449_v56 = vld [vmem:[#allocation4_spill] sm:$0xff]  ;;  %v1012_v41 = vadd.f32 %v1011_v1, %v855_v6  ;;  %v3188_v57 = vand.u32 4294901760, %v7049_v4  ;;  %v7098_v33 = vadd.f32 %v8451_v51, %v8450_v9  ;;  %v871_v1 = vadd.f32 %v6914_v55, %v730_v60  ;;  %v8458_v6 = vld [vmem:[#allocation42_spill] sm:$0xff]  ;;  %v8461_v60 = vld [vmem:[#allocation17_spill] sm:$0xff] }
 0x149   : > { %v4629_v27 = vsub.f32 0.0, %v1132_v18  ;;  %v1134_v11 = vadd.f32 %v1133_v23, %v1005_v35  ;;  %3165 = vmatpush1.msra.mxu1 %v3164_v26  ;;  %2992 = vmatpush1.msra.mxu0 %v6957_v25  ;;  %v862_v43 = vadd.f32 %v6896_v2, %v722_v8  ;;  %v8453_v18 = vld [vmem:[#allocation36_spill] sm:$0xff]  ;;  %v732_v55 = vadd.f32 %v6881_v40, %v7062_v3 }
 0x14a   : > { %v1023_v53 = vpop.f32.mrf.mxu0  ;;  %v1138_v54 = vpop.f32.mrf.mxu1  ;;  %2794 = vmatmul.mubr.f32.gmra.mxu0 %v8449_v56  ;;  %2909 = vmatmul.mubr.f32.gmra.mxu1 %v6060_v46  ;;  %v738_v23 = vadd.f32 %v8455_v5, %v596_v38  ;;  %v8460_v40 = vld [vmem:[#allocation52_spill] sm:$0xff] }
 0x14b   : > { %v4701_v31 = vmul.f32 1.442695, %v4629_v27  ;;  %v4630_v22 = vsub.f32 0.0, %v1134_v11  ;;  %v1139_v26 = vadd.f32 %v1138_v54, %v1010_v30  ;;  %2799 = vmatprep.mubr.f32.mxu0 %v8421_v52  ;;  %2914 = vmatprep.mubr.f32.mxu1 %v8421_v52  ;;  %v1017_v2 = vadd.f32 %v1016_v15, %v862_v43  ;;  %v8459_v43 = vld [vmem:[#allocation48_spill] sm:$0xff] }
 0x14c   : > { %v1025_v48 = vpop.f32.mrf.mxu0  ;;  %v1140_v0 = vpop.f32.mrf.mxu1  ;;  %3171 = vmatprep.subr.mxu1 %v3170_v34  ;;  %2994 = vmatprep.subr.mxu0 %v6959_v20  ;;  %v1019_v15 = vadd.f32 %v1018_v14, %v864_v7  ;;  %v8454_v34 = vld [vmem:[#allocation41_spill] sm:$0xff]  ;;  %v8456_v14 = vld [vmem:[#allocation46_spill] sm:$0xff]  ;;  %v1024_v27 = vadd.f32 %v1023_v53, %v871_v1  ;;  %v612_v54 = vadd.f32 %v8458_v6, %v8457_v62 }
 0x14d   : > { %5589 = vpow2.f32 %v4701_v31  ;;  %v4703_v12 = vmul.f32 1.442695, %v4630_v22  ;;  %v4638_v10 = vsub.f32 0.0, %v1139_v26  ;;  %3177 = vmatpush1.msra.mxu1 %v3176_v49  ;;  %2996 = vmatpush1.msra.mxu0 %v6961_v24  ;;  %v1141_v17 = vadd.f32 %v1140_v0, %v1012_v41  ;;  %v8462_v53 = vld [vmem:[#allocation54_spill] sm:$0xff]  ;;  %v8472_v6 = vld [vmem:[#allocation53_spill] sm:$0xff] }
 0x14e   : > { %v1030_v63 = vpop.f32.mrf.mxu0  ;;  %v1145_v50 = vpop.f32.mrf.mxu1  ;;  %2801 = vmatmul.mubr.f32.gmra.mxu0 %v8452_v29  ;;  %2916 = vmatmul.mubr.f32.gmra.mxu1 %v6062_v47  ;;  %v610_v19 = vadd.f32 %v8454_v34, %v8453_v18  ;;  %v740_v31 = vadd.f32 %v8459_v43, %v7073_v13  ;;  %v873_v3 = vadd.f32 %v8460_v40, %v732_v55  ;;  %v8464_v13 = vld [vmem:[#allocation44_spill] sm:$0xff]  ;;  %v8468_v18 = vld [vmem:[#allocation45_spill] sm:$0xff] }
 0x14f   : > { %5591 = vpow2.f32 %v4703_v12  ;;  %v4719_v4 = vmul.f32 1.442695, %v4638_v10  ;;  %v1146_v35 = vadd.f32 %v1145_v50, %v1017_v2  ;;  %2806 = vmatprep.mubr.f32.mxu0 %v8421_v52  ;;  %2921 = vmatprep.mubr.f32.mxu1 %v8421_v52  ;;  %v4639_v49 = vsub.f32 0.0, %v1141_v17  ;;  %v8465_v12 = vld [vmem:[#allocation58_spill] sm:$0xff]  ;;  %v8466_v17 = vld [vmem:[#allocation43_spill] sm:$0xff]  ;;  %v8469_v55 = vld [vmem:[#allocation49_spill] sm:$0xff] }
 0x150   : > { %v1032_v8 = vpop.f32.mrf.mxu0  ;;  %v1147_v30 = vpop.f32.mrf.mxu1  ;;  %3183 = vmatprep.subr.mxu1 %v3182_v37  ;;  %3305 = vmatprep.subr.mxu0 %v8456_v14  ;;  %v880_v37 = vadd.f32 %v8462_v53, %v738_v23  ;;  %v882_v10 = vadd.f32 %v8465_v12, %v740_v31  ;;  %v1026_v9 = vadd.f32 %v1025_v48, %v873_v3  ;;  %v8470_v48 = vld [vmem:[#allocation21_spill] sm:$0xff]  ;;  %v8473_v43 = vld [vmem:[#allocation60_spill] sm:$0xff] }
 0x151   : > { %5593 = vpow2.f32 %v4719_v4  ;;  %v4647_v11 = vsub.f32 0.0, %v1146_v35  ;;  %v1148_v28 = vadd.f32 %v1147_v30, %v1019_v15  ;;  %3189 = vmatpush1.msra.mxu1 %v3188_v57  ;;  %v4721_v38 = vmul.f32 1.442695, %v4639_v49  ;;  %v8463_v57 = vld [vmem:[#allocation38_spill] sm:$0xff]  ;;  %v8467_v35 = vld [vmem:[#allocation39_spill] sm:$0xff] }
 0x152   : > { %v1037_v22 = vpop.f32.mrf.mxu0  ;;  %v1152_v26 = vpop.f32.mrf.mxu1  ;;  %2808 = vmatmul.mubr.f32.gmra.mxu0 %v8461_v60  ;;  %2923 = vmatmul.mubr.f32.gmra.mxu1 %v8449_v56  ;;  %v617_v2 = vadd.f32 %v8464_v13, %v8463_v57  ;;  %v1031_v50 = vadd.f32 %v1030_v63, %v880_v37  ;;  %v7127_v34 = vadd.f32 %v8468_v18, %v8467_v35  ;;  %v8476_v57 = vld [vmem:[#allocation62_spill] sm:$0xff] }
 0x153   : > { %v4737_v7 = vmul.f32 1.442695, %v4647_v11  ;;  %v4648_v41 = vsub.f32 0.0, %v1148_v28  ;;  %v1153_v0 = vadd.f32 %v1152_v26, %v1024_v27  ;;  %2813 = vmatprep.mubr.f32.mxu0 %v8421_v52  ;;  %2928 = vmatprep.mubr.f32.mxu1 %v8421_v52  ;;  %5595 = vpow2.f32 %v4721_v38  ;;  %v8471_v28 = vld [vmem:[#allocation51_spill] sm:$0xff]  ;;  %v8474_v26 = vld [vmem:[#allocation57_spill] sm:$0xff] }
 0x154   : > { %v1039_v51 = vpop.f32.mrf.mxu0  ;;  %v1154_v1 = vpop.f32.mrf.mxu1  ;;  %3449 = vmatprep.subr.mxu1 %v8466_v17  ;;  %v746_v5 = vadd.f32 %v8469_v55, %v7081_v21  ;;  %v1033_v27 = vadd.f32 %v1032_v8, %v882_v10  ;;  %v748_v62 = vadd.f32 %v8471_v28, %v7098_v33  ;;  %v754_v21 = vadd.f32 %v8472_v6, %v610_v19  ;;  %v8477_v19 = vld [vmem:[#allocation25_spill] sm:$0xff] }
 0x155   : > { %5597 = vpow2.f32 %v4737_v7  ;;  %v4739_v15 = vmul.f32 1.442695, %v4648_v41  ;;  %v4656_v4 = vsub.f32 0.0, %v1153_v0  ;;  %v1155_v23 = vadd.f32 %v1154_v1, %v1026_v9  ;;  %v8475_v41 = vld [vmem:[#allocation59_spill] sm:$0xff]  ;;  %v8478_v1 = vld [vmem:[#allocation65_spill] sm:$0xff] }
 0x156   : > { %v1044_v49 = vpop.f32.mrf.mxu0  ;;  %v1159_v30 = vpop.f32.mrf.mxu1  ;;  %2815 = vmatmul.mubr.f32.gmra.mxu0 %v8470_v48  ;;  %2930 = vmatmul.mubr.f32.gmra.mxu1 %v8452_v29  ;;  %v889_v31 = vadd.f32 %v8473_v43, %v746_v5  ;;  %v756_v53 = vadd.f32 %v8474_v26, %v612_v54  ;;  %v762_v0 = vadd.f32 %v8475_v41, %v617_v2 }
 0x157   : > { %5599 = vpow2.f32 %v4739_v15  ;;  %v4755_v63 = vmul.f32 1.442695, %v4656_v4  ;;  %v1160_v11 = vadd.f32 %v1159_v30, %v1031_v50  ;;  %2820 = vmatprep.mubr.f32.mxu0 %v8421_v52  ;;  %2935 = vmatprep.mubr.f32.mxu1 %v8421_v52  ;;  %v4657_v40 = vsub.f32 0.0, %v1155_v23 }
 0x158   : > { %v1046_v3 = vpop.f32.mrf.mxu0  ;;  %v1161_v38 = vpop.f32.mrf.mxu1  ;;  %v891_v13 = vadd.f32 %v8476_v57, %v748_v62  ;;  %v1038_v12 = vadd.f32 %v1037_v22, %v889_v31  ;;  %v898_v50 = vadd.f32 %v8478_v1, %v754_v21  ;;  %v900_v35 = vadd.f32 %v7008_v39, %v756_v53  ;;  %v8479_v39 = vld [vmem:[#allocation12_spill] sm:$0xff]  ;;  %v8483_v1 = vld [vmem:[#allocation13_spill] sm:$0xff] }
 0x159   : > { %5601 = vpow2.f32 %v4755_v63  ;;  %v4665_v8 = vsub.f32 0.0, %v1160_v11  ;;  %v1162_v37 = vadd.f32 %v1161_v38, %v1033_v27  ;;  %v4757_v10 = vmul.f32 1.442695, %v4657_v40 }
 0x15a   : > { %v5590_v7 = vpop.eup %5589  ;;  %v1051_v33 = vpop.f32.mrf.mxu0  ;;  %2822 = vmatmul.mubr.f32.gmra.mxu0 %v8477_v19  ;;  %2937 = vmatmul.mubr.f32.gmra.mxu1 %v8461_v60  ;;  %v1040_v22 = vadd.f32 %v1039_v51, %v891_v13  ;;  %v1045_v30 = vadd.f32 %v1044_v49, %v898_v50  ;;  %v907_v11 = vadd.f32 %v7018_v59, %v762_v0  ;;  %v8480_v59 = vld [vmem:[#allocation61_spill] sm:$0xff]  ;;  %v8482_v0 = vld [vmem:[#allocation56_spill] sm:$0xff] }
 0x15b   : > { %v1166_v9 = vpop.f32.mrf.mxu1  ;;  %v4845_v15 = vadd.f32 1.0, %v5590_v7  ;;  %v4773_v54 = vmul.f32 1.442695, %v4665_v8  ;;  %v4666_v4 = vsub.f32 0.0, %v1162_v37  ;;  %2942 = vmatprep.mubr.f32.mxu1 %v8421_v52  ;;  %3029 = vmatprep.mubr.f32.mxu0 %v8421_v52  ;;  %5603 = vpow2.f32 %v4757_v10  ;;  %v8481_v8 = vld [vmem:[#allocation55_spill] sm:$0xff] }
 0x15c   : > { %v5592_v2 = vpop.eup %5591  ;;  %v1167_v18 = vadd.f32 %v1166_v9, %v1038_v12  ;;  %v1053_v55 = vpop.f32.mrf.mxu0  ;;  %v1047_v43 = vadd.f32 %v1046_v3, %v900_v35  ;;  %v764_v49 = vadd.f32 %v8480_v59, %v7127_v34  ;;  %v1052_v7 = vadd.f32 %v1051_v33, %v907_v11 }
 0x15d   : > { %v1168_v5 = vpop.f32.mrf.mxu1  ;;  %5605 = vrcp.f32 %v4845_v15  ;;  %v4846_v23 = vadd.f32 1.0, %v5592_v2  ;;  %v4775_v27 = vmul.f32 1.442695, %v4666_v4 }
 0x15e   : > { %v5594_v63 = vpop.eup %5593  ;;  %5607 = vpow2.f32 %v4773_v54  ;;  %v4674_v28 = vsub.f32 0.0, %v1167_v18  ;;  %v1169_v62 = vadd.f32 %v1168_v5, %v1040_v22  ;;  %v7149_v21 = vpop.f32.mrf.mxu0  ;;  %2944 = vmatmul.mubr.f32.gmra.mxu1 %v8470_v48  ;;  %3035 = vmatmul.mubr.f32.vlgmr.msra.gmra.mxu0 %v8479_v39  ;;  %v909_v13 = vadd.f32 %v7035_v61, %v764_v49 }
 0x15f   : > { %v1173_v6 = vpop.f32.mrf.mxu1  ;;  %5609 = vrcp.f32 %v4846_v23  ;;  %v4854_v51 = vadd.f32 1.0, %v5594_v63  ;;  %2949 = vmatprep.mubr.f32.mxu1 %v8421_v52  ;;  %3040 = vmatprep.mubr.f32.mxu0 %v8421_v52 }
 0x160   : > { %v1174_v31 = vadd.f32 %v1173_v6, %v1045_v30  ;;  %5611 = vpow2.f32 %v4775_v27  ;;  %v4791_v40 = vmul.f32 1.442695, %v4674_v28  ;;  %v4675_v38 = vsub.f32 0.0, %v1169_v62  ;;  %v7157_v53 = vpop.f32.mrf.mxu0  ;;  %3308 = vmatpush1.msra.mxu0 %v8481_v8  ;;  %v5596_v37 = vpop.eup %5595  ;;  %v8485_v62 = vld [vmem:[#allocation50_spill] sm:$0xff] }
 0x161   : > { %v1175_v26 = vpop.f32.mrf.mxu1  ;;  %5613 = vrcp.f32 %v4854_v51  ;;  %3311 = vmatprep.subr.mxu0 %v8482_v0  ;;  %v4855_v34 = vadd.f32 1.0, %v5596_v37  ;;  %v1054_v61 = vadd.f32 %v1053_v55, %v909_v13  ;;  %v8484_v55 = vld [vmem:[#allocation18_spill] sm:$0xff] }
 0x162   : > { %v4683_v3 = vsub.f32 0.0, %v1174_v31  ;;  %v1176_v41 = vadd.f32 %v1175_v26, %v1047_v43  ;;  %v5598_v57 = vpop.eup %5597  ;;  %5615 = vpow2.f32 %v4791_v40  ;;  %v4793_v12 = vmul.f32 1.442695, %v4675_v38  ;;  %v7162_v9 = vpop.f32.mrf.mxu0  ;;  %2951 = vmatmul.mubr.f32.gmra.mxu1 %v8477_v19  ;;  %3046 = vmatmul.mubr.f32.gmra.mxu0 %v8483_v1  ;;  %v8486_v37 = vld [vmem:[#allocation22_spill] sm:$0xff] }
 0x163   : > { %v1180_v10 = vpop.f32.mrf.mxu1  ;;  %v4863_v50 = vadd.f32 1.0, %v5598_v57  ;;  %3051 = vmatprep.mubr.f32.mxu0 %v8421_v52  ;;  %3222 = vmatprep.mubr.f32.mxu1 %v8421_v52  ;;  %5617 = vrcp.f32 %v4855_v34  ;;  %v8487_v34 = vld [vmem:[#allocation64_spill] sm:$0xff] }
 0x164   : > { %v4684_v33 = vsub.f32 0.0, %v1176_v41  ;;  %v1181_v15 = vadd.f32 %v1180_v10, %v1052_v7  ;;  %v5600_v54 = vpop.eup %5599  ;;  %v4809_v4 = vmul.f32 1.442695, %v4683_v3  ;;  %v7172_v35 = vpop.f32.mrf.mxu0  ;;  %3314 = vmatpush1.msra.mxu0 %v6951_v16  ;;  %v8488_v10 = vld [vmem:[#allocation63_spill] sm:$0xff] }
 0x165   : > { %v1182_v2 = vpop.f32.mrf.mxu1  ;;  %5619 = vrcp.f32 %v4863_v50  ;;  %v4864_v22 = vadd.f32 1.0, %v5600_v54  ;;  %3317 = vmatprep.subr.mxu0 %v6972_v36 }
 0x166   : > { %v4692_v18 = vsub.f32 0.0, %v1181_v15  ;;  %v5602_v5 = vpop.eup %5601  ;;  %5621 = vpow2.f32 %v4793_v12  ;;  %v4811_v23 = vmul.f32 1.442695, %v4684_v33  ;;  %v1183_v30 = vadd.f32 %v1182_v2, %v1054_v61  ;;  %v7176_v27 = vpop.f32.mrf.mxu0  ;;  %3057 = vmatmul.mubr.f32.gmra.mxu0 %v8484_v55  ;;  %3224 = vmatmul.mubr.f32.vlgmr.msra.gmra.mxu1 %v6058_v45  ;;  %v8489_v61 = vld [vmem:[#allocation26_spill] sm:$0xff] }
 0x167   : > { %v7178_v63 = vpop.f32.mrf.mxu1  ;;  %5623 = vrcp.f32 %v4864_v22  ;;  %v4872_v11 = vadd.f32 1.0, %v5602_v5  ;;  %3451 = vmatpush1.msra.mxu1 %v8485_v62  ;;  %3062 = vmatprep.mubr.f32.mxu0 %v8421_v52  ;;  %v8490_v5 = vand.u32 4294901760, %v8456_v14 }
 0x168   : > { %v4827_v28 = vmul.f32 1.442695, %v4692_v18  ;;  %5625 = vpow2.f32 %v4809_v4  ;;  %v4693_v6 = vsub.f32 0.0, %v1183_v30  ;;  %v7184_v51 = vpop.f32.mrf.mxu0  ;;  %3229 = vmatprep.mubr.f32.mxu1 %v8421_v52  ;;  %3453 = vmatprep.subr.mxu1 %v6920_v42  ;;  %v5604_v31 = vpop.eup %5603 }
 0x169   : > { %v7186_v43 = vpop.f32.mrf.mxu1  ;;  %5627 = vrcp.f32 %v4872_v11  ;;  %3455 = vmatpush1.msra.mxu1 %v6924_v32  ;;  %3320 = vmatpush1.msra.mxu0 %v6982_v44  ;;  %v4873_v49 = vadd.f32 1.0, %v5604_v31 }
 0x16a   : > { %v5606_v59 = vpop.eup %5605  ;;  %5629 = vpow2.f32 %v4811_v23  ;;  %v4829_v40 = vmul.f32 1.442695, %v4693_v6  ;;  %v7192_v38 = vpop.f32.mrf.mxu0  ;;  %3068 = vmatmul.mubr.f32.gmra.mxu0 %v8486_v37  ;;  %3231 = vmatmul.mubr.f32.gmra.mxu1 %v6060_v46  ;;  %v8491_v6 = vld [vmem:[#allocation29_spill] sm:$0xff]  ;;  %v8501_v37 = vand.u32 4294901760, %v8482_v0 }
 0x16b   : > { %v7194_v26 = vpop.f32.mrf.mxu1  ;;  %v5608_v7 = vpop.eup %5607  ;;  %5061 = vst [vmem:[%s7199_s9] sm:$0xff] %v5606_v59  ;;  %5631 = vpow2.f32 %v4827_v28  ;;  %3073 = vmatprep.mubr.f32.mxu0 %v8421_v52  ;;  %3236 = vmatprep.mubr.f32.mxu1 %v8421_v52 }
 0x16c   : > { %v5610_v3 = vpop.eup %5609  ;;  %5633 = vrcp.f32 %v4873_v49  ;;  %v4881_v41 = vadd.f32 1.0, %v5608_v7  ;;  %v7204_v57 = vpop.f32.mrf.mxu0  ;;  %3457 = vmatprep.subr.mxu1 %v6946_v58  ;;  %3323 = vmatprep.subr.mxu0 %v8487_v34 }
 0x16d   : > { %v7206_v13 = vpop.f32.mrf.mxu1  ;;  %v5612_v12 = vpop.eup %5611  ;;  %5062 = vst [vmem:[%s7199_s9 + $0x8] sm:$0xff] %v5610_v3  ;;  %5635 = vpow2.f32 %v4829_v40  ;;  %3459 = vmatpush1.msra.mxu1 %v6957_v25  ;;  %3326 = vmatpush1.msra.mxu0 %v8488_v10 }
 0x16e   : > { %v5614_v50 = vpop.eup %5613  ;;  %5637 = vrcp.f32 %v4881_v41  ;;  %v4882_v33 = vadd.f32 1.0, %v5612_v12  ;;  %v7213_v15 = vpop.f32.mrf.mxu0  ;;  %3079 = vmatmul.mubr.f32.gmra.mxu0 %v8489_v61  ;;  %3238 = vmatmul.mubr.f32.gmra.mxu1 %v6062_v47 }
 0x16f   : > { %v7215_v54 = vpop.f32.mrf.mxu1  ;;  %v5616_v4 = vpop.eup %5615  ;;  %5070 = vst [vmem:[%s7199_s9 + $0x48] sm:$0xff] %v5614_v50  ;;  %3084 = vmatprep.mubr.f32.mxu0 %v8421_v52  ;;  %3243 = vmatprep.mubr.f32.mxu1 %v8421_v52 }
 0x170   : > { %5639 = vrcp.f32 %v4882_v33  ;;  %v4890_v2 = vadd.f32 1.0, %v5616_v4  ;;  %v7222_v22 = vpop.f32.mrf.mxu0  ;;  %3461 = vmatprep.subr.mxu1 %v6959_v20  ;;  %3596 = vmatprep.subr.mxu0 %v8490_v5  ;;  %v5618_v23 = vpop.eup %5617  ;;  %v8492_v33 = vld [vmem:[#allocation31_spill] sm:$0xff] }
 0x171   : > { %v7224_v18 = vpop.f32.mrf.mxu1  ;;  %3463 = vmatpush1.msra.mxu1 %v6961_v24  ;;  %5071 = vst [vmem:[%s7199_s9 + $0x50] sm:$0xff] %v5618_v23 }
 0x172   : > { %v5620_v30 = vpop.eup %5619  ;;  %5641 = vrcp.f32 %v4890_v2  ;;  %v7231_v11 = vpop.f32.mrf.mxu0  ;;  %3090 = vmatmul.mubr.f32.gmra.mxu0 %v8491_v6  ;;  %3245 = vmatmul.mubr.f32.gmra.mxu1 %v8449_v56 }
 0x173   : > { %v7233_v28 = vpop.f32.mrf.mxu1  ;;  %v5622_v31 = vpop.eup %5621  ;;  %5079 = vst [vmem:[%s7199_s9 + $0x90] sm:$0xff] %v5620_v30  ;;  %3095 = vmatprep.mubr.f32.mxu0 %v8421_v52  ;;  %3250 = vmatprep.mubr.f32.mxu1 %v8421_v52 }
 0x174   : > { %v5624_v14 = vpop.eup %5623  ;;  %v4891_v59 = vadd.f32 1.0, %v5622_v31  ;;  %v7240_v49 = vpop.f32.mrf.mxu0  ;;  %3739 = vmatprep.subr.mxu1 %v8466_v17 }
 0x175   : > { %v7242_v40 = vpop.f32.mrf.mxu1  ;;  %v5626_v7 = vpop.eup %5625  ;;  %5080 = vst [vmem:[%s7199_s9 + $0x98] sm:$0xff] %v5624_v14 }
 0x176   : > { %v5628_v3 = vpop.eup %5627  ;;  %5643 = vrcp.f32 %v4891_v59  ;;  %v4899_v41 = vadd.f32 1.0, %v5626_v7  ;;  %v7246_v12 = vpop.f32.mrf.mxu0  ;;  %3101 = vmatmul.mubr.f32.gmra.mxu0 %v8492_v33  ;;  %3252 = vmatmul.mubr.f32.gmra.mxu1 %v8452_v29  ;;  %v273_v33 = vld [vmem:[%s6076_s18 + $0x118] sm:$0xff] }
 0x177   : > { %v7248_v50 = vpop.f32.mrf.mxu1  ;;  %v5630_v4 = vpop.eup %5629  ;;  %5088 = vst [vmem:[%s7199_s9 + $0xd8] sm:$0xff] %v5628_v3  ;;  %3106 = vmatprep.mubr.f32.mxu0 %v8421_v52  ;;  %3257 = vmatprep.mubr.f32.mxu1 %v8421_v52  ;;  %v8495_v3 = vld [vmem:[#allocation32_spill] sm:$0xff]  ;;  %v7290_v61 = vand.u32 4294901760, %v273_v33 }
 0x178   : > { %v5632_v17 = vpop.eup %5631  ;;  %5645 = vrcp.f32 %v4899_v41  ;;  %v4900_v2 = vadd.f32 1.0, %v5630_v4  ;;  %v7255_v5 = vpop.f32.mrf.mxu0 }
 0x179   : > { %8493 = vst [vmem:[#allocation33_spill] sm:$0xff] %v7255_v5  ;;  %v7257_v23 = vpop.f32.mrf.mxu1  ;;  %v5634_v30 = vpop.eup %5633  ;;  %v4908_v31 = vadd.f32 1.0, %v5632_v17  ;;  %8500 = vst [vmem:[#allocation40_spill] sm:$0xff] %v7290_v61  ;;  %v8536_v5 = vld [vmem:[#allocation23_spill] sm:$0xff] }
 0x17a   : > { %v5636_v14 = vpop.eup %5635  ;;  %5089 = vst [vmem:[%s7199_s9 + $0xe0] sm:$0xff] %v5634_v30  ;;  %5647 = vrcp.f32 %v4900_v2  ;;  %v7260_v59 = vpop.f32.mrf.mxu0  ;;  %3112 = vmatmul.mubr.f32.gmra.mxu0 %v8495_v3  ;;  %3259 = vmatmul.mubr.f32.gmra.mxu1 %v8461_v60 }
 0x17b   : > { %8494 = vst [vmem:[#allocation34_spill] sm:$0xff] %v7260_v59  ;;  %v7262_v7 = vpop.f32.mrf.mxu1  ;;  %v5638_v41 = vpop.eup %5637  ;;  %5649 = vrcp.f32 %v4908_v31  ;;  %v4909_v4 = vadd.f32 1.0, %v5636_v14  ;;  %3264 = vmatprep.mubr.f32.mxu1 %v8421_v52  ;;  %3359 = vmatprep.mubr.f32.mxu0 %v8421_v52  ;;  %v8497_v31 = vld [vmem:[#allocation5_spill] sm:$0xff] }
 0x17c   : > { %5097 = vst [vmem:[%s7199_s9 + $0x120] sm:$0xff] %v5638_v41  ;;  %v7269_v17 = vpop.f32.mrf.mxu0 }
 0x17d   : > { %8496 = vst [vmem:[#allocation4_spill] sm:$0xff] %v7269_v17  ;;  %v7271_v2 = vpop.f32.mrf.mxu1  ;;  %v5640_v30 = vpop.eup %5639  ;;  %5651 = vrcp.f32 %v4909_v4 }
 0x17e   : > { %5098 = vst [vmem:[%s7199_s9 + $0x128] sm:$0xff] %v5640_v30  ;;  %v7277_v6 = vpop.f32.mrf.mxu0  ;;  %3266 = vmatmul.mubr.f32.gmra.mxu1 %v8470_v48  ;;  %3362 = vmatmul.mubr.f32.vlgmr.msra.gmra.mxu0 %v8497_v31  ;;  %v8499_v30 = vand.u32 4294901760, %v8481_v8  ;;  %v8508_v48 = vld [vmem:[#allocation7_spill] sm:$0xff] }
 0x17f   : > { %v7275_v3 = vpop.f32.mrf.mxu1  ;;  %v5642_v14 = vpop.eup %5641  ;;  %3271 = vmatprep.mubr.f32.mxu1 %v8421_v52  ;;  %3367 = vmatprep.mubr.f32.mxu0 %v8421_v52 }
 0x180   : > { %5106 = vst [vmem:[%s7199_s9 + $0x168] sm:$0xff] %v5642_v14  ;;  %v7286_v4 = vpop.f32.mrf.mxu0  ;;  %3600 = vmatpush1.msra.mxu0 %v8499_v30  ;;  %v8503_v14 = vld [vmem:[#allocation6_spill] sm:$0xff]  ;;  %v7310_v30 = vsub.f32 %v273_v33, %v7290_v61 }
 0x181   : > { %v7284_v41 = vpop.f32.mrf.mxu1  ;;  %3604 = vmatprep.subr.mxu0 %v8501_v37  ;;  %v8505_v37 = vand.u32 4294901760, %v6951_v16 }
 0x182   : > { %8498 = vst [vmem:[#allocation35_spill] sm:$0xff] %v7284_v41  ;;  %v7296_v55 = vpop.f32.mrf.mxu0  ;;  %3273 = vmatmul.mubr.f32.gmra.mxu1 %v8477_v19  ;;  %3370 = vmatmul.mubr.f32.gmra.mxu0 %v8503_v14  ;;  %8506 = vst [vmem:[#allocation41_spill] sm:$0xff] %v7310_v30  ;;  %v8507_v14 = vand.u32 4294901760, %v6972_v36 }
 0x183   : > { %v7294_v31 = vpop.f32.mrf.mxu1  ;;  %v5644_v1 = vpop.eup %5643  ;;  %3375 = vmatprep.mubr.f32.mxu0 %v8421_v52  ;;  %3496 = vmatprep.mubr.f32.mxu1 %v8421_v52 }
 0x184   : > { %8502 = vst [vmem:[#allocation8_spill] sm:$0xff] %v7294_v31  ;;  %5107 = vst [vmem:[%s7199_s9 + $0x170] sm:$0xff] %v5644_v1  ;;  %v7305_v0 = vpop.f32.mrf.mxu0  ;;  %3608 = vmatpush1.msra.mxu0 %v8505_v37  ;;  %v8519_v31 = vld [vmem:[#allocation14_spill] sm:$0xff] }
 0x185   : > { %v7303_v8 = vpop.f32.mrf.mxu1  ;;  %v5646_v39 = vpop.eup %5645  ;;  %3612 = vmatprep.subr.mxu0 %v8507_v14 }
 0x186   : > { %8504 = vst [vmem:[#allocation36_spill] sm:$0xff] %v7303_v8  ;;  %5115 = vst [vmem:[%s7199_s9 + $0x1b0] sm:$0xff] %v5646_v39  ;;  %v7315_v19 = vpop.f32.mrf.mxu0  ;;  %3378 = vmatmul.mubr.f32.gmra.mxu0 %v8508_v48  ;;  %v8509_v8 = vld [vmem:[#allocation10_spill] sm:$0xff]  ;;  %v7331_v39 = vand.u32 4294901760, %v7310_v30  ;;  %v8513_v48 = vld [vmem:[#allocation11_spill] sm:$0xff] }
 0x187   : > { %v7317_v1 = vpop.f32.mrf.mxu1  ;;  %3500 = vmatmul.mubr.f32.vlgmr.msra.gmra.mxu1 %v8509_v8  ;;  %v5648_v17 = vpop.eup %5647  ;;  %3383 = vmatprep.mubr.f32.mxu0 %v8421_v52  ;;  %v8512_v8 = vld [vmem:[#allocation9_spill] sm:$0xff] }
 0x188   : > { %3741 = vmatpush1.msra.mxu1 %v8485_v62  ;;  %v5650_v16 = vpop.eup %5649  ;;  %5116 = vst [vmem:[%s7199_s9 + $0x1b8] sm:$0xff] %v5648_v17  ;;  %v7324_v36 = vpop.f32.mrf.mxu0  ;;  %3505 = vmatprep.mubr.f32.mxu1 %v8421_v52  ;;  %8510 = vst [vmem:[#allocation47_spill] sm:$0xff] %v7331_v39  ;;  %v8511_v62 = vand.u32 4294901760, %v6982_v44  ;;  %v8515_v44 = vand.u32 4294901760, %v8487_v34 }
 0x189   : > { %v7326_v33 = vpop.f32.mrf.mxu1  ;;  %3743 = vmatprep.subr.mxu1 %v6920_v42  ;;  %5124 = vst [vmem:[%s7199_s9 + $0x1f8] sm:$0xff] %v5650_v16  ;;  %v4020_v16 = vsub.f32 %v7310_v30, %v7331_v39 }
 0x18a   : > { %3745 = vmatpush1.msra.mxu1 %v6924_v32  ;;  %3616 = vmatpush1.msra.mxu0 %v8511_v62  ;;  %v5652_v14 = vpop.eup %5651  ;;  %v7337_v37 = vpop.f32.mrf.mxu0  ;;  %v8516_v62 = vand.u32 4294901760, %v8488_v10  ;;  %v264_v10 = vld [vmem:[%s6076_s18 + $0xd0] sm:$0xff] }
 0x18b   : > { %v7339_v17 = vpop.f32.mrf.mxu1  ;;  %3386 = vmatmul.mubr.f32.gmra.mxu0 %v8512_v8  ;;  %3509 = vmatmul.mubr.f32.gmra.mxu1 %v8513_v48  ;;  %5125 = vst [vmem:[%s7199_s9 + $0x200] sm:$0xff] %v5652_v14  ;;  %v8518_v8 = vld [vmem:[#allocation16_spill] sm:$0xff] }
 0x18c   : > { %3391 = vmatprep.mubr.f32.mxu0 %v8421_v52  ;;  %3514 = vmatprep.mubr.f32.mxu1 %v8421_v52  ;;  %v7346_v42 = vpop.f32.mrf.mxu0 }
 0x18d   : > { %8514 = vst [vmem:[#allocation46_spill] sm:$0xff] %v7346_v42  ;;  %v7348_v32 = vpop.f32.mrf.mxu1  ;;  %3747 = vmatprep.subr.mxu1 %v6946_v58  ;;  %3620 = vmatprep.subr.mxu0 %v8515_v44 }
 0x18e   : > { %3749 = vmatpush1.msra.mxu1 %v6957_v25  ;;  %3624 = vmatpush1.msra.mxu0 %v8516_v62  ;;  %v7358_v14 = vpop.f32.mrf.mxu0  ;;  %v7372_v25 = vand.u32 4294901760, %v4020_v16  ;;  %v255_v16 = vld [vmem:[%s6076_s18 + $0x88] sm:$0xff] }
 0x18f   : > { %8517 = vst [vmem:[#allocation37_spill] sm:$0xff] %v7358_v14  ;;  %v7360_v48 = vpop.f32.mrf.mxu1  ;;  %3394 = vmatmul.mubr.f32.gmra.mxu0 %v8518_v8  ;;  %3518 = vmatmul.mubr.f32.gmra.mxu1 %v8519_v31  ;;  %v8522_v31 = vld [vmem:[#allocation20_spill] sm:$0xff]  ;;  %v8523_v8 = vld [vmem:[#allocation15_spill] sm:$0xff]  ;;  %v7408_v41 = vand.u32 4294901760, %v255_v16 }
 0x190   : > { %3399 = vmatprep.mubr.f32.mxu0 %v8421_v52  ;;  %3523 = vmatprep.mubr.f32.mxu1 %v8421_v52  ;;  %v7366_v58 = vpop.f32.mrf.mxu0 }
 0x191   : > { %8520 = vst [vmem:[#allocation42_spill] sm:$0xff] %v7366_v58  ;;  %v7368_v34 = vpop.f32.mrf.mxu1  ;;  %3751 = vmatprep.subr.mxu1 %v6959_v20  ;;  %5441 = vmatprep.subr.mxu0 %v7290_v61  ;;  %v7428_v30 = vsub.f32 %v255_v16, %v7408_v41 }
 0x192   : > { %3753 = vmatpush1.msra.mxu1 %v6961_v24  ;;  %v7376_v44 = vpop.f32.mrf.mxu0  ;;  %v7389_v24 = vand.u32 4294901760, %v264_v10 }
 0x193   : > { %8521 = vst [vmem:[#allocation48_spill] sm:$0xff] %v7376_v44  ;;  %v7378_v62 = vpop.f32.mrf.mxu1  ;;  %3402 = vmatmul.mubr.f32.gmra.mxu0 %v8522_v31  ;;  %3527 = vmatmul.mubr.f32.gmra.mxu1 %v8523_v8  ;;  %v246_v44 = vld [vmem:[%s6076_s18 + $0x40] sm:$0xff]  ;;  %v8529_v8 = vld [vmem:[#allocation19_spill] sm:$0xff] }
 0x194   : > { %3407 = vmatprep.mubr.f32.mxu0 %v8421_v52  ;;  %3532 = vmatprep.mubr.f32.mxu1 %v8421_v52  ;;  %v7384_v20 = vpop.f32.mrf.mxu0  ;;  %v8528_v31 = vld [vmem:[#allocation24_spill] sm:$0xff]  ;;  %v7406_v58 = vsub.f32 %v264_v10, %v7389_v24 }
 0x195   : > { %8524 = vst [vmem:[#allocation52_spill] sm:$0xff] %v7384_v20  ;;  %v7386_v39 = vpop.f32.mrf.mxu1  ;;  %5461 = vmatprep.subr.mxu1 %v7372_v25 }
 0x196   : > { %8525 = vst [vmem:[#allocation54_spill] sm:$0xff] %v7386_v39  ;;  %v7393_v59 = vpop.f32.mrf.mxu0  ;;  %8532 = vst [vmem:[#allocation39_spill] sm:$0xff] %v7406_v58 }
 0x197   : > { %8526 = vst [vmem:[#allocation38_spill] sm:$0xff] %v7393_v59  ;;  %v7395_v60 = vpop.f32.mrf.mxu1  ;;  %3410 = vmatmul.mubr.f32.gmra.mxu0 %v8528_v31  ;;  %3536 = vmatmul.mubr.f32.gmra.mxu1 %v8529_v8  ;;  %v7410_v59 = vand.u32 4294901760, %v246_v44  ;;  %v8535_v8 = vld [vmem:[#allocation28_spill] sm:$0xff] }
 0x198   : > { %8527 = vst [vmem:[#allocation44_spill] sm:$0xff] %v7395_v60  ;;  %3415 = vmatprep.mubr.f32.mxu0 %v8421_v52  ;;  %3541 = vmatprep.mubr.f32.mxu1 %v8421_v52  ;;  %v7401_v20 = vpop.f32.mrf.mxu0 }
 0x199   : > { %8530 = vst [vmem:[#allocation58_spill] sm:$0xff] %v7401_v20  ;;  %v7403_v39 = vpop.f32.mrf.mxu1 }
 0x19a   : > { %8531 = vst [vmem:[#allocation43_spill] sm:$0xff] %v7403_v39  ;;  %v7412_v60 = vpop.f32.mrf.mxu0  ;;  %v7425_v39 = vand.u32 4294901760, %v7406_v58 }
 0x19b   : > { %8533 = vst [vmem:[#allocation45_spill] sm:$0xff] %v7412_v60  ;;  %v7414_v31 = vpop.f32.mrf.mxu1  ;;  %3418 = vmatmul.mubr.f32.gmra.mxu0 %v8535_v8  ;;  %3545 = vmatmul.mubr.f32.gmra.mxu1 %v8536_v5  ;;  %v7431_v60 = vsub.f32 %v246_v44, %v7410_v59 }
 0x19c   : > { %8534 = vst [vmem:[#allocation49_spill] sm:$0xff] %v7414_v31  ;;  %3550 = vmatprep.mubr.f32.mxu1 %v8421_v52  ;;  %3657 = vmatprep.mubr.f32.mxu0 %v8421_v52  ;;  %v7420_v20 = vpop.f32.mrf.mxu0  ;;  %8539 = vst [vmem:[#allocation60_spill] sm:$0xff] %v7425_v39  ;;  %v8541_v31 = vld [vmem:[#allocation27_spill] sm:$0xff]  ;;  %v4027_v44 = vsub.f32 %v7406_v58, %v7425_v39  ;;  %v1461_v39 = vadd.f32 %v7194_v26, %v7162_v9 }
 0x19d   : > { %8537 = vst [vmem:[#allocation51_spill] sm:$0xff] %v7420_v20  ;;  %v7422_v10 = vpop.f32.mrf.mxu1  ;;  %v1454_v20 = vadd.f32 %v7178_v63, %v7149_v21  ;;  %v1456_v21 = vadd.f32 %v7186_v43, %v7157_v53  ;;  %v1463_v53 = vadd.f32 %v7206_v13, %v7172_v35  ;;  %v1470_v13 = vadd.f32 %v7224_v18, %v7184_v51 }
 0x19e   : > { %8538 = vst [vmem:[#allocation53_spill] sm:$0xff] %v7422_v10  ;;  %v1888_v5 = vpop.f32.mrf.mxu0  ;;  %v1482_v51 = vadd.f32 %v7248_v50, %v7213_v15  ;;  %v7505_v15 = vadd.f32 %v7262_v7, %v7231_v11 }
 0x19f   : > { %v7433_v8 = vpop.f32.mrf.mxu1  ;;  %3554 = vmatmul.mubr.f32.gmra.mxu1 %v8541_v31  ;;  %3659 = vmatmul.mubr.f32.vlgmr.msra.gmra.mxu0 %v6058_v45  ;;  %v7450_v31 = vand.u32 4294901760, %v7431_v60  ;;  %v1592_v63 = vadd.f32 %v7277_v6, %v1454_v20  ;;  %v1594_v58 = vadd.f32 %v7286_v4, %v1456_v21  ;;  %v4028_v20 = vand.u32 4294901760, %v4027_v44 }
 0x1a0   : > { %8540 = vst [vmem:[#allocation57_spill] sm:$0xff] %v7433_v8  ;;  %3559 = vmatprep.mubr.f32.mxu1 %v8421_v52  ;;  %3664 = vmatprep.mubr.f32.mxu0 %v8421_v52  ;;  %v1890_v16 = vpop.f32.mrf.mxu0  ;;  %v7447_v8 = vand.u32 4294901760, %v7428_v30  ;;  %v1468_v4 = vadd.f32 %v7215_v54, %v7176_v27  ;;  %v1475_v44 = vadd.f32 %v7233_v28, %v7192_v38 }
 0x1a1   : > { %v7441_v10 = vpop.f32.mrf.mxu1  ;;  %5442 = vmatpush3.msra.mxu0 %v7290_v61  ;;  %8543 = vst [vmem:[#allocation62_spill] sm:$0xff] %v7450_v31  ;;  %v8544_v61 = vld [vmem:[#allocation30_spill] sm:$0xff]  ;;  %v1730_v42 = vadd.f32 %v7317_v1, %v1592_v63  ;;  %v4041_v26 = vsub.f32 %v7431_v60, %v7450_v31  ;;  %v1600_v1 = vadd.f32 %v7296_v55, %v1461_v39 }
 0x1a2   : > { %8542 = vst [vmem:[#allocation59_spill] sm:$0xff] %v7441_v10  ;;  %5443 = vmatprep.subr.mxu0 %v7389_v24  ;;  %v1895_v14 = vpop.f32.mrf.mxu0  ;;  %v4034_v9 = vsub.f32 %v7428_v30, %v7447_v8  ;;  %v1732_v21 = vadd.f32 %v7326_v33, %v1594_v58  ;;  %v7486_v63 = vadd.f32 %v7242_v40, %v7204_v57 }
 0x1a3   : > { %v7456_v10 = vpop.f32.mrf.mxu1  ;;  %3563 = vmatmul.mubr.f32.gmra.mxu1 %v8544_v61  ;;  %3666 = vmatmul.mubr.f32.gmra.mxu0 %v6060_v46  ;;  %v1889_v35 = vadd.f32 %v1888_v5, %v1730_v42  ;;  %v1739_v27 = vadd.f32 %v7339_v17, %v1600_v1  ;;  %v7497_v38 = vadd.f32 %v7257_v23, %v7222_v22  ;;  %v8546_v1 = vld [vmem:[#allocation37_spill] sm:$0xff] }
 0x1a4   : > { %3671 = vmatprep.mubr.f32.mxu0 %v8421_v52  ;;  %3786 = vmatprep.mubr.f32.mxu1 %v8421_v52  ;;  %v1897_v6 = vpop.f32.mrf.mxu0  ;;  %v1891_v55 = vadd.f32 %v1890_v16, %v1732_v21  ;;  %v1602_v57 = vadd.f32 %v7305_v0, %v1463_v53  ;;  %v4035_v40 = vand.u32 4294901760, %v4034_v9  ;;  %v1608_v5 = vadd.f32 %v7315_v19, %v1468_v4 }
 0x1a5   : > { %v7468_v43 = vpop.f32.mrf.mxu1  ;;  %5444 = vmatpush3.msra.mxu0 %v7389_v24  ;;  %v1610_v22 = vadd.f32 %v7324_v36, %v1470_v13  ;;  %v1616_v11 = vadd.f32 %v7337_v37, %v1475_v44  ;;  %v1624_v21 = vadd.f32 %v8546_v1, %v1482_v51 }
 0x1a6   : > { %5445 = vmatprep.subr.mxu0 %v7408_v41  ;;  %v1902_v61 = vpop.f32.mrf.mxu0  ;;  %v1741_v50 = vadd.f32 %v7348_v32, %v1602_v57  ;;  %v1748_v19 = vadd.f32 %v7360_v48, %v1608_v5 }
 0x1a7   : > { %v2017_v31 = vpop.f32.mrf.mxu1  ;;  %3673 = vmatmul.mubr.f32.gmra.mxu0 %v6062_v47  ;;  %3788 = vmatmul.mubr.f32.vlgmr.msra.gmra.mxu1 %v6058_v45  ;;  %v1750_v7 = vadd.f32 %v7368_v34, %v1610_v22  ;;  %v1757_v37 = vadd.f32 %v7378_v62, %v1616_v11  ;;  %v8553_v22 = vld [vmem:[#allocation44_spill] sm:$0xff] }
 0x1a8   : > { %v2018_v54 = vadd.f32 %v2017_v31, %v1889_v35  ;;  %5462 = vmatpush3.msra.mxu1 %v7372_v25  ;;  %3678 = vmatprep.mubr.f32.mxu0 %v8421_v52  ;;  %v1904_v18 = vpop.f32.mrf.mxu0  ;;  %v1896_v31 = vadd.f32 %v1895_v14, %v1739_v27  ;;  %v1898_v36 = vadd.f32 %v1897_v6, %v1741_v50  ;;  %v4042_v25 = vand.u32 4294901760, %v4041_v26  ;;  %v8547_v27 = vld [vmem:[#allocation41_spill] sm:$0xff] }
 0x1a9   : > { %v2019_v28 = vpop.f32.mrf.mxu1  ;;  %3793 = vmatprep.mubr.f32.mxu1 %v8421_v52  ;;  %5463 = vmatprep.subr.mxu1 %v4028_v20  ;;  %v1903_v16 = vadd.f32 %v1902_v61, %v1748_v19  ;;  %v1905_v61 = vadd.f32 %v1904_v18, %v1750_v7  ;;  %v8548_v18 = vld [vmem:[#allocation33_spill] sm:$0xff]  ;;  %v1766_v50 = vadd.f32 %v8553_v22, %v1624_v21 }
 0x1aa   : > { %v4631_v33 = vsub.f32 0.0, %v2018_v54  ;;  %v2020_v39 = vadd.f32 %v2019_v28, %v1891_v55  ;;  %5464 = vmatpush3.msra.mxu1 %v4028_v20  ;;  %5446 = vmatpush3.msra.mxu0 %v7408_v41  ;;  %v1909_v23 = vpop.f32.mrf.mxu0  ;;  %v7520_v20 = vadd.f32 %v7271_v2, %v7240_v49  ;;  %v1496_v49 = vadd.f32 %v7275_v3, %v7246_v12  ;;  %v8545_v2 = vld [vmem:[#allocation46_spill] sm:$0xff]  ;;  %v8549_v28 = vld [vmem:[#allocation35_spill] sm:$0xff] }
 0x1ab   : > { %v2024_v0 = vpop.f32.mrf.mxu1  ;;  %3680 = vmatmul.mubr.f32.gmra.mxu0 %v8449_v56  ;;  %3795 = vmatmul.mubr.f32.gmra.mxu1 %v6060_v46  ;;  %v1618_v62 = vadd.f32 %v8545_v2, %v7486_v63  ;;  %v1910_v55 = vadd.f32 %v1909_v23, %v1757_v37  ;;  %v8550_v12 = vld [vmem:[#allocation42_spill] sm:$0xff]  ;;  %v8558_v37 = vld [vmem:[#allocation4_spill] sm:$0xff] }
 0x1ac   : > { %v4705_v17 = vmul.f32 1.442695, %v4631_v33  ;;  %v4632_v42 = vsub.f32 0.0, %v2020_v39  ;;  %v2025_v14 = vadd.f32 %v2024_v0, %v1896_v31  ;;  %3685 = vmatprep.mubr.f32.mxu0 %v8421_v52  ;;  %3800 = vmatprep.mubr.f32.mxu1 %v8421_v52  ;;  %v1911_v32 = vpop.f32.mrf.mxu0  ;;  %v1626_v3 = vadd.f32 %v8550_v12, %v7497_v38  ;;  %v8551_v63 = vld [vmem:[#allocation54_spill] sm:$0xff]  ;;  %v8552_v39 = vld [vmem:[#allocation17_spill] sm:$0xff]  ;;  %v8555_v38 = vld [vmem:[#allocation8_spill] sm:$0xff] }
 0x1ad   : > { %v2026_v58 = vpop.f32.mrf.mxu1  ;;  %5465 = vmatprep.subr.mxu1 %v4035_v40  ;;  %5447 = vmatprep.subr.mxu0 %v7410_v59  ;;  %v1759_v5 = vadd.f32 %v8551_v63, %v1618_v62 }
 0x1ae   : > { %5653 = vpow2.f32 %v4705_v17  ;;  %v4707_v48 = vmul.f32 1.442695, %v4632_v42  ;;  %v4640_v53 = vsub.f32 0.0, %v2025_v14  ;;  %5466 = vmatpush3.msra.mxu1 %v4035_v40  ;;  %5448 = vmatpush3.msra.mxu0 %v7410_v59  ;;  %v2027_v34 = vadd.f32 %v2026_v58, %v1898_v36  ;;  %v1916_v6 = vpop.f32.mrf.mxu0  ;;  %v8554_v17 = vld [vmem:[#allocation34_spill] sm:$0xff]  ;;  %v8556_v14 = vld [vmem:[#allocation43_spill] sm:$0xff] }
 0x1af   : > { %v2031_v9 = vpop.f32.mrf.mxu1  ;;  %3687 = vmatmul.mubr.f32.gmra.mxu0 %v8452_v29  ;;  %3802 = vmatmul.mubr.f32.gmra.mxu1 %v6062_v47  ;;  %v1498_v40 = vadd.f32 %v8549_v28, %v8548_v18  ;;  %v1503_v42 = vadd.f32 %v8555_v38, %v8554_v17  ;;  %v1768_v11 = vadd.f32 %v8556_v14, %v1626_v3  ;;  %v8565_v3 = vld [vmem:[#allocation58_spill] sm:$0xff]  ;;  %v8569_v38 = vld [vmem:[#allocation57_spill] sm:$0xff] }
 0x1b0   : > { %5655 = vpow2.f32 %v4707_v48  ;;  %v4723_v26 = vmul.f32 1.442695, %v4640_v53  ;;  %v2032_v4 = vadd.f32 %v2031_v9, %v1903_v16  ;;  %3692 = vmatprep.mubr.f32.mxu0 %v8421_v52  ;;  %3807 = vmatprep.mubr.f32.mxu1 %v8421_v52  ;;  %v4641_v35 = vsub.f32 0.0, %v2027_v34  ;;  %v1918_v13 = vpop.f32.mrf.mxu0  ;;  %v8559_v34 = vld [vmem:[#allocation36_spill] sm:$0xff] }
 0x1b1   : > { %v2033_v44 = vpop.f32.mrf.mxu1  ;;  %5467 = vmatprep.subr.mxu1 %v4042_v25  ;;  %5481 = vmatprep.subr.mxu0 %v8547_v27  ;;  %v1912_v7 = vadd.f32 %v1911_v32, %v1759_v5  ;;  %v1917_v16 = vadd.f32 %v1916_v6, %v1766_v50  ;;  %v7549_v9 = vadd.f32 %v8559_v34, %v8558_v37  ;;  %v8561_v32 = vld [vmem:[#allocation21_spill] sm:$0xff] }
 0x1b2   : > { %5657 = vpow2.f32 %v4723_v26  ;;  %v4649_v54 = vsub.f32 0.0, %v2032_v4  ;;  %v2034_v57 = vadd.f32 %v2033_v44, %v1905_v61  ;;  %5468 = vmatpush3.msra.mxu1 %v4042_v25  ;;  %v4725_v51 = vmul.f32 1.442695, %v4641_v35  ;;  %v1923_v31 = vpop.f32.mrf.mxu0  ;;  %v8557_v25 = vld [vmem:[#allocation40_spill] sm:$0xff]  ;;  %v8567_v50 = vld [vmem:[#allocation53_spill] sm:$0xff] }
 0x1b3   : > { %v2038_v33 = vpop.f32.mrf.mxu1  ;;  %3694 = vmatmul.mubr.f32.gmra.mxu0 %v8552_v39  ;;  %3809 = vmatmul.mubr.f32.gmra.mxu1 %v8449_v56  ;;  %v8560_v61 = vld [vmem:[#allocation48_spill] sm:$0xff]  ;;  %v1919_v1 = vadd.f32 %v1918_v13, %v1768_v11  ;;  %v1642_v63 = vadd.f32 %v8565_v3, %v1498_v40 }
 0x1b4   : > { %v4741_v23 = vmul.f32 1.442695, %v4649_v54  ;;  %v4650_v0 = vsub.f32 0.0, %v2034_v57  ;;  %v2039_v19 = vadd.f32 %v2038_v33, %v1910_v55  ;;  %3699 = vmatprep.mubr.f32.mxu0 %v8421_v52  ;;  %3814 = vmatprep.mubr.f32.mxu1 %v8421_v52  ;;  %5659 = vpow2.f32 %v4725_v51  ;;  %v1925_v36 = vpop.f32.mrf.mxu0  ;;  %v8562_v35 = vld [vmem:[#allocation52_spill] sm:$0xff]  ;;  %v8563_v55 = vld [vmem:[#allocation38_spill] sm:$0xff]  ;;  %v8564_v54 = vld [vmem:[#allocation49_spill] sm:$0xff] }
 0x1b5   : > { %v2040_v58 = vpop.f32.mrf.mxu1  ;;  %5501 = vmatprep.subr.mxu1 %v8557_v25  ;;  %v1632_v26 = vadd.f32 %v8560_v61, %v7505_v15  ;;  %v1634_v44 = vadd.f32 %v8562_v35, %v7520_v20  ;;  %v1640_v15 = vadd.f32 %v8563_v55, %v1496_v49  ;;  %v8566_v33 = vld [vmem:[#allocation45_spill] sm:$0xff] }
 0x1b6   : > { %5661 = vpow2.f32 %v4741_v23  ;;  %v4743_v48 = vmul.f32 1.442695, %v4650_v0  ;;  %v4658_v53 = vsub.f32 0.0, %v2039_v19  ;;  %v2041_v4 = vadd.f32 %v2040_v58, %v1912_v7  ;;  %v1930_v2 = vpop.f32.mrf.mxu0  ;;  %v8568_v49 = vld [vmem:[#allocation25_spill] sm:$0xff]  ;;  %v8570_v58 = vld [vmem:[#allocation12_spill] sm:$0xff] }
 0x1b7   : > { %v2045_v62 = vpop.f32.mrf.mxu1  ;;  %3701 = vmatmul.mubr.f32.gmra.mxu0 %v8561_v32  ;;  %3816 = vmatmul.mubr.f32.gmra.mxu1 %v8452_v29  ;;  %v1775_v57 = vadd.f32 %v8564_v54, %v1632_v26  ;;  %v1648_v22 = vadd.f32 %v8566_v33, %v1503_v42  ;;  %v1777_v23 = vadd.f32 %v8567_v50, %v1634_v44  ;;  %v8575_v33 = vld [vmem:[#allocation39_spill] sm:$0xff] }
 0x1b8   : > { %5663 = vpow2.f32 %v4743_v48  ;;  %v4759_v6 = vmul.f32 1.442695, %v4658_v53  ;;  %v2046_v21 = vadd.f32 %v2045_v62, %v1917_v16  ;;  %3706 = vmatprep.mubr.f32.mxu0 %v8421_v52  ;;  %3821 = vmatprep.mubr.f32.mxu1 %v8421_v52  ;;  %v4659_v18 = vsub.f32 0.0, %v2041_v4  ;;  %v1932_v28 = vpop.f32.mrf.mxu0  ;;  %v8571_v16 = vld [vmem:[#allocation59_spill] sm:$0xff] }
 0x1b9   : > { %v2047_v12 = vpop.f32.mrf.mxu1  ;;  %v1924_v0 = vadd.f32 %v1923_v31, %v1775_v57  ;;  %v1784_v14 = vadd.f32 %v8569_v38, %v1640_v15  ;;  %v1786_v48 = vadd.f32 %v8571_v16, %v1642_v63  ;;  %v1926_v31 = vadd.f32 %v1925_v36, %v1777_v23  ;;  %v8572_v36 = vld [vmem:[#allocation13_spill] sm:$0xff]  ;;  %v8577_v38 = vld [vmem:[#allocation26_spill] sm:$0xff] }
 0x1ba   : > { %5665 = vpow2.f32 %v4759_v6  ;;  %v4667_v13 = vsub.f32 0.0, %v2046_v21  ;;  %v2048_v5 = vadd.f32 %v2047_v12, %v1919_v1  ;;  %v4761_v19 = vmul.f32 1.442695, %v4659_v18  ;;  %v1937_v20 = vpop.f32.mrf.mxu0 }
 0x1bb   : > { %v5654_v51 = vpop.eup %5653  ;;  %v2052_v17 = vpop.f32.mrf.mxu1  ;;  %3708 = vmatmul.mubr.f32.gmra.mxu0 %v8568_v49  ;;  %3823 = vmatmul.mubr.f32.gmra.mxu1 %v8552_v39  ;;  %v1931_v26 = vadd.f32 %v1930_v2, %v1784_v14  ;;  %v1793_v1 = vadd.f32 %v7456_v10, %v1648_v22  ;;  %v1933_v15 = vadd.f32 %v1932_v28, %v1786_v48  ;;  %v8573_v2 = vld [vmem:[#allocation18_spill] sm:$0xff]  ;;  %v8574_v10 = vld [vmem:[#allocation51_spill] sm:$0xff] }
 0x1bc   : > { %v4847_v11 = vadd.f32 1.0, %v5654_v51  ;;  %v4777_v40 = vmul.f32 1.442695, %v4667_v13  ;;  %v4668_v7 = vsub.f32 0.0, %v2048_v5  ;;  %3828 = vmatprep.mubr.f32.mxu1 %v8421_v52  ;;  %5449 = vmatprep.mubr.f32.mxu0 %v8570_v58  ;;  %5667 = vpow2.f32 %v4761_v19  ;;  %v1939_v37 = vpop.f32.mrf.mxu0  ;;  %v8576_v19 = vld [vmem:[#allocation22_spill] sm:$0xff] }
 0x1bd   : > { %v5656_v42 = vpop.eup %5655  ;;  %v2053_v53 = vadd.f32 %v2052_v17, %v1924_v0  ;;  %v2054_v34 = vpop.f32.mrf.mxu1  ;;  %v1650_v57 = vadd.f32 %v8574_v10, %v7549_v9  ;;  %v1938_v5 = vadd.f32 %v1937_v20, %v1793_v1 }
 0x1be   : > { %5669 = vrcp.f32 %v4847_v11  ;;  %v4848_v61 = vadd.f32 1.0, %v5656_v42  ;;  %v4779_v4 = vmul.f32 1.442695, %v4668_v7  ;;  %v2055_v21 = vadd.f32 %v2054_v34, %v1926_v31  ;;  %v7571_v44 = vpop.f32.mrf.mxu0 }
 0x1bf   : > { %v5658_v62 = vpop.eup %5657  ;;  %5671 = vpow2.f32 %v4777_v40  ;;  %v4676_v6 = vsub.f32 0.0, %v2053_v53  ;;  %v2059_v35 = vpop.f32.mrf.mxu1  ;;  %3830 = vmatmul.mubr.f32.gmra.mxu1 %v8561_v32  ;;  %5450 = vmatmul.mubr.f32.vlgmr.msra.gmra.mxu0 %v8572_v36  ;;  %v1795_v22 = vadd.f32 %v7468_v43, %v1650_v57 }
 0x1c0   : > { %5673 = vrcp.f32 %v4848_v61  ;;  %v4856_v55 = vadd.f32 1.0, %v5658_v62  ;;  %v2060_v54 = vadd.f32 %v2059_v35, %v1931_v26  ;;  %3835 = vmatprep.mubr.f32.mxu1 %v8421_v52  ;;  %5452 = vmatprep.mubr.f32.mxu0 %v8573_v2  ;;  %v4677_v12 = vsub.f32 0.0, %v2055_v21  ;;  %v7579_v63 = vpop.f32.mrf.mxu0  ;;  %v8580_v2 = vld [vmem:[#allocation32_spill] sm:$0xff] }
 0x1c1   : > { %5675 = vpow2.f32 %v4779_v4  ;;  %v4795_v18 = vmul.f32 1.442695, %v4676_v6  ;;  %v2061_v3 = vpop.f32.mrf.mxu1  ;;  %5482 = vmatpush3.msra.mxu0 %v8547_v27  ;;  %v5660_v13 = vpop.eup %5659  ;;  %v1940_v43 = vadd.f32 %v1939_v37, %v1795_v22  ;;  %v8578_v37 = vld [vmem:[#allocation29_spill] sm:$0xff]  ;;  %v8579_v4 = vld [vmem:[#allocation31_spill] sm:$0xff]  ;;  %v8583_v22 = vld [vmem:[#allocation6_spill] sm:$0xff] }
 0x1c2   : > { %5677 = vrcp.f32 %v4856_v55  ;;  %v4685_v28 = vsub.f32 0.0, %v2060_v54  ;;  %v2062_v51 = vadd.f32 %v2061_v3, %v1933_v15  ;;  %5483 = vmatprep.subr.mxu0 %v8575_v33  ;;  %v4857_v50 = vadd.f32 1.0, %v5660_v13  ;;  %v7584_v0 = vpop.f32.mrf.mxu0  ;;  %v8581_v3 = vld [vmem:[#allocation5_spill] sm:$0xff] }
 0x1c3   : > { %v5662_v52 = vpop.eup %5661  ;;  %5679 = vpow2.f32 %v4795_v18  ;;  %v4797_v9 = vmul.f32 1.442695, %v4677_v12  ;;  %v2066_v23 = vpop.f32.mrf.mxu1  ;;  %3837 = vmatmul.mubr.f32.gmra.mxu1 %v8568_v49  ;;  %5453 = vmatmul.mubr.f32.gmra.mxu0 %v8576_v19  ;;  %v8584_v19 = vld [vmem:[#allocation7_spill] sm:$0xff] }
 0x1c4   : > { %v4865_v27 = vadd.f32 1.0, %v5662_v52  ;;  %v4686_v17 = vsub.f32 0.0, %v2062_v51  ;;  %v2067_v20 = vadd.f32 %v2066_v23, %v1938_v5  ;;  %5455 = vmatprep.mubr.f32.mxu0 %v8577_v38  ;;  %5469 = vmatprep.mubr.f32.mxu1 %v6058_v45  ;;  %5681 = vrcp.f32 %v4857_v50  ;;  %v7590_v7 = vpop.f32.mrf.mxu0  ;;  %v8582_v5 = vld [vmem:[#allocation47_spill] sm:$0xff] }
 0x1c5   : > { %v5664_v14 = vpop.eup %5663  ;;  %v4813_v11 = vmul.f32 1.442695, %v4685_v28  ;;  %v2068_v40 = vpop.f32.mrf.mxu1  ;;  %5484 = vmatpush3.msra.mxu0 %v8575_v33 }
 0x1c6   : > { %5683 = vrcp.f32 %v4865_v27  ;;  %v4866_v58 = vadd.f32 1.0, %v5664_v14  ;;  %v4694_v42 = vsub.f32 0.0, %v2067_v20  ;;  %5485 = vmatprep.subr.mxu0 %v7428_v30  ;;  %v4815_v48 = vmul.f32 1.442695, %v4686_v17  ;;  %v7594_v53 = vpop.f32.mrf.mxu0  ;;  %v8585_v14 = vld [vmem:[#allocation9_spill] sm:$0xff] }
 0x1c7   : > { %v5666_v16 = vpop.eup %5665  ;;  %5685 = vpow2.f32 %v4797_v9  ;;  %v2069_v31 = vadd.f32 %v2068_v40, %v1940_v43  ;;  %v7596_v34 = vpop.f32.mrf.mxu1  ;;  %5456 = vmatmul.mubr.f32.gmra.mxu0 %v8578_v37  ;;  %5470 = vmatmul.mubr.f32.vlgmr.msra.gmra.mxu1 %v6060_v46  ;;  %v8587_v40 = vld [vmem:[#allocation10_spill] sm:$0xff] }
 0x1c8   : > { %5687 = vrcp.f32 %v4866_v58  ;;  %v4874_v61 = vadd.f32 1.0, %v5666_v16  ;;  %v4831_v26 = vmul.f32 1.442695, %v4694_v42  ;;  %5502 = vmatpush3.msra.mxu1 %v8557_v25  ;;  %5458 = vmatprep.mubr.f32.mxu0 %v8579_v4  ;;  %v7602_v1 = vpop.f32.mrf.mxu0 }
 0x1c9   : > { %5689 = vpow2.f32 %v4813_v11  ;;  %v4695_v62 = vsub.f32 0.0, %v2069_v31  ;;  %v7604_v6 = vpop.f32.mrf.mxu1  ;;  %5472 = vmatprep.mubr.f32.mxu1 %v6062_v47  ;;  %5503 = vmatprep.subr.mxu1 %v7389_v24  ;;  %v5668_v21 = vpop.eup %5667  ;;  %v8586_v11 = vld [vmem:[#allocation16_spill] sm:$0xff] }
 0x1ca   : > { %5691 = vrcp.f32 %v4874_v61  ;;  %5486 = vmatpush3.msra.mxu0 %v7428_v30  ;;  %5504 = vmatpush3.msra.mxu1 %v7389_v24  ;;  %v4875_v36 = vadd.f32 1.0, %v5668_v21  ;;  %v7610_v15 = vpop.f32.mrf.mxu0  ;;  %v8588_v31 = vld [vmem:[#allocation60_spill] sm:$0xff] }
 0x1cb   : > { %v5670_v35 = vpop.eup %5669  ;;  %5693 = vpow2.f32 %v4815_v48  ;;  %v4833_v55 = vmul.f32 1.442695, %v4695_v62  ;;  %v7612_v54 = vpop.f32.mrf.mxu1  ;;  %5459 = vmatmul.mubr.f32.gmra.mxu0 %v8580_v2  ;;  %5473 = vmatmul.mubr.f32.gmra.mxu1 %v8449_v56  ;;  %v8589_v21 = vld [vmem:[#allocation20_spill] sm:$0xff] }
 0x1cc   : > { %v5672_v10 = vpop.eup %5671  ;;  %5063 = vst [vmem:[%s7199_s9 + $0x10] sm:$0xff] %v5670_v35  ;;  %5695 = vpow2.f32 %v4831_v26  ;;  %5487 = vmatprep.subr.mxu0 %v7431_v60  ;;  %5475 = vmatprep.mubr.f32.mxu1 %v8452_v29  ;;  %v7619_v18 = vpop.f32.mrf.mxu0  ;;  %v8590_v35 = vld [vmem:[#allocation11_spill] sm:$0xff] }
 0x1cd   : > { %v5674_v30 = vpop.eup %5673  ;;  %5697 = vrcp.f32 %v4875_v36  ;;  %v4883_v57 = vadd.f32 1.0, %v5672_v10  ;;  %v7621_v12 = vpop.f32.mrf.mxu1  ;;  %5488 = vmatpush3.msra.mxu0 %v7431_v60  ;;  %5489 = vmatprep.mubr.f32.mxu0 %v8581_v3  ;;  %v8592_v3 = vld [vmem:[#allocation14_spill] sm:$0xff] }
 0x1ce   : > { %v5676_v13 = vpop.eup %5675  ;;  %5064 = vst [vmem:[%s7199_s9 + $0x18] sm:$0xff] %v5674_v30  ;;  %5699 = vpow2.f32 %v4833_v55  ;;  %5505 = vmatprep.subr.mxu1 %v7408_v41  ;;  %5521 = vmatprep.subr.mxu0 %v8582_v5  ;;  %v7628_v33 = vpop.f32.mrf.mxu0  ;;  %v8591_v55 = vld [vmem:[#allocation24_spill] sm:$0xff] }
 0x1cf   : > { %v5678_v28 = vpop.eup %5677  ;;  %5701 = vrcp.f32 %v4883_v57  ;;  %v4884_v51 = vadd.f32 1.0, %v5676_v13  ;;  %v7630_v52 = vpop.f32.mrf.mxu1  ;;  %5476 = vmatmul.mubr.f32.gmra.mxu1 %v8552_v39  ;;  %5490 = vmatmul.mubr.f32.vlgmr.msra.gmra.mxu0 %v8583_v22  ;;  %v8593_v22 = vld [vmem:[#allocation28_spill] sm:$0xff] }
 0x1d0   : > { %v5680_v60 = vpop.eup %5679  ;;  %5072 = vst [vmem:[%s7199_s9 + $0x58] sm:$0xff] %v5678_v28  ;;  %5506 = vmatpush3.msra.mxu1 %v7408_v41  ;;  %5478 = vmatprep.mubr.f32.mxu1 %v8561_v32  ;;  %v7637_v9 = vpop.f32.mrf.mxu0 }
 0x1d1   : > { %5703 = vrcp.f32 %v4884_v51  ;;  %v4892_v50 = vadd.f32 1.0, %v5680_v60  ;;  %v7639_v23 = vpop.f32.mrf.mxu1  ;;  %5492 = vmatprep.mubr.f32.mxu0 %v8584_v19  ;;  %5507 = vmatprep.subr.mxu1 %v7410_v59  ;;  %v5682_v27 = vpop.eup %5681  ;;  %v8594_v60 = vld [vmem:[#allocation15_spill] sm:$0xff] }
 0x1d2   : > { %5508 = vmatpush3.msra.mxu1 %v7410_v59  ;;  %5522 = vmatpush3.msra.mxu0 %v8582_v5  ;;  %5073 = vst [vmem:[%s7199_s9 + $0x60] sm:$0xff] %v5682_v27  ;;  %v7646_v20 = vpop.f32.mrf.mxu0  ;;  %v8595_v27 = vld [vmem:[#allocation62_spill] sm:$0xff] }
 0x1d3   : > { %v5684_v17 = vpop.eup %5683  ;;  %5705 = vrcp.f32 %v4892_v50  ;;  %v7648_v38 = vpop.f32.mrf.mxu1  ;;  %5479 = vmatmul.mubr.f32.gmra.mxu1 %v8568_v49  ;;  %5493 = vmatmul.mubr.f32.gmra.mxu0 %v8585_v14  ;;  %v8596_v14 = vld [vmem:[#allocation19_spill] sm:$0xff] }
 0x1d4   : > { %v5686_v43 = vpop.eup %5685  ;;  %5081 = vst [vmem:[%s7199_s9 + $0xa0] sm:$0xff] %v5684_v17  ;;  %5495 = vmatprep.mubr.f32.mxu0 %v8586_v11  ;;  %5509 = vmatprep.mubr.f32.mxu1 %v8587_v40  ;;  %v7655_v16 = vpop.f32.mrf.mxu0  ;;  %v8597_v40 = vld [vmem:[#allocation23_spill] sm:$0xff] }
 0x1d5   : > { %v5688_v58 = vpop.eup %5687  ;;  %v4893_v42 = vadd.f32 1.0, %v5686_v43  ;;  %v7657_v48 = vpop.f32.mrf.mxu1  ;;  %5541 = vmatprep.subr.mxu1 %v8557_v25  ;;  %5523 = vmatprep.subr.mxu0 %v8588_v31 }
 0x1d6   : > { %v5690_v37 = vpop.eup %5689  ;;  %5082 = vst [vmem:[%s7199_s9 + $0xa8] sm:$0xff] %v5688_v58  ;;  %5524 = vmatpush3.msra.mxu0 %v8588_v31  ;;  %v7663_v4 = vpop.f32.mrf.mxu0 }
 0x1d7   : > { %v5692_v61 = vpop.eup %5691  ;;  %5707 = vrcp.f32 %v4893_v42  ;;  %v4901_v26 = vadd.f32 1.0, %v5690_v37  ;;  %v7665_v62 = vpop.f32.mrf.mxu1  ;;  %5496 = vmatmul.mubr.f32.gmra.mxu0 %v8589_v21  ;;  %5510 = vmatmul.mubr.f32.vlgmr.msra.gmra.mxu1 %v8590_v35  ;;  %v8598_v42 = vld [vmem:[#allocation27_spill] sm:$0xff]  ;;  %v8599_v21 = vld [vmem:[#allocation30_spill] sm:$0xff] }
 0x1d8   : > { %v5694_v36 = vpop.eup %5693  ;;  %5090 = vst [vmem:[%s7199_s9 + $0xe8] sm:$0xff] %v5692_v61  ;;  %5542 = vmatpush3.msra.mxu1 %v8557_v25  ;;  %5498 = vmatprep.mubr.f32.mxu0 %v8591_v55  ;;  %v7672_v30 = vpop.f32.mrf.mxu0 }
 0x1d9   : > { %v5696_v2 = vpop.eup %5695  ;;  %5709 = vrcp.f32 %v4901_v26  ;;  %v4902_v10 = vadd.f32 1.0, %v5694_v36  ;;  %v7674_v57 = vpop.f32.mrf.mxu1  ;;  %5512 = vmatprep.mubr.f32.mxu1 %v8592_v3  ;;  %5525 = vmatprep.subr.mxu0 %v7447_v8 }
 0x1da   : > { %v5698_v13 = vpop.eup %5697  ;;  %v4910_v5 = vadd.f32 1.0, %v5696_v2  ;;  %5543 = vmatprep.subr.mxu1 %v7389_v24  ;;  %5526 = vmatpush3.msra.mxu0 %v7447_v8  ;;  %v7681_v28 = vpop.f32.mrf.mxu0 }
 0x1db   : > { %v5700_v25 = vpop.eup %5699  ;;  %5091 = vst [vmem:[%s7199_s9 + $0xf0] sm:$0xff] %v5698_v13  ;;  %5711 = vrcp.f32 %v4902_v10  ;;  %v7683_v51 = vpop.f32.mrf.mxu1  ;;  %5499 = vmatmul.mubr.f32.gmra.mxu0 %v8593_v22  ;;  %5513 = vmatmul.mubr.f32.gmra.mxu1 %v8594_v60 }
 0x1dc   : > { %v5702_v50 = vpop.eup %5701  ;;  %5713 = vrcp.f32 %v4910_v5  ;;  %v4911_v19 = vadd.f32 1.0, %v5700_v25  ;;  %5544 = vmatpush3.msra.mxu1 %v7389_v24  ;;  %5527 = vmatprep.subr.mxu0 %v8595_v27  ;;  %v7690_v8 = vpop.f32.mrf.mxu0 }
 0x1dd   : > { %5099 = vst [vmem:[%s7199_s9 + $0x130] sm:$0xff] %v5702_v50  ;;  %v7692_v17 = vpop.f32.mrf.mxu1  ;;  %5515 = vmatprep.mubr.f32.mxu1 %v8596_v14  ;;  %5528 = vmatpush3.msra.mxu0 %v8595_v27 }
 0x1de   : > { %v5704_v43 = vpop.eup %5703  ;;  %5715 = vrcp.f32 %v4911_v19  ;;  %5529 = vmatprep.mubr.f32.mxu0 %v6058_v45  ;;  %5545 = vmatprep.subr.mxu1 %v7408_v41  ;;  %v7701_v11 = vpop.f32.mrf.mxu0 }
 0x1df   : > { %5100 = vst [vmem:[%s7199_s9 + $0x138] sm:$0xff] %v5704_v43  ;;  %v7699_v24 = vpop.f32.mrf.mxu1  ;;  %5516 = vmatmul.mubr.f32.gmra.mxu1 %v8597_v40  ;;  %5530 = vmatmul.mubr.f32.vlgmr.msra.gmra.mxu0 %v6060_v46 }
 0x1e0   : > { %v5706_v58 = vpop.eup %5705  ;;  %5546 = vmatpush3.msra.mxu1 %v7408_v41  ;;  %5518 = vmatprep.mubr.f32.mxu1 %v8598_v42  ;;  %v7710_v37 = vpop.f32.mrf.mxu0 }
 0x1e1   : > { %5108 = vst [vmem:[%s7199_s9 + $0x178] sm:$0xff] %v5706_v58  ;;  %v7708_v31 = vpop.f32.mrf.mxu1  ;;  %5532 = vmatprep.mubr.f32.mxu0 %v6062_v47  ;;  %5547 = vmatprep.subr.mxu1 %v7410_v59 }
 0x1e2   : > { %5548 = vmatpush3.msra.mxu1 %v7410_v59  ;;  %v7717_v26 = vpop.f32.mrf.mxu0 }
 0x1e3   : > { %v7715_v61 = vpop.f32.mrf.mxu1  ;;  %5519 = vmatmul.mubr.f32.gmra.mxu1 %v8599_v21  ;;  %5533 = vmatmul.mubr.f32.gmra.mxu0 %v8449_v56 }
 0x1e4   : > { %v5708_v41 = vpop.eup %5707  ;;  %5535 = vmatprep.mubr.f32.mxu0 %v8452_v29  ;;  %5549 = vmatprep.mubr.f32.mxu1 %v6058_v45  ;;  %v7726_v36 = vpop.f32.mrf.mxu0 }
 0x1e5   : > { %5109 = vst [vmem:[%s7199_s9 + $0x180] sm:$0xff] %v5708_v41  ;;  %v7724_v35 = vpop.f32.mrf.mxu1 }
 0x1e6   : > { %8600 = vst [vmem:[#allocation65_spill] sm:$0xff] %v7724_v35  ;;  %v5710_v59 = vpop.eup %5709  ;;  %v7729_v55 = vpop.f32.mrf.mxu0 }
 0x1e7   : > { %5117 = vst [vmem:[%s7199_s9 + $0x1c0] sm:$0xff] %v5710_v59  ;;  %v2615_v2 = vpop.f32.mrf.mxu1  ;;  %5536 = vmatmul.mubr.f32.gmra.mxu0 %v8552_v39  ;;  %5550 = vmatmul.mubr.f32.vlgmr.msra.gmra.mxu1 %v6060_v46 }
 0x1e8   : > { %v5712_v10 = vpop.eup %5711  ;;  %5538 = vmatprep.mubr.f32.mxu0 %v8561_v32  ;;  %5552 = vmatprep.mubr.f32.mxu1 %v6062_v47  ;;  %v7736_v3 = vpop.f32.mrf.mxu0 }
 0x1e9   : > { %v5714_v45 = vpop.eup %5713  ;;  %5118 = vst [vmem:[%s7199_s9 + $0x1c8] sm:$0xff] %v5712_v10  ;;  %v2617_v13 = vpop.f32.mrf.mxu1 }
 0x1ea   : > { %5126 = vst [vmem:[%s7199_s9 + $0x208] sm:$0xff] %v5714_v45  ;;  %v7739_v25 = vpop.f32.mrf.mxu0  ;;  %v2340_v45 = vadd.f32 %v7596_v34, %v7571_v44 }
 0x1eb   : > { %v5716_v5 = vpop.eup %5715  ;;  %v2624_v22 = vpop.f32.mrf.mxu1  ;;  %5539 = vmatmul.mubr.f32.gmra.mxu0 %v8568_v49  ;;  %5553 = vmatmul.mubr.f32.gmra.mxu1 %v8449_v56 }
 0x1ec   : > { %5127 = vst [vmem:[%s7199_s9 + $0x210] sm:$0xff] %v5716_v5  ;;  %5555 = vmatprep.mubr.f32.mxu1 %v8452_v29  ;;  %v7745_v46 = vpop.f32.mrf.mxu0 }
 0x1ed   : > { %v2626_v47 = vpop.f32.mrf.mxu1 }
 0x1ee   : > { %v7747_v60 = vpop.f32.mrf.mxu0 }
 0x1ef   : > { %v2633_v50 = vpop.f32.mrf.mxu1  ;;  %5556 = vmatmul.mubr.f32.gmra.mxu1 %v8552_v39 }
 0x1f0   : > { %5558 = vmatprep.mubr.f32.mxu1 %v8561_v32  ;;  %v7751_v19 = vpop.f32.mrf.mxu0 }
 0x1f1   : > { %v2635_v27 = vpop.f32.mrf.mxu1 }
 0x1f2   : > { %v7753_v14 = vpop.f32.mrf.mxu0 }
 0x1f3   : > { %8601 = vst [vmem:[#allocation61_spill] sm:$0xff] %v7753_v14  ;;  %v7755_v43 = vpop.f32.mrf.mxu1  ;;  %5559 = vmatmul.mubr.f32.gmra.mxu1 %v8568_v49 }
 0x1f4   : > { %v7758_v56 = vpop.f32.mrf.mxu0 }
 0x1f5   : > { %8602 = vst [vmem:[#allocation55_spill] sm:$0xff] %v7758_v56  ;;  %v7760_v29 = vpop.f32.mrf.mxu1 }
 0x1f6   : > { %v7762_v40 = vpop.f32.mrf.mxu0 }
 0x1f7   : > { %8603 = vst [vmem:[#allocation56_spill] sm:$0xff] %v7762_v40  ;;  %v7764_v58 = vpop.f32.mrf.mxu1 }
 0x1f8   : > { %v7766_v39 = vpop.f32.mrf.mxu0 }
 0x1f9   : > { %8604 = vst [vmem:[#allocation50_spill] sm:$0xff] %v7766_v39  ;;  %v7768_v32 = vpop.f32.mrf.mxu1  ;;  %v2342_v39 = vadd.f32 %v7604_v6, %v7579_v63  ;;  %v2349_v63 = vadd.f32 %v7621_v12, %v7590_v7  ;;  %v2361_v12 = vadd.f32 %v7648_v38, %v7610_v15 }
 0x1fa   : > { %v7770_v42 = vpop.f32.mrf.mxu0 }
 0x1fb   : > { %8605 = vst [vmem:[#allocation64_spill] sm:$0xff] %v7770_v42  ;;  %v7772_v21 = vpop.f32.mrf.mxu1  ;;  %v2478_v42 = vadd.f32 %v7701_v11, %v2340_v45  ;;  %v2354_v45 = vadd.f32 %v7630_v52, %v7594_v53  ;;  %v2363_v53 = vadd.f32 %v7657_v48, %v7619_v18 }
 0x1fc   : > { %8606 = vst [vmem:[#allocation63_spill] sm:$0xff] %v7772_v21  ;;  %v7774_v41 = vpop.f32.mrf.mxu0 }
 0x1fd   : > { %8607 = vst [vmem:[#allocation46_spill] sm:$0xff] %v7774_v41  ;;  %v7776_v59 = vpop.f32.mrf.mxu1  ;;  %v2347_v41 = vadd.f32 %v7612_v54, %v7584_v0 }
 0x1fe   : > { %8608 = vst [vmem:[#allocation37_spill] sm:$0xff] %v7776_v59  ;;  %v2774_v10 = vpop.f32.mrf.mxu0  ;;  %v2616_v59 = vadd.f32 %v2615_v2, %v2478_v42  ;;  %v2488_v2 = vadd.f32 %v7726_v36, %v2349_v63  ;;  %v2504_v63 = vadd.f32 %v7745_v46, %v2363_v53  ;;  %v8613_v53 = vld [vmem:[#allocation61_spill] sm:$0xff] }
 0x1ff   : > { %v7778_v49 = vpop.f32.mrf.mxu1  ;;  %v2486_v34 = vadd.f32 %v7717_v26, %v2347_v41 }
 0x200   : > { %8609 = vst [vmem:[#allocation41_spill] sm:$0xff] %v7778_v49  ;;  %v2776_v40 = vpop.f32.mrf.mxu0  ;;  %v2480_v49 = vadd.f32 %v7710_v37, %v2342_v39  ;;  %v2775_v35 = vadd.f32 %v2774_v10, %v2616_v59  ;;  %v2356_v37 = vadd.f32 %v7639_v23, %v7602_v1 }
 0x201   : > { %v7782_v5 = vpop.f32.mrf.mxu1 }
 0x202   : > { %8610 = vst [vmem:[#allocation33_spill] sm:$0xff] %v7782_v5  ;;  %v2781_v21 = vpop.f32.mrf.mxu0  ;;  %v2618_v5 = vadd.f32 %v2617_v13, %v2480_v49  ;;  %v2494_v13 = vadd.f32 %v7729_v55, %v2354_v45  ;;  %v2496_v52 = vadd.f32 %v7736_v3, %v2356_v37  ;;  %v2368_v55 = vadd.f32 %v7665_v62, %v7628_v33 }
 0x203   : > { %v7787_v56 = vpop.f32.mrf.mxu1  ;;  %v2370_v3 = vadd.f32 %v7674_v57, %v7637_v9  ;;  %v2382_v45 = vadd.f32 %v7699_v24, %v7663_v4 }
 0x204   : > { %8611 = vst [vmem:[#allocation35_spill] sm:$0xff] %v7787_v56  ;;  %v2783_v44 = vpop.f32.mrf.mxu0  ;;  %v2625_v56 = vadd.f32 %v2624_v22, %v2486_v34  ;;  %v2777_v0 = vadd.f32 %v2776_v40, %v2618_v5  ;;  %v2634_v23 = vadd.f32 %v2633_v50, %v2494_v13  ;;  %v2377_v34 = vadd.f32 %v7692_v17, %v7655_v16 }
 0x205   : > { %v7792_v14 = vpop.f32.mrf.mxu1 }
 0x206   : > { %v2788_v6 = vpop.f32.mrf.mxu0  ;;  %v2782_v42 = vadd.f32 %v2781_v21, %v2625_v56  ;;  %v2502_v56 = vadd.f32 %v7739_v25, %v2361_v12  ;;  %v2636_v21 = vadd.f32 %v2635_v27, %v2496_v52 }
 0x207   : > { %v2903_v11 = vpop.f32.mrf.mxu1  ;;  %v2789_v10 = vadd.f32 %v2788_v6, %v2634_v23  ;;  %v2510_v6 = vadd.f32 %v7747_v60, %v2368_v55  ;;  %v8614_v23 = vld [vmem:[#allocation55_spill] sm:$0xff] }
 0x208   : > { %v2904_v54 = vadd.f32 %v2903_v11, %v2775_v35  ;;  %v2790_v39 = vpop.f32.mrf.mxu0  ;;  %v2627_v35 = vadd.f32 %v2626_v47, %v2488_v2  ;;  %v2375_v47 = vadd.f32 %v7683_v51, %v7646_v20  ;;  %v2643_v50 = vadd.f32 %v7755_v43, %v2502_v56  ;;  %v8616_v55 = vld [vmem:[#allocation63_spill] sm:$0xff] }
 0x209   : > { %v2905_v26 = vpop.f32.mrf.mxu1  ;;  %v2791_v25 = vadd.f32 %v2790_v39, %v2636_v21  ;;  %v2652_v46 = vadd.f32 %v7764_v58, %v2510_v6  ;;  %v8612_v58 = vld [vmem:[#allocation65_spill] sm:$0xff] }
 0x20a   : > { %v4633_v41 = vsub.f32 0.0, %v2904_v54  ;;  %v2906_v7 = vadd.f32 %v2905_v26, %v2777_v0  ;;  %v2795_v22 = vpop.f32.mrf.mxu0  ;;  %v2784_v49 = vadd.f32 %v2783_v44, %v2627_v35  ;;  %v2512_v0 = vadd.f32 %v7751_v19, %v2370_v3  ;;  %v8619_v3 = vld [vmem:[#allocation37_spill] sm:$0xff] }
 0x20b   : > { %v2910_v1 = vpop.f32.mrf.mxu1  ;;  %v2796_v20 = vadd.f32 %v2795_v22, %v2643_v50  ;;  %v2645_v54 = vadd.f32 %v7760_v29, %v2504_v63  ;;  %v2384_v26 = vadd.f32 %v7708_v31, %v7672_v30  ;;  %v2391_v12 = vadd.f32 %v8612_v58, %v7690_v8 }
 0x20c   : > { %v4709_v36 = vmul.f32 1.442695, %v4633_v41  ;;  %v4634_v40 = vsub.f32 0.0, %v2906_v7  ;;  %v2911_v59 = vadd.f32 %v2910_v1, %v2782_v42  ;;  %v2797_v15 = vpop.f32.mrf.mxu0  ;;  %v2654_v13 = vadd.f32 %v7768_v32, %v2512_v0 }
 0x20d   : > { %v2912_v38 = vpop.f32.mrf.mxu1  ;;  %v2798_v42 = vadd.f32 %v2797_v15, %v2645_v54  ;;  %v2389_v7 = vadd.f32 %v7715_v61, %v7681_v28  ;;  %v2518_v52 = vadd.f32 %v8613_v53, %v2375_v47 }
 0x20e   : > { %5717 = vpow2.f32 %v4709_v36  ;;  %v4711_v18 = vmul.f32 1.442695, %v4634_v40  ;;  %v4642_v48 = vsub.f32 0.0, %v2911_v59  ;;  %v2913_v5 = vadd.f32 %v2912_v38, %v2784_v49  ;;  %v2802_v33 = vpop.f32.mrf.mxu0  ;;  %v8615_v40 = vld [vmem:[#allocation56_spill] sm:$0xff]  ;;  %v8617_v49 = vld [vmem:[#allocation50_spill] sm:$0xff] }
 0x20f   : > { %v2917_v62 = vpop.f32.mrf.mxu1  ;;  %v2803_v19 = vadd.f32 %v2802_v33, %v2652_v46  ;;  %v2520_v36 = vadd.f32 %v8614_v23, %v2377_v34  ;;  %v2526_v59 = vadd.f32 %v8615_v40, %v2382_v45  ;;  %v2661_v56 = vadd.f32 %v8616_v55, %v2518_v52 }
 0x210   : > { %5719 = vpow2.f32 %v4711_v18  ;;  %v4727_v27 = vmul.f32 1.442695, %v4642_v48  ;;  %v2918_v44 = vadd.f32 %v2917_v62, %v2789_v10  ;;  %v4643_v9 = vsub.f32 0.0, %v2913_v5  ;;  %v2804_v57 = vpop.f32.mrf.mxu0  ;;  %v8618_v18 = vld [vmem:[#allocation64_spill] sm:$0xff] }
 0x211   : > { %v2919_v11 = vpop.f32.mrf.mxu1  ;;  %v2805_v32 = vadd.f32 %v2804_v57, %v2654_v13  ;;  %v2528_v8 = vadd.f32 %v8617_v49, %v2384_v26  ;;  %v2534_v48 = vadd.f32 %v8618_v18, %v2389_v7  ;;  %v2663_v47 = vadd.f32 %v8619_v3, %v2520_v36 }
 0x212   : > { %5721 = vpow2.f32 %v4727_v27  ;;  %v4651_v51 = vsub.f32 0.0, %v2918_v44  ;;  %v2920_v43 = vadd.f32 %v2919_v11, %v2791_v25  ;;  %v4729_v37 = vmul.f32 1.442695, %v4643_v9  ;;  %v2809_v16 = vpop.f32.mrf.mxu0  ;;  %v8620_v25 = vld [vmem:[#allocation41_spill] sm:$0xff] }
 0x213   : > { %v2924_v17 = vpop.f32.mrf.mxu1  ;;  %v2810_v50 = vadd.f32 %v2809_v16, %v2661_v56  ;;  %v2670_v27 = vadd.f32 %v8620_v25, %v2526_v59  ;;  %v8621_v9 = vld [vmem:[#allocation33_spill] sm:$0xff]  ;;  %v8622_v16 = vld [vmem:[#allocation35_spill] sm:$0xff] }
 0x214   : > { %v4745_v60 = vmul.f32 1.442695, %v4651_v51  ;;  %v4652_v2 = vsub.f32 0.0, %v2920_v43  ;;  %v2925_v39 = vadd.f32 %v2924_v17, %v2796_v20  ;;  %5723 = vpow2.f32 %v4729_v37  ;;  %v2811_v4 = vpop.f32.mrf.mxu0 }
 0x215   : > { %v2926_v24 = vpop.f32.mrf.mxu1  ;;  %v2672_v57 = vadd.f32 %v8621_v9, %v2528_v8  ;;  %v2812_v11 = vadd.f32 %v2811_v4, %v2663_v47  ;;  %v2679_v17 = vadd.f32 %v8622_v16, %v2534_v48  ;;  %v8623_v4 = vld [vmem:[#allocation46_spill] sm:$0xff] }
 0x216   : > { %5725 = vpow2.f32 %v4745_v60  ;;  %v4747_v29 = vmul.f32 1.442695, %v4652_v2  ;;  %v4660_v41 = vsub.f32 0.0, %v2925_v39  ;;  %v2927_v35 = vadd.f32 %v2926_v24, %v2798_v42  ;;  %v2816_v30 = vpop.f32.mrf.mxu0 }
 0x217   : > { %v2931_v31 = vpop.f32.mrf.mxu1  ;;  %v2817_v0 = vadd.f32 %v2816_v30, %v2670_v27  ;;  %v2536_v24 = vadd.f32 %v8623_v4, %v2391_v12 }
 0x218   : > { %5727 = vpow2.f32 %v4747_v29  ;;  %v4763_v22 = vmul.f32 1.442695, %v4660_v41  ;;  %v2932_v1 = vadd.f32 %v2931_v31, %v2803_v19  ;;  %v4661_v21 = vsub.f32 0.0, %v2927_v35  ;;  %v2818_v28 = vpop.f32.mrf.mxu0 }
 0x219   : > { %v2933_v61 = vpop.f32.mrf.mxu1  ;;  %v2819_v13 = vadd.f32 %v2818_v28, %v2672_v57  ;;  %v2681_v31 = vadd.f32 %v7792_v14, %v2536_v24 }
 0x21a   : > { %5729 = vpow2.f32 %v4763_v22  ;;  %v4669_v15 = vsub.f32 0.0, %v2932_v1  ;;  %v2934_v38 = vadd.f32 %v2933_v61, %v2805_v32  ;;  %v4765_v5 = vmul.f32 1.442695, %v4661_v21  ;;  %v2823_v33 = vpop.f32.mrf.mxu0 }
 0x21b   : > { %v5718_v10 = vpop.eup %5717  ;;  %v2938_v62 = vpop.f32.mrf.mxu1  ;;  %v2824_v53 = vadd.f32 %v2823_v33, %v2679_v17 }
 0x21c   : > { %v4849_v44 = vadd.f32 1.0, %v5718_v10  ;;  %v4781_v34 = vmul.f32 1.442695, %v4669_v15  ;;  %v4670_v63 = vsub.f32 0.0, %v2934_v38  ;;  %5731 = vpow2.f32 %v4765_v5  ;;  %v2825_v51 = vpop.f32.mrf.mxu0 }
 0x21d   : > { %v5720_v6 = vpop.eup %5719  ;;  %v2939_v20 = vadd.f32 %v2938_v62, %v2810_v50  ;;  %v2940_v43 = vpop.f32.mrf.mxu1  ;;  %v2826_v55 = vadd.f32 %v2825_v51, %v2681_v31 }
 0x21e   : > { %5733 = vrcp.f32 %v4849_v44  ;;  %v4850_v45 = vadd.f32 1.0, %v5720_v6  ;;  %v4783_v54 = vmul.f32 1.442695, %v4670_v63  ;;  %v2941_v60 = vadd.f32 %v2940_v43, %v2812_v11  ;;  %v7842_v39 = vpop.f32.mrf.mxu0 }
 0x21f   : > { %v5722_v37 = vpop.eup %5721  ;;  %5735 = vpow2.f32 %v4781_v34  ;;  %v4678_v46 = vsub.f32 0.0, %v2939_v20  ;;  %v2945_v2 = vpop.f32.mrf.mxu1 }
 0x220   : > { %5737 = vrcp.f32 %v4850_v45  ;;  %v4858_v26 = vadd.f32 1.0, %v5722_v37  ;;  %v2946_v42 = vadd.f32 %v2945_v2, %v2817_v0  ;;  %v4679_v29 = vsub.f32 0.0, %v2941_v60  ;;  %v7845_v7 = vpop.f32.mrf.mxu0 }
 0x221   : > { %5739 = vpow2.f32 %v4783_v54  ;;  %v4799_v19 = vmul.f32 1.442695, %v4678_v46  ;;  %v2947_v41 = vpop.f32.mrf.mxu1  ;;  %v5724_v58 = vpop.eup %5723 }
 0x222   : > { %5741 = vrcp.f32 %v4858_v26  ;;  %v4687_v52 = vsub.f32 0.0, %v2946_v42  ;;  %v2948_v35 = vadd.f32 %v2947_v41, %v2819_v13  ;;  %v4859_v32 = vadd.f32 1.0, %v5724_v58  ;;  %v7848_v23 = vpop.f32.mrf.mxu0 }
 0x223   : > { %v5726_v30 = vpop.eup %5725  ;;  %5743 = vpow2.f32 %v4799_v19  ;;  %v4801_v22 = vmul.f32 1.442695, %v4679_v29  ;;  %v2952_v1 = vpop.f32.mrf.mxu1 }
 0x224   : > { %v4867_v12 = vadd.f32 1.0, %v5726_v30  ;;  %v4688_v36 = vsub.f32 0.0, %v2948_v35  ;;  %v2953_v40 = vadd.f32 %v2952_v1, %v2824_v53  ;;  %5745 = vrcp.f32 %v4859_v32  ;;  %v7850_v28 = vpop.f32.mrf.mxu0 }
 0x225   : > { %v5728_v59 = vpop.eup %5727  ;;  %v4817_v56 = vmul.f32 1.442695, %v4687_v52  ;;  %v2954_v21 = vpop.f32.mrf.mxu1 }
 0x226   : > { %5747 = vrcp.f32 %v4867_v12  ;;  %v4868_v61 = vadd.f32 1.0, %v5728_v59  ;;  %v4696_v49 = vsub.f32 0.0, %v2953_v40  ;;  %v4819_v8 = vmul.f32 1.442695, %v4688_v36  ;;  %v7852_v38 = vpop.f32.mrf.mxu0 }
 0x227   : > { %v5730_v14 = vpop.eup %5729  ;;  %5749 = vpow2.f32 %v4801_v22  ;;  %v2955_v15 = vadd.f32 %v2954_v21, %v2826_v55  ;;  %v7854_v10 = vpop.f32.mrf.mxu1 }
 0x228   : > { %5751 = vrcp.f32 %v4868_v61  ;;  %v4876_v18 = vadd.f32 1.0, %v5730_v14  ;;  %v4835_v48 = vmul.f32 1.442695, %v4696_v49  ;;  %v7856_v47 = vpop.f32.mrf.mxu0 }
 0x229   : > { %5753 = vpow2.f32 %v4817_v56  ;;  %v4697_v3 = vsub.f32 0.0, %v2955_v15  ;;  %v7858_v50 = vpop.f32.mrf.mxu1  ;;  %v5732_v5 = vpop.eup %5731 }
 0x22a   : > { %5755 = vrcp.f32 %v4876_v18  ;;  %v4877_v62 = vadd.f32 1.0, %v5732_v5  ;;  %v7860_v27 = vpop.f32.mrf.mxu0 }
 0x22b   : > { %v5734_v33 = vpop.eup %5733  ;;  %5757 = vpow2.f32 %v4819_v8  ;;  %v4837_v25 = vmul.f32 1.442695, %v4697_v3  ;;  %v7862_v44 = vpop.f32.mrf.mxu1 }
 0x22c   : > { %v5736_v34 = vpop.eup %5735  ;;  %5065 = vst [vmem:[%s7199_s9 + $0x20] sm:$0xff] %v5734_v33  ;;  %5759 = vpow2.f32 %v4835_v48  ;;  %v7865_v9 = vpop.f32.mrf.mxu0 }
 0x22d   : > { %v5738_v63 = vpop.eup %5737  ;;  %5761 = vrcp.f32 %v4877_v62  ;;  %v4885_v6 = vadd.f32 1.0, %v5736_v34  ;;  %v7867_v57 = vpop.f32.mrf.mxu1 }
 0x22e   : > { %v5740_v11 = vpop.eup %5739  ;;  %5066 = vst [vmem:[%s7199_s9 + $0x28] sm:$0xff] %v5738_v63  ;;  %5763 = vpow2.f32 %v4837_v25  ;;  %v7870_v43 = vpop.f32.mrf.mxu0 }
 0x22f   : > { %v5742_v20 = vpop.eup %5741  ;;  %5765 = vrcp.f32 %v4885_v6  ;;  %v4886_v51 = vadd.f32 1.0, %v5740_v11  ;;  %v7872_v45 = vpop.f32.mrf.mxu1 }
 0x230   : > { %v5744_v0 = vpop.eup %5743  ;;  %5074 = vst [vmem:[%s7199_s9 + $0x68] sm:$0xff] %v5742_v20  ;;  %v7875_v37 = vpop.f32.mrf.mxu0 }
 0x231   : > { %5767 = vrcp.f32 %v4886_v51  ;;  %v4894_v54 = vadd.f32 1.0, %v5744_v0  ;;  %v7877_v16 = vpop.f32.mrf.mxu1  ;;  %v5746_v17 = vpop.eup %5745 }
 0x232   : > { %5075 = vst [vmem:[%s7199_s9 + $0x70] sm:$0xff] %v5746_v17  ;;  %v7880_v60 = vpop.f32.mrf.mxu0 }
 0x233   : > { %v5748_v46 = vpop.eup %5747  ;;  %5769 = vrcp.f32 %v4894_v54  ;;  %v7882_v2 = vpop.f32.mrf.mxu1 }
 0x234   : > { %v5750_v26 = vpop.eup %5749  ;;  %5083 = vst [vmem:[%s7199_s9 + $0xb0] sm:$0xff] %v5748_v46  ;;  %v7885_v4 = vpop.f32.mrf.mxu0 }
 0x235   : > { %v5752_v13 = vpop.eup %5751  ;;  %v4895_v42 = vadd.f32 1.0, %v5750_v26  ;;  %v7887_v24 = vpop.f32.mrf.mxu1 }
 0x236   : > { %v5754_v19 = vpop.eup %5753  ;;  %5084 = vst [vmem:[%s7199_s9 + $0xb8] sm:$0xff] %v5752_v13  ;;  %v7890_v58 = vpop.f32.mrf.mxu0 }
 0x237   : > { %v5756_v29 = vpop.eup %5755  ;;  %5771 = vrcp.f32 %v4895_v42  ;;  %v4903_v41 = vadd.f32 1.0, %v5754_v19  ;;  %v7892_v53 = vpop.f32.mrf.mxu1 }
 0x238   : > { %v5758_v52 = vpop.eup %5757  ;;  %5092 = vst [vmem:[%s7199_s9 + $0xf8] sm:$0xff] %v5756_v29  ;;  %v7895_v31 = vpop.f32.mrf.mxu0 }
 0x239   : > { %v5760_v35 = vpop.eup %5759  ;;  %5773 = vrcp.f32 %v4903_v41  ;;  %v4904_v30 = vadd.f32 1.0, %v5758_v52  ;;  %v7897_v32 = vpop.f32.mrf.mxu1 }
 0x23a   : > { %v5762_v22 = vpop.eup %5761  ;;  %v4912_v1 = vadd.f32 1.0, %v5760_v35  ;;  %v7900_v36 = vpop.f32.mrf.mxu0 }
 0x23b   : > { %v5764_v12 = vpop.eup %5763  ;;  %5093 = vst [vmem:[%s7199_s9 + $0x100] sm:$0xff] %v5762_v22  ;;  %5775 = vrcp.f32 %v4904_v30  ;;  %v7902_v40 = vpop.f32.mrf.mxu1 }
 0x23c   : > { %v5766_v59 = vpop.eup %5765  ;;  %5777 = vrcp.f32 %v4912_v1  ;;  %v4913_v55 = vadd.f32 1.0, %v5764_v12  ;;  %v7905_v56 = vpop.f32.mrf.mxu0 }
 0x23d   : > { %5101 = vst [vmem:[%s7199_s9 + $0x140] sm:$0xff] %v5766_v59  ;;  %8624 = vst [vmem:[#allocation42_spill] sm:$0xff] %v7905_v56  ;;  %v7907_v21 = vpop.f32.mrf.mxu1 }
 0x23e   : > { %v5768_v61 = vpop.eup %5767  ;;  %5779 = vrcp.f32 %v4913_v55  ;;  %v3363_v14 = vpop.f32.mrf.mxu0 }
 0x23f   : > { %5102 = vst [vmem:[%s7199_s9 + $0x148] sm:$0xff] %v5768_v61  ;;  %v7910_v49 = vpop.f32.mrf.mxu1 }
 0x240   : > { %v5770_v8 = vpop.eup %5769  ;;  %v3365_v18 = vpop.f32.mrf.mxu0 }
 0x241   : > { %5110 = vst [vmem:[%s7199_s9 + $0x188] sm:$0xff] %v5770_v8  ;;  %v7913_v15 = vpop.f32.mrf.mxu1 }
 0x242   : > { %v3371_v3 = vpop.f32.mrf.mxu0 }
 0x243   : > { %v7915_v48 = vpop.f32.mrf.mxu1 }
 0x244   : > { %8625 = vst [vmem:[#allocation54_spill] sm:$0xff] %v7915_v48  ;;  %v5772_v5 = vpop.eup %5771  ;;  %v3373_v62 = vpop.f32.mrf.mxu0 }
 0x245   : > { %5111 = vst [vmem:[%s7199_s9 + $0x190] sm:$0xff] %v5772_v5  ;;  %v7918_v33 = vpop.f32.mrf.mxu1 }
 0x246   : > { %8626 = vst [vmem:[#allocation17_spill] sm:$0xff] %v7918_v33  ;;  %v5774_v25 = vpop.eup %5773  ;;  %v3379_v34 = vpop.f32.mrf.mxu0 }
 0x247   : > { %5119 = vst [vmem:[%s7199_s9 + $0x1d0] sm:$0xff] %v5774_v25  ;;  %v3501_v63 = vpop.f32.mrf.mxu1 }
 0x248   : > { %v5776_v6 = vpop.eup %5775  ;;  %v3381_v20 = vpop.f32.mrf.mxu0 }
 0x249   : > { %v5778_v11 = vpop.eup %5777  ;;  %5120 = vst [vmem:[%s7199_s9 + $0x1d8] sm:$0xff] %v5776_v6  ;;  %v3503_v51 = vpop.f32.mrf.mxu1 }
 0x24a   : > { %5128 = vst [vmem:[%s7199_s9 + $0x218] sm:$0xff] %v5778_v11  ;;  %v3226_v11 = vadd.f32 %v7854_v10, %v7842_v39 }
 0x24b   : > { %v5780_v0 = vpop.eup %5779  ;;  %v7923_v54 = vpop.f32.mrf.mxu0 }
 0x24c   : > { %v3510_v17 = vpop.f32.mrf.mxu1  ;;  %5129 = vst [vmem:[%s7199_s9 + $0x220] sm:$0xff] %v5780_v0 }
 0x24d   : > { %v7926_v46 = vpop.f32.mrf.mxu0 }
 0x24e   : > { %v3512_v26 = vpop.f32.mrf.mxu1 }
 0x24f   : > { %v7928_v13 = vpop.f32.mrf.mxu0 }
 0x250   : > { %v3519_v42 = vpop.f32.mrf.mxu1 }
 0x251   : > { %v7930_v19 = vpop.f32.mrf.mxu0 }
 0x252   : > { %v3521_v29 = vpop.f32.mrf.mxu1 }
 0x253   : > { %v7932_v41 = vpop.f32.mrf.mxu0 }
 0x254   : > { %8627 = vst [vmem:[#allocation44_spill] sm:$0xff] %v7932_v41  ;;  %v7934_v52 = vpop.f32.mrf.mxu1 }
 0x255   : > { %v7936_v35 = vpop.f32.mrf.mxu0 }
 0x256   : > { %8628 = vst [vmem:[#allocation34_spill] sm:$0xff] %v7936_v35  ;;  %v7938_v30 = vpop.f32.mrf.mxu1  ;;  %v3364_v35 = vadd.f32 %v3363_v14, %v3226_v11 }
 0x257   : > { %v7940_v22 = vpop.f32.mrf.mxu0 }
 0x258   : > { %8629 = vst [vmem:[#allocation8_spill] sm:$0xff] %v7940_v22  ;;  %v7942_v1 = vpop.f32.mrf.mxu1  ;;  %v3502_v41 = vadd.f32 %v3501_v63, %v3364_v35 }
 0x259   : > { %v7944_v12 = vpop.f32.mrf.mxu0 }
 0x25a   : > { %8630 = vst [vmem:[#allocation43_spill] sm:$0xff] %v7944_v12  ;;  %v7946_v59 = vpop.f32.mrf.mxu1  ;;  %v3228_v12 = vadd.f32 %v7858_v50, %v7845_v7  ;;  %v3240_v50 = vadd.f32 %v7872_v45, %v7852_v38 }
 0x25b   : > { %v7948_v55 = vpop.f32.mrf.mxu0 }
 0x25c   : > { %8631 = vst [vmem:[#allocation40_spill] sm:$0xff] %v7948_v55  ;;  %v7950_v61 = vpop.f32.mrf.mxu1 }
 0x25d   : > { %8632 = vst [vmem:[#allocation4_spill] sm:$0xff] %v7950_v61  ;;  %v7952_v8 = vpop.f32.mrf.mxu0 }
 0x25e   : > { %8633 = vst [vmem:[#allocation36_spill] sm:$0xff] %v7952_v8  ;;  %v7954_v5 = vpop.f32.mrf.mxu1  ;;  %v3233_v8 = vadd.f32 %v7862_v44, %v7848_v23  ;;  %v3242_v23 = vadd.f32 %v7877_v16, %v7856_v47 }
 0x25f   : > { %8634 = vst [vmem:[#allocation48_spill] sm:$0xff] %v7954_v5  ;;  %v3660_v6 = vpop.f32.mrf.mxu0  ;;  %v3366_v5 = vadd.f32 %v3365_v18, %v3228_v12 }
 0x260   : > { %v7956_v25 = vpop.f32.mrf.mxu1  ;;  %v3372_v56 = vadd.f32 %v3371_v3, %v3233_v8  ;;  %v3661_v10 = vadd.f32 %v3660_v6, %v3502_v41  ;;  %v3380_v3 = vadd.f32 %v3379_v34, %v3240_v50  ;;  %v3382_v38 = vadd.f32 %v3381_v20, %v3242_v23 }
 0x261   : > { %8635 = vst [vmem:[#allocation21_spill] sm:$0xff] %v7956_v25  ;;  %v3662_v22 = vpop.f32.mrf.mxu0  ;;  %v3504_v39 = vadd.f32 %v3503_v51, %v3366_v5  ;;  %v3256_v20 = vadd.f32 %v7897_v32, %v7875_v37 }
 0x262   : > { %v7960_v0 = vpop.f32.mrf.mxu1  ;;  %v3511_v14 = vadd.f32 %v3510_v17, %v3372_v56 }
 0x263   : > { %8636 = vst [vmem:[#allocation52_spill] sm:$0xff] %v7960_v0  ;;  %v3667_v61 = vpop.f32.mrf.mxu0  ;;  %v3235_v0 = vadd.f32 %v7867_v57, %v7850_v28  ;;  %v3663_v11 = vadd.f32 %v3662_v22, %v3504_v39  ;;  %v3247_v28 = vadd.f32 %v7882_v2, %v7860_v27  ;;  %v3249_v57 = vadd.f32 %v7887_v24, %v7865_v9 }
 0x264   : > { %v7964_v55 = vpop.f32.mrf.mxu1  ;;  %v3668_v51 = vadd.f32 %v3667_v61, %v3511_v14  ;;  %v3520_v22 = vadd.f32 %v3519_v42, %v3380_v3 }
 0x265   : > { %8637 = vst [vmem:[#allocation38_spill] sm:$0xff] %v7964_v55  ;;  %v3669_v33 = vpop.f32.mrf.mxu0  ;;  %v3374_v44 = vadd.f32 %v3373_v62, %v3235_v0  ;;  %v3254_v62 = vadd.f32 %v7892_v53, %v7870_v43  ;;  %v3388_v34 = vadd.f32 %v7923_v54, %v3247_v28  ;;  %v3390_v6 = vadd.f32 %v7926_v46, %v3249_v57  ;;  %v8641_v57 = vld [vmem:[#allocation44_spill] sm:$0xff] }
 0x266   : > { %v7968_v25 = vpop.f32.mrf.mxu1 }
 0x267   : > { %v3674_v48 = vpop.f32.mrf.mxu0  ;;  %v3513_v45 = vadd.f32 %v3512_v26, %v3374_v44  ;;  %v3261_v26 = vadd.f32 %v7902_v40, %v7880_v60  ;;  %v3529_v42 = vadd.f32 %v7934_v52, %v3388_v34  ;;  %v3396_v0 = vadd.f32 %v7928_v13, %v3254_v62  ;;  %v8644_v62 = vld [vmem:[#allocation4_spill] sm:$0xff] }
 0x268   : > { %v3789_v7 = vpop.f32.mrf.mxu1  ;;  %v3675_v2 = vadd.f32 %v3674_v48, %v3520_v22  ;;  %v3263_v48 = vadd.f32 %v7907_v21, %v7885_v4  ;;  %v3531_v50 = vadd.f32 %v7938_v30, %v3390_v6  ;;  %v3270_v44 = vadd.f32 %v7913_v15, %v7895_v31  ;;  %v8642_v22 = vld [vmem:[#allocation34_spill] sm:$0xff] }
 0x269   : > { %v3790_v55 = vadd.f32 %v3789_v7, %v3661_v10  ;;  %v3676_v18 = vpop.f32.mrf.mxu0  ;;  %v3670_v61 = vadd.f32 %v3669_v33, %v3513_v45  ;;  %v3268_v10 = vadd.f32 %v7910_v49, %v7890_v58  ;;  %v3398_v7 = vadd.f32 %v7930_v19, %v3256_v20  ;;  %v8646_v20 = vld [vmem:[#allocation40_spill] sm:$0xff] }
 0x26a   : > { %v3791_v63 = vpop.f32.mrf.mxu1  ;;  %v3538_v46 = vadd.f32 %v7942_v1, %v3396_v0  ;;  %v8639_v1 = vld [vmem:[#allocation42_spill] sm:$0xff] }
 0x26b   : > { %v4635_v41 = vsub.f32 0.0, %v3790_v55  ;;  %v3792_v35 = vadd.f32 %v3791_v63, %v3663_v11  ;;  %v3681_v56 = vpop.f32.mrf.mxu0  ;;  %v3522_v55 = vadd.f32 %v3521_v29, %v3382_v38  ;;  %v3404_v38 = vadd.f32 %v8641_v57, %v3261_v26 }
 0x26c   : > { %v3796_v17 = vpop.f32.mrf.mxu1  ;;  %v3682_v60 = vadd.f32 %v3681_v56, %v3529_v42  ;;  %v8647_v42 = vld [vmem:[#allocation48_spill] sm:$0xff] }
 0x26d   : > { %v4713_v12 = vmul.f32 1.442695, %v4635_v41  ;;  %v4636_v47 = vsub.f32 0.0, %v3792_v35  ;;  %v3797_v16 = vadd.f32 %v3796_v17, %v3668_v51  ;;  %v3683_v8 = vpop.f32.mrf.mxu0  ;;  %v3677_v54 = vadd.f32 %v3676_v18, %v3522_v55  ;;  %v8638_v51 = vld [vmem:[#allocation54_spill] sm:$0xff]  ;;  %v8640_v35 = vld [vmem:[#allocation17_spill] sm:$0xff] }
 0x26e   : > { %v3798_v27 = vpop.f32.mrf.mxu1  ;;  %v3540_v18 = vadd.f32 %v7946_v59, %v3398_v7  ;;  %v3684_v63 = vadd.f32 %v3683_v8, %v3531_v50  ;;  %v3275_v41 = vadd.f32 %v8638_v51, %v7900_v36  ;;  %v3277_v28 = vadd.f32 %v8640_v35, %v8639_v1  ;;  %v8645_v8 = vld [vmem:[#allocation43_spill] sm:$0xff] }
 0x26f   : > { %5781 = vpow2.f32 %v4713_v12  ;;  %v4715_v9 = vmul.f32 1.442695, %v4636_v47  ;;  %v4644_v24 = vsub.f32 0.0, %v3797_v16  ;;  %v3799_v5 = vadd.f32 %v3798_v27, %v3670_v61  ;;  %v3688_v43 = vpop.f32.mrf.mxu0  ;;  %v8643_v47 = vld [vmem:[#allocation8_spill] sm:$0xff] }
 0x270   : > { %v3803_v53 = vpop.f32.mrf.mxu1  ;;  %v3689_v19 = vadd.f32 %v3688_v43, %v3538_v46  ;;  %v3406_v12 = vadd.f32 %v8642_v22, %v3263_v48  ;;  %v3412_v16 = vadd.f32 %v8643_v47, %v3268_v10  ;;  %v3547_v34 = vadd.f32 %v8644_v62, %v3404_v38  ;;  %v8650_v46 = vld [vmem:[#allocation38_spill] sm:$0xff] }
 0x271   : > { %5783 = vpow2.f32 %v4715_v9  ;;  %v4731_v33 = vmul.f32 1.442695, %v4644_v24  ;;  %v3804_v29 = vadd.f32 %v3803_v53, %v3675_v2  ;;  %v4645_v37 = vsub.f32 0.0, %v3799_v5  ;;  %v3690_v32 = vpop.f32.mrf.mxu0 }
 0x272   : > { %v3805_v39 = vpop.f32.mrf.mxu1  ;;  %v3691_v59 = vadd.f32 %v3690_v32, %v3540_v18  ;;  %v3414_v27 = vadd.f32 %v8645_v8, %v3270_v44  ;;  %v3420_v26 = vadd.f32 %v8646_v20, %v3275_v41  ;;  %v3549_v5 = vadd.f32 %v8647_v42, %v3406_v12 }
 0x273   : > { %5785 = vpow2.f32 %v4731_v33  ;;  %v4653_v40 = vsub.f32 0.0, %v3804_v29  ;;  %v3806_v52 = vadd.f32 %v3805_v39, %v3677_v54  ;;  %v4733_v14 = vmul.f32 1.442695, %v4645_v37  ;;  %v3695_v4 = vpop.f32.mrf.mxu0  ;;  %v8648_v29 = vld [vmem:[#allocation21_spill] sm:$0xff]  ;;  %v8649_v39 = vld [vmem:[#allocation52_spill] sm:$0xff] }
 0x274   : > { %v3810_v21 = vpop.f32.mrf.mxu1  ;;  %v3696_v43 = vadd.f32 %v3695_v4, %v3547_v34  ;;  %v3556_v48 = vadd.f32 %v8648_v29, %v3412_v16 }
 0x275   : > { %v4749_v13 = vmul.f32 1.442695, %v4653_v40  ;;  %v4654_v11 = vsub.f32 0.0, %v3806_v52  ;;  %v3811_v23 = vadd.f32 %v3810_v21, %v3682_v60  ;;  %5787 = vpow2.f32 %v4733_v14  ;;  %v3697_v58 = vpop.f32.mrf.mxu0 }
 0x276   : > { %v3812_v49 = vpop.f32.mrf.mxu1  ;;  %v3558_v60 = vadd.f32 %v8649_v39, %v3414_v27  ;;  %v3698_v40 = vadd.f32 %v3697_v58, %v3549_v5 }
 0x277   : > { %5789 = vpow2.f32 %v4749_v13  ;;  %v4751_v30 = vmul.f32 1.442695, %v4654_v11  ;;  %v4662_v3 = vsub.f32 0.0, %v3811_v23  ;;  %v3813_v45 = vadd.f32 %v3812_v49, %v3684_v63  ;;  %v3702_v31 = vpop.f32.mrf.mxu0 }
 0x278   : > { %v3817_v15 = vpop.f32.mrf.mxu1  ;;  %v3703_v14 = vadd.f32 %v3702_v31, %v3556_v48  ;;  %v3565_v13 = vadd.f32 %v8650_v46, %v3420_v26 }
 0x279   : > { %5791 = vpow2.f32 %v4751_v30  ;;  %v4767_v56 = vmul.f32 1.442695, %v4662_v3  ;;  %v3818_v17 = vadd.f32 %v3817_v15, %v3689_v19  ;;  %v4663_v55 = vsub.f32 0.0, %v3813_v45  ;;  %v3704_v36 = vpop.f32.mrf.mxu0  ;;  %v8651_v19 = vld [vmem:[#allocation36_spill] sm:$0xff] }
 0x27a   : > { %v3819_v61 = vpop.f32.mrf.mxu1  ;;  %v3705_v58 = vadd.f32 %v3704_v36, %v3558_v60  ;;  %v3422_v30 = vadd.f32 %v8651_v19, %v3277_v28 }
 0x27b   : > { %5793 = vpow2.f32 %v4767_v56  ;;  %v4671_v2 = vsub.f32 0.0, %v3818_v17  ;;  %v3820_v9 = vadd.f32 %v3819_v61, %v3691_v59  ;;  %v4769_v53 = vmul.f32 1.442695, %v4663_v55  ;;  %v3709_v54 = vpop.f32.mrf.mxu0 }
 0x27c   : > { %v5782_v24 = vpop.eup %5781  ;;  %v3824_v33 = vpop.f32.mrf.mxu1  ;;  %v3710_v57 = vadd.f32 %v3709_v54, %v3565_v13  ;;  %v3567_v15 = vadd.f32 %v7968_v25, %v3422_v30 }
 0x27d   : > { %v4851_v6 = vadd.f32 1.0, %v5782_v24  ;;  %v4785_v0 = vmul.f32 1.442695, %v4671_v2  ;;  %v4672_v37 = vsub.f32 0.0, %v3820_v9  ;;  %5795 = vpow2.f32 %v4769_v53  ;;  %v3711_v10 = vpop.f32.mrf.mxu0 }
 0x27e   : > { %v5784_v32 = vpop.eup %5783  ;;  %v3825_v52 = vadd.f32 %v3824_v33, %v3696_v43  ;;  %v3826_v7 = vpop.f32.mrf.mxu1  ;;  %v3712_v62 = vadd.f32 %v3711_v10, %v3567_v15 }
 0x27f   : > { %5797 = vrcp.f32 %v4851_v6  ;;  %v4852_v50 = vadd.f32 1.0, %v5784_v32  ;;  %v4787_v4 = vmul.f32 1.442695, %v4672_v37  ;;  %v3827_v23 = vadd.f32 %v3826_v7, %v3698_v40  ;;  %v8014_v18 = vpop.f32.mrf.mxu0 }
 0x280   : > { %v5786_v21 = vpop.eup %5785  ;;  %5799 = vpow2.f32 %v4785_v0  ;;  %v4680_v11 = vsub.f32 0.0, %v3825_v52  ;;  %v3831_v44 = vpop.f32.mrf.mxu1 }
 0x281   : > { %5801 = vrcp.f32 %v4852_v50  ;;  %v4860_v63 = vadd.f32 1.0, %v5786_v21  ;;  %v3832_v49 = vadd.f32 %v3831_v44, %v3703_v14  ;;  %v4681_v51 = vsub.f32 0.0, %v3827_v23  ;;  %v8017_v1 = vpop.f32.mrf.mxu0 }
 0x282   : > { %5803 = vpow2.f32 %v4787_v4  ;;  %v4803_v3 = vmul.f32 1.442695, %v4680_v11  ;;  %v3833_v41 = vpop.f32.mrf.mxu1  ;;  %v5788_v35 = vpop.eup %5787 }
 0x283   : > { %5805 = vrcp.f32 %v4860_v63  ;;  %v4689_v38 = vsub.f32 0.0, %v3832_v49  ;;  %v3834_v45 = vadd.f32 %v3833_v41, %v3705_v58  ;;  %v4861_v59 = vadd.f32 1.0, %v5788_v35  ;;  %v8020_v22 = vpop.f32.mrf.mxu0 }
 0x284   : > { %v5790_v31 = vpop.eup %5789  ;;  %5807 = vpow2.f32 %v4803_v3  ;;  %v4805_v56 = vmul.f32 1.442695, %v4681_v51  ;;  %v3838_v17 = vpop.f32.mrf.mxu1 }
 0x285   : > { %v4869_v28 = vadd.f32 1.0, %v5790_v31  ;;  %v4690_v12 = vsub.f32 0.0, %v3834_v45  ;;  %v3839_v47 = vadd.f32 %v3838_v17, %v3710_v57  ;;  %5809 = vrcp.f32 %v4861_v59  ;;  %v8022_v36 = vpop.f32.mrf.mxu0 }
 0x286   : > { %v5792_v16 = vpop.eup %5791  ;;  %v4821_v34 = vmul.f32 1.442695, %v4689_v38  ;;  %v3840_v55 = vpop.f32.mrf.mxu1 }
 0x287   : > { %5811 = vrcp.f32 %v4869_v28  ;;  %v4870_v61 = vadd.f32 1.0, %v5792_v16  ;;  %v4698_v8 = vsub.f32 0.0, %v3839_v47  ;;  %v4823_v27 = vmul.f32 1.442695, %v4690_v12  ;;  %v8024_v9 = vpop.f32.mrf.mxu0 }
 0x288   : > { %v5794_v25 = vpop.eup %5793  ;;  %5813 = vpow2.f32 %v4805_v56  ;;  %v3841_v2 = vadd.f32 %v3840_v55, %v3712_v62  ;;  %v8026_v24 = vpop.f32.mrf.mxu1 }
 0x289   : > { %5815 = vrcp.f32 %v4870_v61  ;;  %v4878_v20 = vadd.f32 1.0, %v5794_v25  ;;  %v4839_v26 = vmul.f32 1.442695, %v4698_v8  ;;  %v8028_v5 = vpop.f32.mrf.mxu0 }
 0x28a   : > { %5817 = vpow2.f32 %v4821_v34  ;;  %v4699_v42 = vsub.f32 0.0, %v3841_v2  ;;  %v8030_v43 = vpop.f32.mrf.mxu1  ;;  %v5796_v53 = vpop.eup %5795  ;;  %v4086_v2 = vadd.f32 %v8026_v24, %v8014_v18 }
 0x28b   : > { %5819 = vrcp.f32 %v4878_v20  ;;  %v4879_v33 = vadd.f32 1.0, %v5796_v53  ;;  %v8032_v48 = vpop.f32.mrf.mxu0 }
 0x28c   : > { %v5798_v54 = vpop.eup %5797  ;;  %5821 = vpow2.f32 %v4823_v27  ;;  %v4841_v29 = vmul.f32 1.442695, %v4699_v42  ;;  %v8034_v6 = vpop.f32.mrf.mxu1  ;;  %v4080_v42 = vadd.f32 %v8030_v43, %v8017_v1 }
 0x28d   : > { %v5800_v0 = vpop.eup %5799  ;;  %5067 = vst [vmem:[%s7199_s9 + $0x30] sm:$0xff] %v5798_v54  ;;  %5823 = vpow2.f32 %v4839_v26  ;;  %v8037_v39 = vpop.f32.mrf.mxu0 }
 0x28e   : > { %v5802_v37 = vpop.eup %5801  ;;  %5825 = vrcp.f32 %v4879_v33  ;;  %v4887_v32 = vadd.f32 1.0, %v5800_v0  ;;  %v8039_v60 = vpop.f32.mrf.mxu1  ;;  %v4098_v0 = vadd.f32 %v8034_v6, %v8020_v22 }
 0x28f   : > { %v5804_v40 = vpop.eup %5803  ;;  %5068 = vst [vmem:[%s7199_s9 + $0x38] sm:$0xff] %v5802_v37  ;;  %5827 = vpow2.f32 %v4841_v29  ;;  %v5491_v50 = vpop.f32.mrf.mxu0  ;;  %v4092_v1 = vadd.f32 %v8039_v60, %v8022_v36 }
 0x290   : > { %v5806_v52 = vpop.eup %5805  ;;  %5829 = vrcp.f32 %v4887_v32  ;;  %v4888_v10 = vadd.f32 1.0, %v5804_v40  ;;  %v8042_v7 = vpop.f32.mrf.mxu1  ;;  %v4209_v53 = vadd.f32 %v5491_v50, %v4086_v2 }
 0x291   : > { %v5808_v14 = vpop.eup %5807  ;;  %5076 = vst [vmem:[%s7199_s9 + $0x78] sm:$0xff] %v5806_v52  ;;  %v4201_v46 = vpop.f32.mrf.mxu0  ;;  %v4110_v22 = vadd.f32 %v8042_v7, %v8024_v9 }
 0x292   : > { %5831 = vrcp.f32 %v4888_v10  ;;  %v4896_v4 = vadd.f32 1.0, %v5808_v14  ;;  %v8045_v21 = vpop.f32.mrf.mxu1  ;;  %v5810_v13 = vpop.eup %5809  ;;  %v4202_v37 = vadd.f32 %v4201_v46, %v4080_v42 }
 0x293   : > { %5077 = vst [vmem:[%s7199_s9 + $0x80] sm:$0xff] %v5810_v13  ;;  %v5494_v44 = vpop.f32.mrf.mxu0 }
 0x294   : > { %v5812_v11 = vpop.eup %5811  ;;  %5833 = vrcp.f32 %v4896_v4  ;;  %v8048_v23 = vpop.f32.mrf.mxu1  ;;  %v4223_v52 = vadd.f32 %v5494_v44, %v4098_v0  ;;  %v4104_v44 = vadd.f32 %v8045_v21, %v8028_v5 }
 0x295   : > { %v5814_v63 = vpop.eup %5813  ;;  %5085 = vst [vmem:[%s7199_s9 + $0xc0] sm:$0xff] %v5812_v11  ;;  %v8053_v30 = vpop.f32.mrf.mxu0  ;;  %v4122_v7 = vadd.f32 %v8048_v23, %v8032_v48 }
 0x296   : > { %v5816_v58 = vpop.eup %5815  ;;  %v4897_v49 = vadd.f32 1.0, %v5814_v63  ;;  %v8051_v19 = vpop.f32.mrf.mxu1  ;;  %v4216_v63 = vadd.f32 %v8053_v30, %v4092_v1 }
 0x297   : > { %v5818_v3 = vpop.eup %5817  ;;  %5086 = vst [vmem:[%s7199_s9 + $0xc8] sm:$0xff] %v5816_v58  ;;  %v8056_v35 = vpop.f32.mrf.mxu0 }
 0x298   : > { %v5820_v51 = vpop.eup %5819  ;;  %5835 = vrcp.f32 %v4897_v49  ;;  %v4905_v41 = vadd.f32 1.0, %v5818_v3  ;;  %v5511_v57 = vpop.f32.mrf.mxu1  ;;  %v4237_v36 = vadd.f32 %v8056_v35, %v4110_v22 }
 0x299   : > { %v5822_v38 = vpop.eup %5821  ;;  %5094 = vst [vmem:[%s7199_s9 + $0x108] sm:$0xff] %v5820_v51  ;;  %v4229_v15 = vpop.f32.mrf.mxu0  ;;  %v4336_v32 = vadd.f32 %v5511_v57, %v4209_v53 }
 0x29a   : > { %v5824_v45 = vpop.eup %5823  ;;  %5837 = vrcp.f32 %v4905_v41  ;;  %v4906_v31 = vadd.f32 1.0, %v5822_v38  ;;  %v4327_v59 = vpop.f32.mrf.mxu1  ;;  %v4230_v41 = vadd.f32 %v4229_v15, %v4104_v44 }
 0x29b   : > { %v5826_v56 = vpop.eup %5825  ;;  %v4914_v17 = vadd.f32 1.0, %v5824_v45  ;;  %v8060_v12 = vpop.f32.mrf.mxu0  ;;  %v4328_v10 = vadd.f32 %v4327_v59, %v4202_v37 }
 0x29c   : > { %v5828_v28 = vpop.eup %5827  ;;  %5095 = vst [vmem:[%s7199_s9 + $0x110] sm:$0xff] %v5826_v56  ;;  %5839 = vrcp.f32 %v4906_v31  ;;  %v5514_v47 = vpop.f32.mrf.mxu1  ;;  %v4116_v31 = vadd.f32 %v8051_v19, %v8037_v39  ;;  %v4251_v35 = vadd.f32 %v8060_v12, %v4122_v7 }
 0x29d   : > { %v5830_v16 = vpop.eup %5829  ;;  %5841 = vrcp.f32 %v4914_v17  ;;  %v4915_v62 = vadd.f32 1.0, %v5828_v28  ;;  %v8063_v34 = vpop.f32.mrf.mxu0  ;;  %v4352_v6 = vadd.f32 %v5514_v47, %v4223_v52 }
 0x29e   : > { %5103 = vst [vmem:[%s7199_s9 + $0x150] sm:$0xff] %v5830_v16  ;;  %v4343_v55 = vpop.f32.mrf.mxu1  ;;  %v4244_v15 = vadd.f32 %v8063_v34, %v4116_v31  ;;  %v5163_v31 = vld [vmem:[%s7199_s9 + $0x20] sm:$0xff] (%p5947_p5) }
 0x29f   : > { %v5832_v61 = vpop.eup %5831  ;;  %5843 = vrcp.f32 %v4915_v62  ;;  %v5531_v25 = vpop.f32.mrf.mxu0  ;;  %v4344_v57 = vadd.f32 %v4343_v55, %v4216_v63  ;;  %5164 = vst [vmem:[%s8113_s25 + $0x20] sm:$0xff] (%p5947_p5), %v5163_v31  ;;  %v5291_v31 = vld [vmem:[%s7199_s9 + $0x220] sm:$0xff] (%p5947_p5) }
 0x2a0   : > { %5104 = vst [vmem:[%s7199_s9 + $0x158] sm:$0xff] %v5832_v61  ;;  %v5517_v8 = vpop.f32.mrf.mxu1  ;;  %v4473_v14 = vadd.f32 %v5531_v25, %v4336_v32  ;;  %5292 = vst [vmem:[%s8113_s25 + $0x808] sm:$0xff] (%p5947_p5), %v5291_v31 }
 0x2a1   : > { %v5834_v27 = vpop.eup %5833  ;;  %v4466_v26 = vpop.f32.mrf.mxu0  ;;  %v4368_v45 = vadd.f32 %v5517_v8, %v4237_v36 }
 0x2a2   : > { %5112 = vst [vmem:[%s7199_s9 + $0x198] sm:$0xff] %v5834_v27  ;;  %v4359_v20 = vpop.f32.mrf.mxu1  ;;  %v4467_v46 = vadd.f32 %v4466_v26, %v4328_v10 }
 0x2a3   : > { %v5534_v33 = vpop.f32.mrf.mxu0  ;;  %v4360_v59 = vadd.f32 %v4359_v20, %v4230_v41 }
 0x2a4   : > { %v5520_v54 = vpop.f32.mrf.mxu1  ;;  %v4485_v60 = vadd.f32 %v5534_v33, %v4352_v6 }
 0x2a5   : > { %v5836_v29 = vpop.eup %5835  ;;  %v4478_v18 = vpop.f32.mrf.mxu0  ;;  %v4384_v16 = vadd.f32 %v5520_v54, %v4251_v35  ;;  %v5165_v35 = vld [vmem:[%s7199_s9 + $0x28] sm:$0xff] (%p5947_p5) }
 0x2a6   : > { %5113 = vst [vmem:[%s7199_s9 + $0x1a0] sm:$0xff] %v5836_v29  ;;  %v4375_v40 = vpop.f32.mrf.mxu1  ;;  %v4479_v56 = vadd.f32 %v4478_v18, %v4344_v57  ;;  %5166 = vst [vmem:[%s8113_s25 + $0x28] sm:$0xff] (%p5947_p5), %v5165_v35 }
 0x2a7   : > { %v5838_v24 = vpop.eup %5837  ;;  %v5537_v43 = vpop.f32.mrf.mxu0  ;;  %v4376_v39 = vadd.f32 %v4375_v40, %v4244_v15  ;;  %v5181_v15 = vld [vmem:[%s7199_s9 + $0x68] sm:$0xff] (%p5947_p5) }
 0x2a8   : > { %5121 = vst [vmem:[%s7199_s9 + $0x1e0] sm:$0xff] %v5838_v24  ;;  %v5551_v50 = vpop.f32.mrf.mxu1  ;;  %v4497_v47 = vadd.f32 %v5537_v43, %v4368_v45  ;;  %v5155_v45 = vld [vmem:[%s7199_s9] sm:$0xff] (%p5947_p5)  ;;  %5182 = vst [vmem:[%s8113_s25 + $0x140] sm:$0xff] (%p5947_p5), %v5181_v15 }
 0x2a9   : > { %v5840_v4 = vpop.eup %5839  ;;  %v4590_v13 = vadd.f32 %v5551_v50, %v4473_v14  ;;  %v4490_v58 = vpop.f32.mrf.mxu0  ;;  %5156 = vst [vmem:[%s8113_s25] sm:$0xff] (%p5947_p5), %v5155_v45  ;;  %v5283_v45 = vld [vmem:[%s7199_s9 + $0x200] sm:$0xff] (%p5947_p5) }
 0x2aa   : > { %v5842_v11 = vpop.eup %5841  ;;  %5122 = vst [vmem:[%s7199_s9 + $0x1e8] sm:$0xff] %v5840_v4  ;;  %v4583_v49 = vpop.f32.mrf.mxu1  ;;  %v4491_v61 = vadd.f32 %v4490_v58, %v4360_v59  ;;  %v5167_v59 = vld [vmem:[%s7199_s9 + $0x30] sm:$0xff] (%p5947_p5)  ;;  %5284 = vst [vmem:[%s8113_s25 + $0x7e8] sm:$0xff] (%p5947_p5), %v5283_v45 }
 0x2ab   : > { %5130 = vst [vmem:[%s7199_s9 + $0x228] sm:$0xff] %v5842_v11  ;;  %v4646_v3 = vsub.f32 0.0, %v4590_v13  ;;  %v4584_v51 = vadd.f32 %v4583_v49, %v4467_v46  ;;  %v5540_v17 = vpop.f32.mrf.mxu0  ;;  %5168 = vst [vmem:[%s8113_s25 + $0x30] sm:$0xff] (%p5947_p5), %v5167_v59 }
 0x2ac   : > { %v5844_v9 = vpop.eup %5843  ;;  %v5554_v38 = vpop.f32.mrf.mxu1  ;;  %v4509_v2 = vadd.f32 %v5540_v17, %v4384_v16  ;;  %v5183_v16 = vld [vmem:[%s7199_s9 + $0x70] sm:$0xff] (%p5947_p5) }
 0x2ad   : > { %5131 = vst [vmem:[%s7199_s9 + $0x230] sm:$0xff] %v5844_v9  ;;  %v4735_v5 = vmul.f32 1.442695, %v4646_v3  ;;  %v4637_v21 = vsub.f32 0.0, %v4584_v51  ;;  %v4602_v30 = vadd.f32 %v5554_v38, %v4485_v60  ;;  %v4502_v19 = vpop.f32.mrf.mxu0  ;;  %5184 = vst [vmem:[%s8113_s25 + $0x148] sm:$0xff] (%p5947_p5), %v5183_v16 }
 0x2ae   : > { %v4595_v28 = vpop.f32.mrf.mxu1  ;;  %v4503_v33 = vadd.f32 %v4502_v19, %v4376_v39  ;;  %v5195_v39 = vld [vmem:[%s7199_s9 + $0xa0] sm:$0xff] (%p5947_p5)  ;;  %v5197_v19 = vld [vmem:[%s7199_s9 + $0xa8] sm:$0xff] (%p5947_p5) }
 0x2af   : > { %5845 = vpow2.f32 %v4735_v5  ;;  %v4717_v48 = vmul.f32 1.442695, %v4637_v21  ;;  %v4664_v23 = vsub.f32 0.0, %v4602_v30  ;;  %v4596_v62 = vadd.f32 %v4595_v28, %v4479_v56  ;;  %v5157_v5 = vld [vmem:[%s7199_s9 + $0x8] sm:$0xff] (%p5947_p5)  ;;  %v5159_v21 = vld [vmem:[%s7199_s9 + $0x10] sm:$0xff] (%p5947_p5)  ;;  %v5161_v30 = vld [vmem:[%s7199_s9 + $0x18] sm:$0xff] (%p5947_p5) }
 0x2b0   : > { %v5557_v55 = vpop.f32.mrf.mxu1  ;;  %v5169_v56 = vld [vmem:[%s7199_s9 + $0x38] sm:$0xff] (%p5947_p5)  ;;  %5158 = vst [vmem:[%s8113_s25 + $0x8] sm:$0xff] (%p5947_p5), %v5157_v5  ;;  %5160 = vst [vmem:[%s8113_s25 + $0x10] sm:$0xff] (%p5947_p5), %v5159_v21  ;;  %v5173_v28 = vld [vmem:[%s7199_s9 + $0x48] sm:$0xff] (%p5947_p5) }
 0x2b1   : > { %5847 = vpow2.f32 %v4717_v48  ;;  %v4771_v8 = vmul.f32 1.442695, %v4664_v23  ;;  %v4614_v25 = vadd.f32 %v5557_v55, %v4497_v47  ;;  %v4655_v12 = vsub.f32 0.0, %v4596_v62  ;;  %5162 = vst [vmem:[%s8113_s25 + $0x18] sm:$0xff] (%p5947_p5), %v5161_v30  ;;  %5170 = vst [vmem:[%s8113_s25 + $0x38] sm:$0xff] (%p5947_p5), %v5169_v56  ;;  %v5175_v47 = vld [vmem:[%s7199_s9 + $0x50] sm:$0xff] (%p5947_p5) }
 0x2b2   : > { %v4607_v27 = vpop.f32.mrf.mxu1  ;;  %v5177_v48 = vld [vmem:[%s7199_s9 + $0x58] sm:$0xff] (%p5947_p5)  ;;  %5174 = vst [vmem:[%s8113_s25 + $0x120] sm:$0xff] (%p5947_p5), %v5173_v28  ;;  %5176 = vst [vmem:[%s8113_s25 + $0x128] sm:$0xff] (%p5947_p5), %v5175_v47  ;;  %v5179_v23 = vld [vmem:[%s7199_s9 + $0x60] sm:$0xff] (%p5947_p5) }
 0x2b3   : > { %5849 = vpow2.f32 %v4771_v8  ;;  %v4682_v20 = vsub.f32 0.0, %v4614_v25  ;;  %v4608_v26 = vadd.f32 %v4607_v27, %v4491_v61  ;;  %v4753_v42 = vmul.f32 1.442695, %v4655_v12  ;;  %5178 = vst [vmem:[%s8113_s25 + $0x130] sm:$0xff] (%p5947_p5), %v5177_v48  ;;  %5180 = vst [vmem:[%s8113_s25 + $0x138] sm:$0xff] (%p5947_p5), %v5179_v23  ;;  %v5185_v62 = vld [vmem:[%s7199_s9 + $0x78] sm:$0xff] (%p5947_p5) }
 0x2b4   : > { %v5560_v53 = vpop.f32.mrf.mxu1  ;;  %v5187_v55 = vld [vmem:[%s7199_s9 + $0x80] sm:$0xff] (%p5947_p5)  ;;  %5186 = vst [vmem:[%s8113_s25 + $0x150] sm:$0xff] (%p5947_p5), %v5185_v62  ;;  %v5191_v8 = vld [vmem:[%s7199_s9 + $0x90] sm:$0xff] (%p5947_p5)  ;;  %v5193_v25 = vld [vmem:[%s7199_s9 + $0x98] sm:$0xff] (%p5947_p5) }
 0x2b5   : > { %v4807_v29 = vmul.f32 1.442695, %v4682_v20  ;;  %v4673_v34 = vsub.f32 0.0, %v4608_v26  ;;  %v4626_v54 = vadd.f32 %v5560_v53, %v4509_v2  ;;  %5851 = vpow2.f32 %v4753_v42  ;;  %5188 = vst [vmem:[%s8113_s25 + $0x158] sm:$0xff] (%p5947_p5), %v5187_v55  ;;  %5192 = vst [vmem:[%s8113_s25 + $0x240] sm:$0xff] (%p5947_p5), %v5191_v8  ;;  %v5199_v12 = vld [vmem:[%s7199_s9 + $0xb0] sm:$0xff] (%p5947_p5) }
 0x2b6   : > { %v4619_v0 = vpop.f32.mrf.mxu1  ;;  %5194 = vst [vmem:[%s8113_s25 + $0x248] sm:$0xff] (%p5947_p5), %v5193_v25  ;;  %5196 = vst [vmem:[%s8113_s25 + $0x250] sm:$0xff] (%p5947_p5), %v5195_v39  ;;  %v5201_v27 = vld [vmem:[%s7199_s9 + $0xb8] sm:$0xff] (%p5947_p5)  ;;  %v5203_v2 = vld [vmem:[%s7199_s9 + $0xc0] sm:$0xff] (%p5947_p5) }
 0x2b7   : > { %5853 = vpow2.f32 %v4807_v29  ;;  %v4789_v37 = vmul.f32 1.442695, %v4673_v34  ;;  %v4700_v32 = vsub.f32 0.0, %v4626_v54  ;;  %v4620_v18 = vadd.f32 %v4619_v0, %v4503_v33  ;;  %5198 = vst [vmem:[%s8113_s25 + $0x258] sm:$0xff] (%p5947_p5), %v5197_v19  ;;  %5200 = vst [vmem:[%s8113_s25 + $0x260] sm:$0xff] (%p5947_p5), %v5199_v12  ;;  %v5205_v20 = vld [vmem:[%s7199_s9 + $0xc8] sm:$0xff] (%p5947_p5) }
 0x2b8   : > { %5202 = vst [vmem:[%s8113_s25 + $0x268] sm:$0xff] (%p5947_p5), %v5201_v27  ;;  %5204 = vst [vmem:[%s8113_s25 + $0x270] sm:$0xff] (%p5947_p5), %v5203_v2  ;;  %v5209_v42 = vld [vmem:[%s7199_s9 + $0xd8] sm:$0xff] (%p5947_p5)  ;;  %v5211_v53 = vld [vmem:[%s7199_s9 + $0xe0] sm:$0xff] (%p5947_p5) }
 0x2b9   : > { %5855 = vpow2.f32 %v4789_v37  ;;  %v4843_v40 = vmul.f32 1.442695, %v4700_v32  ;;  %v4691_v24 = vsub.f32 0.0, %v4620_v18  ;;  %5206 = vst [vmem:[%s8113_s25 + $0x278] sm:$0xff] (%p5947_p5), %v5205_v20  ;;  %v5213_v33 = vld [vmem:[%s7199_s9 + $0xe8] sm:$0xff] (%p5947_p5)  ;;  %5210 = vst [vmem:[%s8113_s25 + $0x360] sm:$0xff] (%p5947_p5), %v5209_v42 }
 0x2ba   : > { %5212 = vst [vmem:[%s8113_s25 + $0x368] sm:$0xff] (%p5947_p5), %v5211_v53  ;;  %5214 = vst [vmem:[%s8113_s25 + $0x370] sm:$0xff] (%p5947_p5), %v5213_v33  ;;  %v5215_v29 = vld [vmem:[%s7199_s9 + $0xf0] sm:$0xff] (%p5947_p5)  ;;  %v5217_v34 = vld [vmem:[%s7199_s9 + $0xf8] sm:$0xff] (%p5947_p5) }
 0x2bb   : > { %5857 = vpow2.f32 %v4843_v40  ;;  %v4825_v52 = vmul.f32 1.442695, %v4691_v24  ;;  %v5219_v54 = vld [vmem:[%s7199_s9 + $0x100] sm:$0xff] (%p5947_p5)  ;;  %5216 = vst [vmem:[%s8113_s25 + $0x378] sm:$0xff] (%p5947_p5), %v5215_v29  ;;  %5218 = vst [vmem:[%s8113_s25 + $0x380] sm:$0xff] (%p5947_p5), %v5217_v34  ;;  %v5221_v0 = vld [vmem:[%s7199_s9 + $0x108] sm:$0xff] (%p5947_p5) }
 0x2bc   : > { %v5846_v10 = vpop.eup %5845  ;;  %5220 = vst [vmem:[%s8113_s25 + $0x388] sm:$0xff] (%p5947_p5), %v5219_v54  ;;  %v5223_v37 = vld [vmem:[%s7199_s9 + $0x110] sm:$0xff] (%p5947_p5)  ;;  %5222 = vst [vmem:[%s8113_s25 + $0x390] sm:$0xff] (%p5947_p5), %v5221_v0  ;;  %v5227_v18 = vld [vmem:[%s7199_s9 + $0x120] sm:$0xff] (%p5947_p5) }
 0x2bd   : > { %v4862_v14 = vadd.f32 1.0, %v5846_v10  ;;  %5859 = vpow2.f32 %v4825_v52  ;;  %5224 = vst [vmem:[%s8113_s25 + $0x398] sm:$0xff] (%p5947_p5), %v5223_v37  ;;  %v5229_v40 = vld [vmem:[%s7199_s9 + $0x128] sm:$0xff] (%p5947_p5)  ;;  %v5231_v24 = vld [vmem:[%s7199_s9 + $0x130] sm:$0xff] (%p5947_p5)  ;;  %5228 = vst [vmem:[%s8113_s25 + $0x480] sm:$0xff] (%p5947_p5), %v5227_v18 }
 0x2be   : > { %v5848_v1 = vpop.eup %5847  ;;  %5230 = vst [vmem:[%s8113_s25 + $0x488] sm:$0xff] (%p5947_p5), %v5229_v40  ;;  %5232 = vst [vmem:[%s8113_s25 + $0x490] sm:$0xff] (%p5947_p5), %v5231_v24  ;;  %v5233_v52 = vld [vmem:[%s7199_s9 + $0x138] sm:$0xff] (%p5947_p5)  ;;  %v5235_v10 = vld [vmem:[%s7199_s9 + $0x140] sm:$0xff] (%p5947_p5) }
 0x2bf   : > { %5861 = vrcp.f32 %v4862_v14  ;;  %v4853_v43 = vadd.f32 1.0, %v5848_v1  ;;  %v5237_v14 = vld [vmem:[%s7199_s9 + $0x148] sm:$0xff] (%p5947_p5)  ;;  %5234 = vst [vmem:[%s8113_s25 + $0x498] sm:$0xff] (%p5947_p5), %v5233_v52  ;;  %5236 = vst [vmem:[%s8113_s25 + $0x4a0] sm:$0xff] (%p5947_p5), %v5235_v10  ;;  %v5239_v1 = vld [vmem:[%s7199_s9 + $0x150] sm:$0xff] (%p5947_p5) }
 0x2c0   : > { %v5850_v50 = vpop.eup %5849  ;;  %5238 = vst [vmem:[%s8113_s25 + $0x4a8] sm:$0xff] (%p5947_p5), %v5237_v14  ;;  %5240 = vst [vmem:[%s8113_s25 + $0x4b0] sm:$0xff] (%p5947_p5), %v5239_v1  ;;  %v5285_v5 = vld [vmem:[%s7199_s9 + $0x208] sm:$0xff] (%p5947_p5)  ;;  %v5287_v21 = vld [vmem:[%s7199_s9 + $0x210] sm:$0xff] (%p5947_p5) }
 0x2c1   : > { %5863 = vrcp.f32 %v4853_v43  ;;  %v4880_v4 = vadd.f32 1.0, %v5850_v50  ;;  %v5241_v43 = vld [vmem:[%s7199_s9 + $0x158] sm:$0xff] (%p5947_p5)  ;;  %5286 = vst [vmem:[%s8113_s25 + $0x7f0] sm:$0xff] (%p5947_p5), %v5285_v5  ;;  %5288 = vst [vmem:[%s8113_s25 + $0x7f8] sm:$0xff] (%p5947_p5), %v5287_v21  ;;  %v5293_v35 = vld [vmem:[%s7199_s9 + $0x228] sm:$0xff] (%p5947_p5) }
 0x2c2   : > { %v5852_v22 = vpop.eup %5851  ;;  %5242 = vst [vmem:[%s8113_s25 + $0x4b8] sm:$0xff] (%p5947_p5), %v5241_v43  ;;  %v5289_v30 = vld [vmem:[%s7199_s9 + $0x218] sm:$0xff] (%p5947_p5)  ;;  %v5295_v59 = vld [vmem:[%s7199_s9 + $0x230] sm:$0xff] (%p5947_p5)  ;;  %5294 = vst [vmem:[%s8113_s25 + $0x810] sm:$0xff] (%p5947_p5), %v5293_v35 }
 0x2c3   : > { %5865 = vrcp.f32 %v4880_v4  ;;  %v4871_v46 = vadd.f32 1.0, %v5852_v22  ;;  %v5245_v4 = vld [vmem:[%s7199_s9 + $0x168] sm:$0xff] (%p5947_p5)  ;;  %v5247_v22 = vld [vmem:[%s7199_s9 + $0x170] sm:$0xff] (%p5947_p5)  ;;  %5290 = vst [vmem:[%s8113_s25 + $0x800] sm:$0xff] (%p5947_p5), %v5289_v30  ;;  %5296 = vst [vmem:[%s8113_s25 + $0x818] sm:$0xff] (%p5947_p5), %v5295_v59 }
 0x2c4   : > { %v5854_v6 = vpop.eup %5853  ;;  %5246 = vst [vmem:[%s8113_s25 + $0x5a0] sm:$0xff] (%p5947_p5), %v5245_v4  ;;  %5248 = vst [vmem:[%s8113_s25 + $0x5a8] sm:$0xff] (%p5947_p5), %v5247_v22 }
 0x2c5   : > { %v4898_v13 = vadd.f32 1.0, %v5854_v6  ;;  %5867 = vrcp.f32 %v4871_v46  ;;  %v5249_v6 = vld [vmem:[%s7199_s9 + $0x178] sm:$0xff] (%p5947_p5)  ;;  %v5251_v46 = vld [vmem:[%s7199_s9 + $0x180] sm:$0xff] (%p5947_p5) }
 0x2c6   : > { %v5856_v11 = vpop.eup %5855  ;;  %5250 = vst [vmem:[%s8113_s25 + $0x5b0] sm:$0xff] (%p5947_p5), %v5249_v6  ;;  %5252 = vst [vmem:[%s8113_s25 + $0x5b8] sm:$0xff] (%p5947_p5), %v5251_v46 }
 0x2c7   : > { %5869 = vrcp.f32 %v4898_v13  ;;  %v4889_v44 = vadd.f32 1.0, %v5856_v11  ;;  %v5253_v13 = vld [vmem:[%s7199_s9 + $0x188] sm:$0xff] (%p5947_p5)  ;;  %v5255_v11 = vld [vmem:[%s7199_s9 + $0x190] sm:$0xff] (%p5947_p5) }
 0x2c8   : > { %v5858_v63 = vpop.eup %5857  ;;  %5254 = vst [vmem:[%s8113_s25 + $0x5c0] sm:$0xff] (%p5947_p5), %v5253_v13  ;;  %5256 = vst [vmem:[%s8113_s25 + $0x5c8] sm:$0xff] (%p5947_p5), %v5255_v11 }
 0x2c9   : > { %5871 = vrcp.f32 %v4889_v44  ;;  %v4916_v58 = vadd.f32 1.0, %v5858_v63  ;;  %v5257_v44 = vld [vmem:[%s7199_s9 + $0x198] sm:$0xff] (%p5947_p5)  ;;  %v5259_v63 = vld [vmem:[%s7199_s9 + $0x1a0] sm:$0xff] (%p5947_p5) }
 0x2ca   : > { %v5860_v49 = vpop.eup %5859  ;;  %5258 = vst [vmem:[%s8113_s25 + $0x5d0] sm:$0xff] (%p5947_p5), %v5257_v44  ;;  %5260 = vst [vmem:[%s8113_s25 + $0x5d8] sm:$0xff] (%p5947_p5), %v5259_v63 }
 0x2cb   : > { %5873 = vrcp.f32 %v4916_v58  ;;  %v4907_v36 = vadd.f32 1.0, %v5860_v49  ;;  %v5263_v49 = vld [vmem:[%s7199_s9 + $0x1b0] sm:$0xff] (%p5947_p5) }
 0x2cc   : > { %v5862_v60 = vpop.eup %5861  ;;  %5264 = vst [vmem:[%s8113_s25 + $0x6c0] sm:$0xff] (%p5947_p5), %v5263_v49 }
 0x2cd   : > { %5078 = vst [vmem:[%s7199_s9 + $0x88] sm:$0xff] %v5862_v60  ;;  %5875 = vrcp.f32 %v4907_v36  ;;  %v5265_v36 = vld [vmem:[%s7199_s9 + $0x1b8] sm:$0xff] (%p5947_p5)  ;;  %v5267_v60 = vld [vmem:[%s7199_s9 + $0x1c0] sm:$0xff] (%p5947_p5) }
 0x2ce   : > { %v5864_v3 = vpop.eup %5863  ;;  %5266 = vst [vmem:[%s8113_s25 + $0x6c8] sm:$0xff] (%p5947_p5), %v5265_v36  ;;  %5268 = vst [vmem:[%s8113_s25 + $0x6d0] sm:$0xff] (%p5947_p5), %v5267_v60 }
 0x2cf   : > { %5069 = vst [vmem:[%s7199_s9 + $0x40] sm:$0xff] %v5864_v3  ;;  %v5269_v3 = vld [vmem:[%s7199_s9 + $0x1c8] sm:$0xff] (%p5947_p5) }
 0x2d0   : > { %v5866_v51 = vpop.eup %5865  ;;  %5270 = vst [vmem:[%s8113_s25 + $0x6d8] sm:$0xff] (%p5947_p5), %v5269_v3 }
 0x2d1   : > { %5096 = vst [vmem:[%s7199_s9 + $0x118] sm:$0xff] %v5866_v51  ;;  %v5271_v51 = vld [vmem:[%s7199_s9 + $0x1d0] sm:$0xff] (%p5947_p5) }
 0x2d2   : > { %v5868_v9 = vpop.eup %5867  ;;  %5272 = vst [vmem:[%s8113_s25 + $0x6e0] sm:$0xff] (%p5947_p5), %v5271_v51 }
 0x2d3   : > { %5087 = vst [vmem:[%s7199_s9 + $0xd0] sm:$0xff] %v5868_v9  ;;  %v5273_v9 = vld [vmem:[%s7199_s9 + $0x1d8] sm:$0xff] (%p5947_p5) }
 0x2d4   : > { %v5870_v7 = vpop.eup %5869  ;;  %v5189_v61 = vld [vmem:[%s7199_s9 + $0x88] sm:$0xff] (%p5947_p5)  ;;  %5274 = vst [vmem:[%s8113_s25 + $0x6e8] sm:$0xff] (%p5947_p5), %v5273_v9 }
 0x2d5   : > { %5114 = vst [vmem:[%s7199_s9 + $0x1a8] sm:$0xff] %v5870_v7  ;;  %5190 = vst [vmem:[%s8113_s25 + $0x160] sm:$0xff] (%p5947_p5), %v5189_v61  ;;  %v5275_v7 = vld [vmem:[%s7199_s9 + $0x1e0] sm:$0xff] (%p5947_p5) }
 0x2d6   : > { %v5872_v41 = vpop.eup %5871  ;;  %v5171_v17 = vld [vmem:[%s7199_s9 + $0x40] sm:$0xff] (%p5947_p5)  ;;  %5276 = vst [vmem:[%s8113_s25 + $0x6f0] sm:$0xff] (%p5947_p5), %v5275_v7 }
 0x2d7   : > { %5105 = vst [vmem:[%s7199_s9 + $0x160] sm:$0xff] %v5872_v41  ;;  %5139 = sbr.rel (!%p5947_p5) target bundleno = 740 (0x2e4), region = 55  ;;  %5172 = vst [vmem:[%s8113_s25 + $0x40] sm:$0xff] (%p5947_p5), %v5171_v17  ;;  %v5277_v41 = vld [vmem:[%s7199_s9 + $0x1e8] sm:$0xff] (%p5947_p5) }
 0x2d8   : > { %v5874_v57 = vpop.eup %5873  ;;  %v5225_v32 = vld [vmem:[%s7199_s9 + $0x118] sm:$0xff] (%p5947_p5)  ;;  %5278 = vst [vmem:[%s8113_s25 + $0x6f8] sm:$0xff] (%p5947_p5), %v5277_v41 }
 0x2d9   : > { %5132 = vst [vmem:[%s7199_s9 + $0x238] sm:$0xff] %v5874_v57  ;;  %5226 = vst [vmem:[%s8113_s25 + $0x3a0] sm:$0xff] (%p5947_p5), %v5225_v32 }
 0x2da   : > { %v5876_v38 = vpop.eup %5875  ;;  %v5207_v26 = vld [vmem:[%s7199_s9 + $0xd0] sm:$0xff] (%p5947_p5) }
 0x2db   : > { %5123 = vst [vmem:[%s7199_s9 + $0x1f0] sm:$0xff] %v5876_v38  ;;  %5208 = vst [vmem:[%s8113_s25 + $0x280] sm:$0xff] (%p5947_p5), %v5207_v26  ;;  %v5281_v38 = vld [vmem:[%s7199_s9 + $0x1f8] sm:$0xff] (%p5947_p5) }
 0x2dc   : > { %v5261_v58 = vld [vmem:[%s7199_s9 + $0x1a8] sm:$0xff]  ;;  %5282 = vst [vmem:[%s8113_s25 + $0x7e0] sm:$0xff] %v5281_v38 }
 0x2dd   : > { %5262 = vst [vmem:[%s8113_s25 + $0x5e0] sm:$0xff] %v5261_v58 }
 0x2de   : > { %v5243_v50 = vld [vmem:[%s7199_s9 + $0x160] sm:$0xff] }
 0x2df   : > { %5244 = vst [vmem:[%s8113_s25 + $0x4c0] sm:$0xff] %v5243_v50 }
 0x2e0   : > { %v5297_v56 = vld [vmem:[%s7199_s9 + $0x238] sm:$0xff] }
 0x2e1   : > { %5298 = vst [vmem:[%s8113_s25 + $0x820] sm:$0xff] %v5297_v56 }
 0x2e2   : > { %v5279_v57 = vld [vmem:[%s7199_s9 + $0x1f0] sm:$0xff] }
 0x2e3   : > { %5280 = vst [vmem:[%s8113_s25 + $0x700] sm:$0xff] %v5279_v57 }
 0x2e4 PF: > { %p9_p10 = scmp.ge.s32.totalorder %s5934_s13, 6   ;;  %s8652_s9 = smov %s5895_s10 }
 0x2e5   : > { %s8653_s10 = smov %s5945_s16  ;;  %s8654_s11 = smov %s5934_s13 }
 0x2e6   :  { %11 = sbr.rel (!%p9_p10) target bundleno = 2 (0x2), region = 109 }

</bundles_post_ra>
